<compile_context>
chip_gen: v7x
topology: tpu7x:2x2x1
jax: 0.10.0
libtpu: 0.0.40
codegen_flags: <defaults>
</compile_context>

<pallas_src>
import functools

import jax
import jax.numpy as jnp
import numpy as np
from jax.experimental import pallas as pl
from jax.experimental.pallas import tpu as pltpu


# ----------------------------------------------------------------------------
# Pallas kernel: one (Bt, C*L) batch block per grid step.
# ----------------------------------------------------------------------------
def iaff_kernel(x_ref, r_ref, w1_ref, b1_ref, w2_ref, b2_ref, o_ref, *, C, L, IC):
    # x_ref / r_ref / o_ref : (Bt, C*L) VMEM blocks, channel c = lanes [c*L, (c+1)*L)
    # w1_ref (3*IC*C,), b1_ref (3*IC,), w2_ref (3*C*IC,), b2_ref (3*C,) : flat
    # f32 tables in SMEM; branch order = (local_att=0, global_att=1, local_att2=2).

    def w1(br, o, i):
        return w1_ref[br * IC * C + o * C + i]

    def b1(br, o):
        return b1_ref[br * IC + o]

    def w2(br, c, o):
        return w2_ref[br * C * IC + c * IC + o]

    def b2(br, c):
        return b2_ref[br * C + c]

    # Per-channel (Bt, L) slabs; all math in f32 on dense vregs.
    x_ch = [x_ref[:, c * L:(c + 1) * L].astype(jnp.float32) for c in range(C)]
    r_ch = [r_ref[:, c * L:(c + 1) * L].astype(jnp.float32) for c in range(C)]
    d_ch = [x_ch[c] - r_ch[c] for c in range(C)]    # x - residual (blend delta)
    xa_ch = [x_ch[c] + r_ch[c] for c in range(C)]   # x + residual

    def conv_bn_relu_conv_bn(inp_ch, br):
        """1x1 conv (C->IC)+BN, ReLU, 1x1 conv (IC->C)+BN, unrolled on the VPU."""
        hid = []
        for o in range(IC):
            h = inp_ch[0] * w1(br, o, 0)
            for i in range(1, C):
                h = h + inp_ch[i] * w1(br, o, i)
            hid.append(jnp.maximum(h + b1(br, o), 0.0))
        outs = []
        for c in range(C):
            y = hid[0] * w2(br, c, 0)
            for o in range(1, IC):
                y = y + hid[o] * w2(br, c, o)
            outs.append(y + b2(br, c))
        return outs

    def global_branch(inp_ch, br):
        # AdaptiveAvgPool1d(1): mean over L -> (Bt, 1) per channel, then convs.
        means = [jnp.mean(v, axis=-1, keepdims=True) for v in inp_ch]
        return conv_bn_relu_conv_bn(means, br)

    # ---- stage 1: wei = sigmoid(local_att(xa) + global_att(xa)) ----
    xl = conv_bn_relu_conv_bn(xa_ch, 0)
    xg = global_branch(xa_ch, 1)                    # (Bt, 1), broadcasts over L
    xi_ch = [r_ch[c] + d_ch[c] * jax.nn.sigmoid(xl[c] + xg[c]) for c in range(C)]

    # ---- stage 2: PyTorch forward reuses global_att (branch 1) here ----
    xl2 = conv_bn_relu_conv_bn(xi_ch, 2)
    xg2 = global_branch(xi_ch, 1)
    for c in range(C):
        xo_c = r_ch[c] + d_ch[c] * jax.nn.sigmoid(xl2[c] + xg2[c])
        o_ref[:, c * L:(c + 1) * L] = xo_c.astype(o_ref.dtype)


# ----------------------------------------------------------------------------
# Wrapper: BN folding, weight stacking, batch-block selection, pallas_call.
# ----------------------------------------------------------------------------
def fold_conv_bn(w, b, gamma, beta, mean, var, eps=1e-5):
    """Fold Conv1d(k=1) weight (O, I) + bias (O,) with inference BatchNorm1d."""
    scale = gamma / jnp.sqrt(var + eps)          # (O,)
    w_eff = w * scale[:, None]                   # (O, I)
    b_eff = (b - mean) * scale + beta            # (O,)
    return w_eff, b_eff


def _pick_block_batch(B):
    # Prefer 8/16/32-row blocks (fills the 8-row f32 sublane group) while
    # keeping >= 2 grid steps for the v7x dual TensorCore when B allows it;
    # otherwise fall back to the full batch (block dim == array dim is legal).
    for cand in (32, 16, 8):
        if B % cand == 0 and (B // cand) >= 2:
            return cand
    return B


def iaff_forward(x, residual, params):
    B, C, L = x.shape
    (lw1, lb1, lw2, lb2,
     gw1, gb1, gw2, gb2,
     l2w1, l2b1, l2w2, l2b2) = params
    IC = lw1.shape[0]

    # Stack the three branches' folded params into four tiny flat SMEM tables.
    w1_all = jnp.concatenate([lw1.reshape(-1), gw1.reshape(-1), l2w1.reshape(-1)]).astype(jnp.float32)
    b1_all = jnp.concatenate([lb1.reshape(-1), gb1.reshape(-1), l2b1.reshape(-1)]).astype(jnp.float32)
    w2_all = jnp.concatenate([lw2.reshape(-1), gw2.reshape(-1), l2w2.reshape(-1)]).astype(jnp.float32)
    b2_all = jnp.concatenate([lb2.reshape(-1), gb2.reshape(-1), l2b2.reshape(-1)]).astype(jnp.float32)

    bt = _pick_block_batch(B)
    grid = (B // bt,)

    # Lane-flatten channels: (B, C, L) -> (B, C*L); free contiguous reshape.
    # Fast path assumes L is a multiple of 128 so channel windows stay aligned.
    x2 = x.reshape(B, C * L)
    r2 = residual.reshape(B, C * L)

    data_spec = pl.BlockSpec((bt, C * L), lambda b: (b, 0))
    smem_spec = pl.BlockSpec(memory_space=pltpu.MemorySpace.SMEM)

    kernel = functools.partial(iaff_kernel, C=C, L=L, IC=IC)

    out2 = pl.pallas_call(
        kernel,
        out_shape=jax.ShapeDtypeStruct((B, C * L), x.dtype),
        grid_spec=pltpu.PrefetchScalarGridSpec(
            num_scalar_prefetch=0,
            grid=grid,
            in_specs=[data_spec, data_spec,
                      smem_spec, smem_spec, smem_spec, smem_spec],
            out_specs=pl.BlockSpec((bt, C * L), lambda b: (b, 0)),
        ),
        compiler_params=pltpu.CompilerParams(
            dimension_semantics=("parallel",),
            vmem_limit_bytes=32 * 1024 * 1024,
        ),
    )(x2, r2, w1_all, b1_all, w2_all, b2_all)

    return out2.reshape(B, C, L)


# ----------------------------------------------------------------------------
# Pure-JAX reference (same folded parameters) for a correctness check.
# ----------------------------------------------------------------------------
def iaff_reference(x, r, params):
    (lw1, lb1, lw2, lb2,
     gw1, gb1, gw2, gb2,
     l2w1, l2b1, l2w2, l2b2) = params

    def branch(inp, w1, b1, w2, b2):
        h = jnp.maximum(jnp.einsum("oi,bil->bol", w1, inp) + b1[None, :, None], 0.0)
        return jnp.einsum("oi,bil->bol", w2, h) + b2[None, :, None]

    def glob(inp, w1, b1, w2, b2):
        return branch(jnp.mean(inp, axis=-1, keepdims=True), w1, b1, w2, b2)

    xa = x + r
    wei = jax.nn.sigmoid(branch(xa, lw1, lb1, lw2, lb2) + glob(xa, gw1, gb1, gw2, gb2))
    xi = x * wei + r * (1.0 - wei)
    wei2 = jax.nn.sigmoid(branch(xi, l2w1, l2b1, l2w2, l2b2) + glob(xi, gw1, gb1, gw2, gb2))
    return x * wei2 + r * (1.0 - wei2)


def make_branch_params(key, c_in, c_mid, c_out):
    """Deterministically init one (conv-BN-ReLU-conv-BN) branch and fold BN."""
    ks = jax.random.split(key, 8)
    w1 = jax.random.normal(ks[0], (c_mid, c_in), jnp.float32) * 0.3
    b1 = jax.random.normal(ks[1], (c_mid,), jnp.float32) * 0.1
    g1 = 1.0 + 0.1 * jax.random.normal(ks[2], (c_mid,), jnp.float32)
    be1 = 0.1 * jax.random.normal(ks[3], (c_mid,), jnp.float32)
    m1 = jnp.zeros((c_mid,), jnp.float32)
    v1 = jnp.ones((c_mid,), jnp.float32)

    w2 = jax.random.normal(ks[4], (c_out, c_mid), jnp.float32) * 0.3
    b2 = jax.random.normal(ks[5], (c_out,), jnp.float32) * 0.1
    g2 = 1.0 + 0.1 * jax.random.normal(ks[6], (c_out,), jnp.float32)
    be2 = 0.1 * jax.random.normal(ks[7], (c_out,), jnp.float32)
    m2 = jnp.zeros((c_out,), jnp.float32)
    v2 = jnp.ones((c_out,), jnp.float32)

    w1e, b1e = fold_conv_bn(w1, b1, g1, be1, m1, v1)
    w2e, b2e = fold_conv_bn(w2, b2, g2, be2, m2, v2)
    return [w1e, b1e, w2e, b2e]


if __name__ == "__main__":
    # Module config: iAFF(channels=4, r=2) -> inter_channels = 8.
    # B=16 so the batch-blocked grid has 2 parallel steps of 8 rows each.
    B, C, L = 16, 4, 128
    IC = C * 2

    key = jax.random.PRNGKey(0)
    kx, kr, kl, kg, kl2 = jax.random.split(key, 5)

    x = jax.random.normal(kx, (B, C, L), jnp.float32)
    residual = jax.random.normal(kr, (B, C, L), jnp.float32)

    params = tuple(
        make_branch_params(kl, C, IC, C)     # local_att   (branch 0)
        + make_branch_params(kg, C, IC, C)   # global_att  (branch 1, reused in stage 2)
        + make_branch_params(kl2, C, IC, C)  # local_att2  (branch 2)
    )
    # global_att2 parameters exist in the PyTorch module but its forward never
    # uses them (it calls global_att twice), so they are intentionally omitted.

    out = jax.block_until_ready(iaff_forward(x, residual, params))
    ref = jax.block_until_ready(iaff_reference(x, residual, params))
    np.testing.assert_allclose(np.asarray(out), np.asarray(ref), rtol=1e-4, atol=1e-4)

    print("KERNEL_OK")
</pallas_src>

<mosaic_0001>
module attributes {stable_mosaic.version = 11 : i64} {
  func.func @iaff_kernel(%arg0: i32, %arg1: memref<8x512xf32, #tpu.memory_space<vmem>>, %arg2: memref<8x512xf32, #tpu.memory_space<vmem>>, %arg3: memref<96xf32, #tpu.memory_space<smem>>, %arg4: memref<24xf32, #tpu.memory_space<smem>>, %arg5: memref<96xf32, #tpu.memory_space<smem>>, %arg6: memref<12xf32, #tpu.memory_space<smem>>, %arg7: memref<8x512xf32, #tpu.memory_space<vmem>>) attributes {dimension_semantics = [#tpu.dimension_semantics<parallel>], iteration_bounds = array<i64: 2>, scalar_prefetch = 0 : i64, scratch_operands = 0 : i64, tpu.core_type = #tpu.core_type<tc>, window_params = [{transform_indices = @transform_0, window_bounds = array<i64: 8, 512>}, {transform_indices = @transform_1, window_bounds = array<i64: 8, 512>}, {transform_indices = @transform_2, window_bounds = array<i64: 96>}, {transform_indices = @transform_3, window_bounds = array<i64: 24>}, {transform_indices = @transform_4, window_bounds = array<i64: 96>}, {transform_indices = @transform_5, window_bounds = array<i64: 12>}, {transform_indices = @transform_6, window_bounds = array<i64: 8, 512>}]} {
    %c0 = arith.constant 0 : index
    %c0_0 = arith.constant 0 : index
    %0 = vector.load %arg1[%c0, %c0_0] : memref<8x512xf32, #tpu.memory_space<vmem>>, vector<8x128xf32>
    %c0_1 = arith.constant 0 : index
    %c128 = arith.constant 128 : index
    %1 = vector.load %arg1[%c0_1, %c128] : memref<8x512xf32, #tpu.memory_space<vmem>>, vector<8x128xf32>
    %c0_2 = arith.constant 0 : index
    %c256 = arith.constant 256 : index
    %2 = vector.load %arg1[%c0_2, %c256] : memref<8x512xf32, #tpu.memory_space<vmem>>, vector<8x128xf32>
    %c0_3 = arith.constant 0 : index
    %c384 = arith.constant 384 : index
    %3 = vector.load %arg1[%c0_3, %c384] : memref<8x512xf32, #tpu.memory_space<vmem>>, vector<8x128xf32>
    %c0_4 = arith.constant 0 : index
    %c0_5 = arith.constant 0 : index
    %4 = vector.load %arg2[%c0_4, %c0_5] : memref<8x512xf32, #tpu.memory_space<vmem>>, vector<8x128xf32>
    %c0_6 = arith.constant 0 : index
    %c128_7 = arith.constant 128 : index
    %5 = vector.load %arg2[%c0_6, %c128_7] : memref<8x512xf32, #tpu.memory_space<vmem>>, vector<8x128xf32>
    %c0_8 = arith.constant 0 : index
    %c256_9 = arith.constant 256 : index
    %6 = vector.load %arg2[%c0_8, %c256_9] : memref<8x512xf32, #tpu.memory_space<vmem>>, vector<8x128xf32>
    %c0_10 = arith.constant 0 : index
    %c384_11 = arith.constant 384 : index
    %7 = vector.load %arg2[%c0_10, %c384_11] : memref<8x512xf32, #tpu.memory_space<vmem>>, vector<8x128xf32>
    %8 = arith.subf %0, %4 : vector<8x128xf32>
    %9 = arith.subf %1, %5 : vector<8x128xf32>
    %10 = arith.subf %2, %6 : vector<8x128xf32>
    %11 = arith.subf %3, %7 : vector<8x128xf32>
    %12 = arith.addf %0, %4 : vector<8x128xf32>
    %13 = arith.addf %1, %5 : vector<8x128xf32>
    %14 = arith.addf %2, %6 : vector<8x128xf32>
    %15 = arith.addf %3, %7 : vector<8x128xf32>
    %c0_12 = arith.constant 0 : index
    %16 = memref.load %arg3[%c0_12] : memref<96xf32, #tpu.memory_space<smem>>
    %17 = vector.broadcast %16 : f32 to vector<8x128xf32>
    %18 = arith.mulf %12, %17 : vector<8x128xf32>
    %c1 = arith.constant 1 : index
    %19 = memref.load %arg3[%c1] : memref<96xf32, #tpu.memory_space<smem>>
    %20 = vector.broadcast %19 : f32 to vector<8x128xf32>
    %21 = arith.mulf %13, %20 : vector<8x128xf32>
    %22 = arith.addf %18, %21 : vector<8x128xf32>
    %c2 = arith.constant 2 : index
    %23 = memref.load %arg3[%c2] : memref<96xf32, #tpu.memory_space<smem>>
    %24 = vector.broadcast %23 : f32 to vector<8x128xf32>
    %25 = arith.mulf %14, %24 : vector<8x128xf32>
    %26 = arith.addf %22, %25 : vector<8x128xf32>
    %c3 = arith.constant 3 : index
    %27 = memref.load %arg3[%c3] : memref<96xf32, #tpu.memory_space<smem>>
    %28 = vector.broadcast %27 : f32 to vector<8x128xf32>
    %29 = arith.mulf %15, %28 : vector<8x128xf32>
    %30 = arith.addf %26, %29 : vector<8x128xf32>
    %c0_13 = arith.constant 0 : index
    %31 = memref.load %arg4[%c0_13] : memref<24xf32, #tpu.memory_space<smem>>
    %32 = vector.broadcast %31 : f32 to vector<8x128xf32>
    %33 = arith.addf %30, %32 : vector<8x128xf32>
    %cst = arith.constant 0.000000e+00 : f32
    %34 = vector.broadcast %cst : f32 to vector<8x128xf32>
    %35 = arith.maximumf %33, %34 : vector<8x128xf32>
    %c4 = arith.constant 4 : index
    %36 = memref.load %arg3[%c4] : memref<96xf32, #tpu.memory_space<smem>>
    %37 = vector.broadcast %36 : f32 to vector<8x128xf32>
    %38 = arith.mulf %12, %37 : vector<8x128xf32>
    %c5 = arith.constant 5 : index
    %39 = memref.load %arg3[%c5] : memref<96xf32, #tpu.memory_space<smem>>
    %40 = vector.broadcast %39 : f32 to vector<8x128xf32>
    %41 = arith.mulf %13, %40 : vector<8x128xf32>
    %42 = arith.addf %38, %41 : vector<8x128xf32>
    %c6 = arith.constant 6 : index
    %43 = memref.load %arg3[%c6] : memref<96xf32, #tpu.memory_space<smem>>
    %44 = vector.broadcast %43 : f32 to vector<8x128xf32>
    %45 = arith.mulf %14, %44 : vector<8x128xf32>
    %46 = arith.addf %42, %45 : vector<8x128xf32>
    %c7 = arith.constant 7 : index
    %47 = memref.load %arg3[%c7] : memref<96xf32, #tpu.memory_space<smem>>
    %48 = vector.broadcast %47 : f32 to vector<8x128xf32>
    %49 = arith.mulf %15, %48 : vector<8x128xf32>
    %50 = arith.addf %46, %49 : vector<8x128xf32>
    %c1_14 = arith.constant 1 : index
    %51 = memref.load %arg4[%c1_14] : memref<24xf32, #tpu.memory_space<smem>>
    %52 = vector.broadcast %51 : f32 to vector<8x128xf32>
    %53 = arith.addf %50, %52 : vector<8x128xf32>
    %cst_15 = arith.constant 0.000000e+00 : f32
    %54 = vector.broadcast %cst_15 : f32 to vector<8x128xf32>
    %55 = arith.maximumf %53, %54 : vector<8x128xf32>
    %c8 = arith.constant 8 : index
    %56 = memref.load %arg3[%c8] : memref<96xf32, #tpu.memory_space<smem>>
    %57 = vector.broadcast %56 : f32 to vector<8x128xf32>
    %58 = arith.mulf %12, %57 : vector<8x128xf32>
    %c9 = arith.constant 9 : index
    %59 = memref.load %arg3[%c9] : memref<96xf32, #tpu.memory_space<smem>>
    %60 = vector.broadcast %59 : f32 to vector<8x128xf32>
    %61 = arith.mulf %13, %60 : vector<8x128xf32>
    %62 = arith.addf %58, %61 : vector<8x128xf32>
    %c10 = arith.constant 10 : index
    %63 = memref.load %arg3[%c10] : memref<96xf32, #tpu.memory_space<smem>>
    %64 = vector.broadcast %63 : f32 to vector<8x128xf32>
    %65 = arith.mulf %14, %64 : vector<8x128xf32>
    %66 = arith.addf %62, %65 : vector<8x128xf32>
    %c11 = arith.constant 11 : index
    %67 = memref.load %arg3[%c11] : memref<96xf32, #tpu.memory_space<smem>>
    %68 = vector.broadcast %67 : f32 to vector<8x128xf32>
    %69 = arith.mulf %15, %68 : vector<8x128xf32>
    %70 = arith.addf %66, %69 : vector<8x128xf32>
    %c2_16 = arith.constant 2 : index
    %71 = memref.load %arg4[%c2_16] : memref<24xf32, #tpu.memory_space<smem>>
    %72 = vector.broadcast %71 : f32 to vector<8x128xf32>
    %73 = arith.addf %70, %72 : vector<8x128xf32>
    %cst_17 = arith.constant 0.000000e+00 : f32
    %74 = vector.broadcast %cst_17 : f32 to vector<8x128xf32>
    %75 = arith.maximumf %73, %74 : vector<8x128xf32>
    %c12 = arith.constant 12 : index
    %76 = memref.load %arg3[%c12] : memref<96xf32, #tpu.memory_space<smem>>
    %77 = vector.broadcast %76 : f32 to vector<8x128xf32>
    %78 = arith.mulf %12, %77 : vector<8x128xf32>
    %c13 = arith.constant 13 : index
    %79 = memref.load %arg3[%c13] : memref<96xf32, #tpu.memory_space<smem>>
    %80 = vector.broadcast %79 : f32 to vector<8x128xf32>
    %81 = arith.mulf %13, %80 : vector<8x128xf32>
    %82 = arith.addf %78, %81 : vector<8x128xf32>
    %c14 = arith.constant 14 : index
    %83 = memref.load %arg3[%c14] : memref<96xf32, #tpu.memory_space<smem>>
    %84 = vector.broadcast %83 : f32 to vector<8x128xf32>
    %85 = arith.mulf %14, %84 : vector<8x128xf32>
    %86 = arith.addf %82, %85 : vector<8x128xf32>
    %c15 = arith.constant 15 : index
    %87 = memref.load %arg3[%c15] : memref<96xf32, #tpu.memory_space<smem>>
    %88 = vector.broadcast %87 : f32 to vector<8x128xf32>
    %89 = arith.mulf %15, %88 : vector<8x128xf32>
    %90 = arith.addf %86, %89 : vector<8x128xf32>
    %c3_18 = arith.constant 3 : index
    %91 = memref.load %arg4[%c3_18] : memref<24xf32, #tpu.memory_space<smem>>
    %92 = vector.broadcast %91 : f32 to vector<8x128xf32>
    %93 = arith.addf %90, %92 : vector<8x128xf32>
    %cst_19 = arith.constant 0.000000e+00 : f32
    %94 = vector.broadcast %cst_19 : f32 to vector<8x128xf32>
    %95 = arith.maximumf %93, %94 : vector<8x128xf32>
    %c16 = arith.constant 16 : index
    %96 = memref.load %arg3[%c16] : memref<96xf32, #tpu.memory_space<smem>>
    %97 = vector.broadcast %96 : f32 to vector<8x128xf32>
    %98 = arith.mulf %12, %97 : vector<8x128xf32>
    %c17 = arith.constant 17 : index
    %99 = memref.load %arg3[%c17] : memref<96xf32, #tpu.memory_space<smem>>
    %100 = vector.broadcast %99 : f32 to vector<8x128xf32>
    %101 = arith.mulf %13, %100 : vector<8x128xf32>
    %102 = arith.addf %98, %101 : vector<8x128xf32>
    %c18 = arith.constant 18 : index
    %103 = memref.load %arg3[%c18] : memref<96xf32, #tpu.memory_space<smem>>
    %104 = vector.broadcast %103 : f32 to vector<8x128xf32>
    %105 = arith.mulf %14, %104 : vector<8x128xf32>
    %106 = arith.addf %102, %105 : vector<8x128xf32>
    %c19 = arith.constant 19 : index
    %107 = memref.load %arg3[%c19] : memref<96xf32, #tpu.memory_space<smem>>
    %108 = vector.broadcast %107 : f32 to vector<8x128xf32>
    %109 = arith.mulf %15, %108 : vector<8x128xf32>
    %110 = arith.addf %106, %109 : vector<8x128xf32>
    %c4_20 = arith.constant 4 : index
    %111 = memref.load %arg4[%c4_20] : memref<24xf32, #tpu.memory_space<smem>>
    %112 = vector.broadcast %111 : f32 to vector<8x128xf32>
    %113 = arith.addf %110, %112 : vector<8x128xf32>
    %cst_21 = arith.constant 0.000000e+00 : f32
    %114 = vector.broadcast %cst_21 : f32 to vector<8x128xf32>
    %115 = arith.maximumf %113, %114 : vector<8x128xf32>
    %c20 = arith.constant 20 : index
    %116 = memref.load %arg3[%c20] : memref<96xf32, #tpu.memory_space<smem>>
    %117 = vector.broadcast %116 : f32 to vector<8x128xf32>
    %118 = arith.mulf %12, %117 : vector<8x128xf32>
    %c21 = arith.constant 21 : index
    %119 = memref.load %arg3[%c21] : memref<96xf32, #tpu.memory_space<smem>>
    %120 = vector.broadcast %119 : f32 to vector<8x128xf32>
    %121 = arith.mulf %13, %120 : vector<8x128xf32>
    %122 = arith.addf %118, %121 : vector<8x128xf32>
    %c22 = arith.constant 22 : index
    %123 = memref.load %arg3[%c22] : memref<96xf32, #tpu.memory_space<smem>>
    %124 = vector.broadcast %123 : f32 to vector<8x128xf32>
    %125 = arith.mulf %14, %124 : vector<8x128xf32>
    %126 = arith.addf %122, %125 : vector<8x128xf32>
    %c23 = arith.constant 23 : index
    %127 = memref.load %arg3[%c23] : memref<96xf32, #tpu.memory_space<smem>>
    %128 = vector.broadcast %127 : f32 to vector<8x128xf32>
    %129 = arith.mulf %15, %128 : vector<8x128xf32>
    %130 = arith.addf %126, %129 : vector<8x128xf32>
    %c5_22 = arith.constant 5 : index
    %131 = memref.load %arg4[%c5_22] : memref<24xf32, #tpu.memory_space<smem>>
    %132 = vector.broadcast %131 : f32 to vector<8x128xf32>
    %133 = arith.addf %130, %132 : vector<8x128xf32>
    %cst_23 = arith.constant 0.000000e+00 : f32
    %134 = vector.broadcast %cst_23 : f32 to vector<8x128xf32>
    %135 = arith.maximumf %133, %134 : vector<8x128xf32>
    %c24 = arith.constant 24 : index
    %136 = memref.load %arg3[%c24] : memref<96xf32, #tpu.memory_space<smem>>
    %137 = vector.broadcast %136 : f32 to vector<8x128xf32>
    %138 = arith.mulf %12, %137 : vector<8x128xf32>
    %c25 = arith.constant 25 : index
    %139 = memref.load %arg3[%c25] : memref<96xf32, #tpu.memory_space<smem>>
    %140 = vector.broadcast %139 : f32 to vector<8x128xf32>
    %141 = arith.mulf %13, %140 : vector<8x128xf32>
    %142 = arith.addf %138, %141 : vector<8x128xf32>
    %c26 = arith.constant 26 : index
    %143 = memref.load %arg3[%c26] : memref<96xf32, #tpu.memory_space<smem>>
    %144 = vector.broadcast %143 : f32 to vector<8x128xf32>
    %145 = arith.mulf %14, %144 : vector<8x128xf32>
    %146 = arith.addf %142, %145 : vector<8x128xf32>
    %c27 = arith.constant 27 : index
    %147 = memref.load %arg3[%c27] : memref<96xf32, #tpu.memory_space<smem>>
    %148 = vector.broadcast %147 : f32 to vector<8x128xf32>
    %149 = arith.mulf %15, %148 : vector<8x128xf32>
    %150 = arith.addf %146, %149 : vector<8x128xf32>
    %c6_24 = arith.constant 6 : index
    %151 = memref.load %arg4[%c6_24] : memref<24xf32, #tpu.memory_space<smem>>
    %152 = vector.broadcast %151 : f32 to vector<8x128xf32>
    %153 = arith.addf %150, %152 : vector<8x128xf32>
    %cst_25 = arith.constant 0.000000e+00 : f32
    %154 = vector.broadcast %cst_25 : f32 to vector<8x128xf32>
    %155 = arith.maximumf %153, %154 : vector<8x128xf32>
    %c28 = arith.constant 28 : index
    %156 = memref.load %arg3[%c28] : memref<96xf32, #tpu.memory_space<smem>>
    %157 = vector.broadcast %156 : f32 to vector<8x128xf32>
    %158 = arith.mulf %12, %157 : vector<8x128xf32>
    %c29 = arith.constant 29 : index
    %159 = memref.load %arg3[%c29] : memref<96xf32, #tpu.memory_space<smem>>
    %160 = vector.broadcast %159 : f32 to vector<8x128xf32>
    %161 = arith.mulf %13, %160 : vector<8x128xf32>
    %162 = arith.addf %158, %161 : vector<8x128xf32>
    %c30 = arith.constant 30 : index
    %163 = memref.load %arg3[%c30] : memref<96xf32, #tpu.memory_space<smem>>
    %164 = vector.broadcast %163 : f32 to vector<8x128xf32>
    %165 = arith.mulf %14, %164 : vector<8x128xf32>
    %166 = arith.addf %162, %165 : vector<8x128xf32>
    %c31 = arith.constant 31 : index
    %167 = memref.load %arg3[%c31] : memref<96xf32, #tpu.memory_space<smem>>
    %168 = vector.broadcast %167 : f32 to vector<8x128xf32>
    %169 = arith.mulf %15, %168 : vector<8x128xf32>
    %170 = arith.addf %166, %169 : vector<8x128xf32>
    %c7_26 = arith.constant 7 : index
    %171 = memref.load %arg4[%c7_26] : memref<24xf32, #tpu.memory_space<smem>>
    %172 = vector.broadcast %171 : f32 to vector<8x128xf32>
    %173 = arith.addf %170, %172 : vector<8x128xf32>
    %cst_27 = arith.constant 0.000000e+00 : f32
    %174 = vector.broadcast %cst_27 : f32 to vector<8x128xf32>
    %175 = arith.maximumf %173, %174 : vector<8x128xf32>
    %c0_28 = arith.constant 0 : index
    %176 = memref.load %arg5[%c0_28] : memref<96xf32, #tpu.memory_space<smem>>
    %177 = vector.broadcast %176 : f32 to vector<8x128xf32>
    %178 = arith.mulf %35, %177 : vector<8x128xf32>
    %c1_29 = arith.constant 1 : index
    %179 = memref.load %arg5[%c1_29] : memref<96xf32, #tpu.memory_space<smem>>
    %180 = vector.broadcast %179 : f32 to vector<8x128xf32>
    %181 = arith.mulf %55, %180 : vector<8x128xf32>
    %182 = arith.addf %178, %181 : vector<8x128xf32>
    %c2_30 = arith.constant 2 : index
    %183 = memref.load %arg5[%c2_30] : memref<96xf32, #tpu.memory_space<smem>>
    %184 = vector.broadcast %183 : f32 to vector<8x128xf32>
    %185 = arith.mulf %75, %184 : vector<8x128xf32>
    %186 = arith.addf %182, %185 : vector<8x128xf32>
    %c3_31 = arith.constant 3 : index
    %187 = memref.load %arg5[%c3_31] : memref<96xf32, #tpu.memory_space<smem>>
    %188 = vector.broadcast %187 : f32 to vector<8x128xf32>
    %189 = arith.mulf %95, %188 : vector<8x128xf32>
    %190 = arith.addf %186, %189 : vector<8x128xf32>
    %c4_32 = arith.constant 4 : index
    %191 = memref.load %arg5[%c4_32] : memref<96xf32, #tpu.memory_space<smem>>
    %192 = vector.broadcast %191 : f32 to vector<8x128xf32>
    %193 = arith.mulf %115, %192 : vector<8x128xf32>
    %194 = arith.addf %190, %193 : vector<8x128xf32>
    %c5_33 = arith.constant 5 : index
    %195 = memref.load %arg5[%c5_33] : memref<96xf32, #tpu.memory_space<smem>>
    %196 = vector.broadcast %195 : f32 to vector<8x128xf32>
    %197 = arith.mulf %135, %196 : vector<8x128xf32>
    %198 = arith.addf %194, %197 : vector<8x128xf32>
    %c6_34 = arith.constant 6 : index
    %199 = memref.load %arg5[%c6_34] : memref<96xf32, #tpu.memory_space<smem>>
    %200 = vector.broadcast %199 : f32 to vector<8x128xf32>
    %201 = arith.mulf %155, %200 : vector<8x128xf32>
    %202 = arith.addf %198, %201 : vector<8x128xf32>
    %c7_35 = arith.constant 7 : index
    %203 = memref.load %arg5[%c7_35] : memref<96xf32, #tpu.memory_space<smem>>
    %204 = vector.broadcast %203 : f32 to vector<8x128xf32>
    %205 = arith.mulf %175, %204 : vector<8x128xf32>
    %206 = arith.addf %202, %205 : vector<8x128xf32>
    %c0_36 = arith.constant 0 : index
    %207 = memref.load %arg6[%c0_36] : memref<12xf32, #tpu.memory_space<smem>>
    %208 = vector.broadcast %207 : f32 to vector<8x128xf32>
    %209 = arith.addf %206, %208 : vector<8x128xf32>
    %c8_37 = arith.constant 8 : index
    %210 = memref.load %arg5[%c8_37] : memref<96xf32, #tpu.memory_space<smem>>
    %211 = vector.broadcast %210 : f32 to vector<8x128xf32>
    %212 = arith.mulf %35, %211 : vector<8x128xf32>
    %c9_38 = arith.constant 9 : index
    %213 = memref.load %arg5[%c9_38] : memref<96xf32, #tpu.memory_space<smem>>
    %214 = vector.broadcast %213 : f32 to vector<8x128xf32>
    %215 = arith.mulf %55, %214 : vector<8x128xf32>
    %216 = arith.addf %212, %215 : vector<8x128xf32>
    %c10_39 = arith.constant 10 : index
    %217 = memref.load %arg5[%c10_39] : memref<96xf32, #tpu.memory_space<smem>>
    %218 = vector.broadcast %217 : f32 to vector<8x128xf32>
    %219 = arith.mulf %75, %218 : vector<8x128xf32>
    %220 = arith.addf %216, %219 : vector<8x128xf32>
    %c11_40 = arith.constant 11 : index
    %221 = memref.load %arg5[%c11_40] : memref<96xf32, #tpu.memory_space<smem>>
    %222 = vector.broadcast %221 : f32 to vector<8x128xf32>
    %223 = arith.mulf %95, %222 : vector<8x128xf32>
    %224 = arith.addf %220, %223 : vector<8x128xf32>
    %c12_41 = arith.constant 12 : index
    %225 = memref.load %arg5[%c12_41] : memref<96xf32, #tpu.memory_space<smem>>
    %226 = vector.broadcast %225 : f32 to vector<8x128xf32>
    %227 = arith.mulf %115, %226 : vector<8x128xf32>
    %228 = arith.addf %224, %227 : vector<8x128xf32>
    %c13_42 = arith.constant 13 : index
    %229 = memref.load %arg5[%c13_42] : memref<96xf32, #tpu.memory_space<smem>>
    %230 = vector.broadcast %229 : f32 to vector<8x128xf32>
    %231 = arith.mulf %135, %230 : vector<8x128xf32>
    %232 = arith.addf %228, %231 : vector<8x128xf32>
    %c14_43 = arith.constant 14 : index
    %233 = memref.load %arg5[%c14_43] : memref<96xf32, #tpu.memory_space<smem>>
    %234 = vector.broadcast %233 : f32 to vector<8x128xf32>
    %235 = arith.mulf %155, %234 : vector<8x128xf32>
    %236 = arith.addf %232, %235 : vector<8x128xf32>
    %c15_44 = arith.constant 15 : index
    %237 = memref.load %arg5[%c15_44] : memref<96xf32, #tpu.memory_space<smem>>
    %238 = vector.broadcast %237 : f32 to vector<8x128xf32>
    %239 = arith.mulf %175, %238 : vector<8x128xf32>
    %240 = arith.addf %236, %239 : vector<8x128xf32>
    %c1_45 = arith.constant 1 : index
    %241 = memref.load %arg6[%c1_45] : memref<12xf32, #tpu.memory_space<smem>>
    %242 = vector.broadcast %241 : f32 to vector<8x128xf32>
    %243 = arith.addf %240, %242 : vector<8x128xf32>
    %c16_46 = arith.constant 16 : index
    %244 = memref.load %arg5[%c16_46] : memref<96xf32, #tpu.memory_space<smem>>
    %245 = vector.broadcast %244 : f32 to vector<8x128xf32>
    %246 = arith.mulf %35, %245 : vector<8x128xf32>
    %c17_47 = arith.constant 17 : index
    %247 = memref.load %arg5[%c17_47] : memref<96xf32, #tpu.memory_space<smem>>
    %248 = vector.broadcast %247 : f32 to vector<8x128xf32>
    %249 = arith.mulf %55, %248 : vector<8x128xf32>
    %250 = arith.addf %246, %249 : vector<8x128xf32>
    %c18_48 = arith.constant 18 : index
    %251 = memref.load %arg5[%c18_48] : memref<96xf32, #tpu.memory_space<smem>>
    %252 = vector.broadcast %251 : f32 to vector<8x128xf32>
    %253 = arith.mulf %75, %252 : vector<8x128xf32>
    %254 = arith.addf %250, %253 : vector<8x128xf32>
    %c19_49 = arith.constant 19 : index
    %255 = memref.load %arg5[%c19_49] : memref<96xf32, #tpu.memory_space<smem>>
    %256 = vector.broadcast %255 : f32 to vector<8x128xf32>
    %257 = arith.mulf %95, %256 : vector<8x128xf32>
    %258 = arith.addf %254, %257 : vector<8x128xf32>
    %c20_50 = arith.constant 20 : index
    %259 = memref.load %arg5[%c20_50] : memref<96xf32, #tpu.memory_space<smem>>
    %260 = vector.broadcast %259 : f32 to vector<8x128xf32>
    %261 = arith.mulf %115, %260 : vector<8x128xf32>
    %262 = arith.addf %258, %261 : vector<8x128xf32>
    %c21_51 = arith.constant 21 : index
    %263 = memref.load %arg5[%c21_51] : memref<96xf32, #tpu.memory_space<smem>>
    %264 = vector.broadcast %263 : f32 to vector<8x128xf32>
    %265 = arith.mulf %135, %264 : vector<8x128xf32>
    %266 = arith.addf %262, %265 : vector<8x128xf32>
    %c22_52 = arith.constant 22 : index
    %267 = memref.load %arg5[%c22_52] : memref<96xf32, #tpu.memory_space<smem>>
    %268 = vector.broadcast %267 : f32 to vector<8x128xf32>
    %269 = arith.mulf %155, %268 : vector<8x128xf32>
    %270 = arith.addf %266, %269 : vector<8x128xf32>
    %c23_53 = arith.constant 23 : index
    %271 = memref.load %arg5[%c23_53] : memref<96xf32, #tpu.memory_space<smem>>
    %272 = vector.broadcast %271 : f32 to vector<8x128xf32>
    %273 = arith.mulf %175, %272 : vector<8x128xf32>
    %274 = arith.addf %270, %273 : vector<8x128xf32>
    %c2_54 = arith.constant 2 : index
    %275 = memref.load %arg6[%c2_54] : memref<12xf32, #tpu.memory_space<smem>>
    %276 = vector.broadcast %275 : f32 to vector<8x128xf32>
    %277 = arith.addf %274, %276 : vector<8x128xf32>
    %c24_55 = arith.constant 24 : index
    %278 = memref.load %arg5[%c24_55] : memref<96xf32, #tpu.memory_space<smem>>
    %279 = vector.broadcast %278 : f32 to vector<8x128xf32>
    %280 = arith.mulf %35, %279 : vector<8x128xf32>
    %c25_56 = arith.constant 25 : index
    %281 = memref.load %arg5[%c25_56] : memref<96xf32, #tpu.memory_space<smem>>
    %282 = vector.broadcast %281 : f32 to vector<8x128xf32>
    %283 = arith.mulf %55, %282 : vector<8x128xf32>
    %284 = arith.addf %280, %283 : vector<8x128xf32>
    %c26_57 = arith.constant 26 : index
    %285 = memref.load %arg5[%c26_57] : memref<96xf32, #tpu.memory_space<smem>>
    %286 = vector.broadcast %285 : f32 to vector<8x128xf32>
    %287 = arith.mulf %75, %286 : vector<8x128xf32>
    %288 = arith.addf %284, %287 : vector<8x128xf32>
    %c27_58 = arith.constant 27 : index
    %289 = memref.load %arg5[%c27_58] : memref<96xf32, #tpu.memory_space<smem>>
    %290 = vector.broadcast %289 : f32 to vector<8x128xf32>
    %291 = arith.mulf %95, %290 : vector<8x128xf32>
    %292 = arith.addf %288, %291 : vector<8x128xf32>
    %c28_59 = arith.constant 28 : index
    %293 = memref.load %arg5[%c28_59] : memref<96xf32, #tpu.memory_space<smem>>
    %294 = vector.broadcast %293 : f32 to vector<8x128xf32>
    %295 = arith.mulf %115, %294 : vector<8x128xf32>
    %296 = arith.addf %292, %295 : vector<8x128xf32>
    %c29_60 = arith.constant 29 : index
    %297 = memref.load %arg5[%c29_60] : memref<96xf32, #tpu.memory_space<smem>>
    %298 = vector.broadcast %297 : f32 to vector<8x128xf32>
    %299 = arith.mulf %135, %298 : vector<8x128xf32>
    %300 = arith.addf %296, %299 : vector<8x128xf32>
    %c30_61 = arith.constant 30 : index
    %301 = memref.load %arg5[%c30_61] : memref<96xf32, #tpu.memory_space<smem>>
    %302 = vector.broadcast %301 : f32 to vector<8x128xf32>
    %303 = arith.mulf %155, %302 : vector<8x128xf32>
    %304 = arith.addf %300, %303 : vector<8x128xf32>
    %c31_62 = arith.constant 31 : index
    %305 = memref.load %arg5[%c31_62] : memref<96xf32, #tpu.memory_space<smem>>
    %306 = vector.broadcast %305 : f32 to vector<8x128xf32>
    %307 = arith.mulf %175, %306 : vector<8x128xf32>
    %308 = arith.addf %304, %307 : vector<8x128xf32>
    %c3_63 = arith.constant 3 : index
    %309 = memref.load %arg6[%c3_63] : memref<12xf32, #tpu.memory_space<smem>>
    %310 = vector.broadcast %309 : f32 to vector<8x128xf32>
    %311 = arith.addf %308, %310 : vector<8x128xf32>
    %cst_64 = arith.constant dense<0.000000e+00> : vector<8xf32>
    %312 = vector.multi_reduction <add>, %12, %cst_64 [1] : vector<8x128xf32> to vector<8xf32>
    %313 = vector.shape_cast %312 : vector<8xf32> to vector<8x1xf32>
    %cst_65 = arith.constant 1.280000e+02 : f32
    %314 = vector.broadcast %cst_65 : f32 to vector<8x1xf32>
    %315 = arith.divf %313, %314 : vector<8x1xf32>
    %cst_66 = arith.constant dense<0.000000e+00> : vector<8xf32>
    %316 = vector.multi_reduction <add>, %13, %cst_66 [1] : vector<8x128xf32> to vector<8xf32>
    %317 = vector.shape_cast %316 : vector<8xf32> to vector<8x1xf32>
    %cst_67 = arith.constant 1.280000e+02 : f32
    %318 = vector.broadcast %cst_67 : f32 to vector<8x1xf32>
    %319 = arith.divf %317, %318 : vector<8x1xf32>
    %cst_68 = arith.constant dense<0.000000e+00> : vector<8xf32>
    %320 = vector.multi_reduction <add>, %14, %cst_68 [1] : vector<8x128xf32> to vector<8xf32>
    %321 = vector.shape_cast %320 : vector<8xf32> to vector<8x1xf32>
    %cst_69 = arith.constant 1.280000e+02 : f32
    %322 = vector.broadcast %cst_69 : f32 to vector<8x1xf32>
    %323 = arith.divf %321, %322 : vector<8x1xf32>
    %cst_70 = arith.constant dense<0.000000e+00> : vector<8xf32>
    %324 = vector.multi_reduction <add>, %15, %cst_70 [1] : vector<8x128xf32> to vector<8xf32>
    %325 = vector.shape_cast %324 : vector<8xf32> to vector<8x1xf32>
    %cst_71 = arith.constant 1.280000e+02 : f32
    %326 = vector.broadcast %cst_71 : f32 to vector<8x1xf32>
    %327 = arith.divf %325, %326 : vector<8x1xf32>
    %c32 = arith.constant 32 : index
    %328 = memref.load %arg3[%c32] : memref<96xf32, #tpu.memory_space<smem>>
    %329 = vector.broadcast %328 : f32 to vector<8x1xf32>
    %330 = arith.mulf %315, %329 : vector<8x1xf32>
    %c33 = arith.constant 33 : index
    %331 = memref.load %arg3[%c33] : memref<96xf32, #tpu.memory_space<smem>>
    %332 = vector.broadcast %331 : f32 to vector<8x1xf32>
    %333 = arith.mulf %319, %332 : vector<8x1xf32>
    %334 = arith.addf %330, %333 : vector<8x1xf32>
    %c34 = arith.constant 34 : index
    %335 = memref.load %arg3[%c34] : memref<96xf32, #tpu.memory_space<smem>>
    %336 = vector.broadcast %335 : f32 to vector<8x1xf32>
    %337 = arith.mulf %323, %336 : vector<8x1xf32>
    %338 = arith.addf %334, %337 : vector<8x1xf32>
    %c35 = arith.constant 35 : index
    %339 = memref.load %arg3[%c35] : memref<96xf32, #tpu.memory_space<smem>>
    %340 = vector.broadcast %339 : f32 to vector<8x1xf32>
    %341 = arith.mulf %327, %340 : vector<8x1xf32>
    %342 = arith.addf %338, %341 : vector<8x1xf32>
    %c8_72 = arith.constant 8 : index
    %343 = memref.load %arg4[%c8_72] : memref<24xf32, #tpu.memory_space<smem>>
    %344 = vector.broadcast %343 : f32 to vector<8x1xf32>
    %345 = arith.addf %342, %344 : vector<8x1xf32>
    %cst_73 = arith.constant 0.000000e+00 : f32
    %346 = vector.broadcast %cst_73 : f32 to vector<8x1xf32>
    %347 = arith.maximumf %345, %346 : vector<8x1xf32>
    %c36 = arith.constant 36 : index
    %348 = memref.load %arg3[%c36] : memref<96xf32, #tpu.memory_space<smem>>
    %349 = vector.broadcast %348 : f32 to vector<8x1xf32>
    %350 = arith.mulf %315, %349 : vector<8x1xf32>
    %c37 = arith.constant 37 : index
    %351 = memref.load %arg3[%c37] : memref<96xf32, #tpu.memory_space<smem>>
    %352 = vector.broadcast %351 : f32 to vector<8x1xf32>
    %353 = arith.mulf %319, %352 : vector<8x1xf32>
    %354 = arith.addf %350, %353 : vector<8x1xf32>
    %c38 = arith.constant 38 : index
    %355 = memref.load %arg3[%c38] : memref<96xf32, #tpu.memory_space<smem>>
    %356 = vector.broadcast %355 : f32 to vector<8x1xf32>
    %357 = arith.mulf %323, %356 : vector<8x1xf32>
    %358 = arith.addf %354, %357 : vector<8x1xf32>
    %c39 = arith.constant 39 : index
    %359 = memref.load %arg3[%c39] : memref<96xf32, #tpu.memory_space<smem>>
    %360 = vector.broadcast %359 : f32 to vector<8x1xf32>
    %361 = arith.mulf %327, %360 : vector<8x1xf32>
    %362 = arith.addf %358, %361 : vector<8x1xf32>
    %c9_74 = arith.constant 9 : index
    %363 = memref.load %arg4[%c9_74] : memref<24xf32, #tpu.memory_space<smem>>
    %364 = vector.broadcast %363 : f32 to vector<8x1xf32>
    %365 = arith.addf %362, %364 : vector<8x1xf32>
    %cst_75 = arith.constant 0.000000e+00 : f32
    %366 = vector.broadcast %cst_75 : f32 to vector<8x1xf32>
    %367 = arith.maximumf %365, %366 : vector<8x1xf32>
    %c40 = arith.constant 40 : index
    %368 = memref.load %arg3[%c40] : memref<96xf32, #tpu.memory_space<smem>>
    %369 = vector.broadcast %368 : f32 to vector<8x1xf32>
    %370 = arith.mulf %315, %369 : vector<8x1xf32>
    %c41 = arith.constant 41 : index
    %371 = memref.load %arg3[%c41] : memref<96xf32, #tpu.memory_space<smem>>
    %372 = vector.broadcast %371 : f32 to vector<8x1xf32>
    %373 = arith.mulf %319, %372 : vector<8x1xf32>
    %374 = arith.addf %370, %373 : vector<8x1xf32>
    %c42 = arith.constant 42 : index
    %375 = memref.load %arg3[%c42] : memref<96xf32, #tpu.memory_space<smem>>
    %376 = vector.broadcast %375 : f32 to vector<8x1xf32>
    %377 = arith.mulf %323, %376 : vector<8x1xf32>
    %378 = arith.addf %374, %377 : vector<8x1xf32>
    %c43 = arith.constant 43 : index
    %379 = memref.load %arg3[%c43] : memref<96xf32, #tpu.memory_space<smem>>
    %380 = vector.broadcast %379 : f32 to vector<8x1xf32>
    %381 = arith.mulf %327, %380 : vector<8x1xf32>
    %382 = arith.addf %378, %381 : vector<8x1xf32>
    %c10_76 = arith.constant 10 : index
    %383 = memref.load %arg4[%c10_76] : memref<24xf32, #tpu.memory_space<smem>>
    %384 = vector.broadcast %383 : f32 to vector<8x1xf32>
    %385 = arith.addf %382, %384 : vector<8x1xf32>
    %cst_77 = arith.constant 0.000000e+00 : f32
    %386 = vector.broadcast %cst_77 : f32 to vector<8x1xf32>
    %387 = arith.maximumf %385, %386 : vector<8x1xf32>
    %c44 = arith.constant 44 : index
    %388 = memref.load %arg3[%c44] : memref<96xf32, #tpu.memory_space<smem>>
    %389 = vector.broadcast %388 : f32 to vector<8x1xf32>
    %390 = arith.mulf %315, %389 : vector<8x1xf32>
    %c45 = arith.constant 45 : index
    %391 = memref.load %arg3[%c45] : memref<96xf32, #tpu.memory_space<smem>>
    %392 = vector.broadcast %391 : f32 to vector<8x1xf32>
    %393 = arith.mulf %319, %392 : vector<8x1xf32>
    %394 = arith.addf %390, %393 : vector<8x1xf32>
    %c46 = arith.constant 46 : index
    %395 = memref.load %arg3[%c46] : memref<96xf32, #tpu.memory_space<smem>>
    %396 = vector.broadcast %395 : f32 to vector<8x1xf32>
    %397 = arith.mulf %323, %396 : vector<8x1xf32>
    %398 = arith.addf %394, %397 : vector<8x1xf32>
    %c47 = arith.constant 47 : index
    %399 = memref.load %arg3[%c47] : memref<96xf32, #tpu.memory_space<smem>>
    %400 = vector.broadcast %399 : f32 to vector<8x1xf32>
    %401 = arith.mulf %327, %400 : vector<8x1xf32>
    %402 = arith.addf %398, %401 : vector<8x1xf32>
    %c11_78 = arith.constant 11 : index
    %403 = memref.load %arg4[%c11_78] : memref<24xf32, #tpu.memory_space<smem>>
    %404 = vector.broadcast %403 : f32 to vector<8x1xf32>
    %405 = arith.addf %402, %404 : vector<8x1xf32>
    %cst_79 = arith.constant 0.000000e+00 : f32
    %406 = vector.broadcast %cst_79 : f32 to vector<8x1xf32>
    %407 = arith.maximumf %405, %406 : vector<8x1xf32>
    %c48 = arith.constant 48 : index
    %408 = memref.load %arg3[%c48] : memref<96xf32, #tpu.memory_space<smem>>
    %409 = vector.broadcast %408 : f32 to vector<8x1xf32>
    %410 = arith.mulf %315, %409 : vector<8x1xf32>
    %c49 = arith.constant 49 : index
    %411 = memref.load %arg3[%c49] : memref<96xf32, #tpu.memory_space<smem>>
    %412 = vector.broadcast %411 : f32 to vector<8x1xf32>
    %413 = arith.mulf %319, %412 : vector<8x1xf32>
    %414 = arith.addf %410, %413 : vector<8x1xf32>
    %c50 = arith.constant 50 : index
    %415 = memref.load %arg3[%c50] : memref<96xf32, #tpu.memory_space<smem>>
    %416 = vector.broadcast %415 : f32 to vector<8x1xf32>
    %417 = arith.mulf %323, %416 : vector<8x1xf32>
    %418 = arith.addf %414, %417 : vector<8x1xf32>
    %c51 = arith.constant 51 : index
    %419 = memref.load %arg3[%c51] : memref<96xf32, #tpu.memory_space<smem>>
    %420 = vector.broadcast %419 : f32 to vector<8x1xf32>
    %421 = arith.mulf %327, %420 : vector<8x1xf32>
    %422 = arith.addf %418, %421 : vector<8x1xf32>
    %c12_80 = arith.constant 12 : index
    %423 = memref.load %arg4[%c12_80] : memref<24xf32, #tpu.memory_space<smem>>
    %424 = vector.broadcast %423 : f32 to vector<8x1xf32>
    %425 = arith.addf %422, %424 : vector<8x1xf32>
    %cst_81 = arith.constant 0.000000e+00 : f32
    %426 = vector.broadcast %cst_81 : f32 to vector<8x1xf32>
    %427 = arith.maximumf %425, %426 : vector<8x1xf32>
    %c52 = arith.constant 52 : index
    %428 = memref.load %arg3[%c52] : memref<96xf32, #tpu.memory_space<smem>>
    %429 = vector.broadcast %428 : f32 to vector<8x1xf32>
    %430 = arith.mulf %315, %429 : vector<8x1xf32>
    %c53 = arith.constant 53 : index
    %431 = memref.load %arg3[%c53] : memref<96xf32, #tpu.memory_space<smem>>
    %432 = vector.broadcast %431 : f32 to vector<8x1xf32>
    %433 = arith.mulf %319, %432 : vector<8x1xf32>
    %434 = arith.addf %430, %433 : vector<8x1xf32>
    %c54 = arith.constant 54 : index
    %435 = memref.load %arg3[%c54] : memref<96xf32, #tpu.memory_space<smem>>
    %436 = vector.broadcast %435 : f32 to vector<8x1xf32>
    %437 = arith.mulf %323, %436 : vector<8x1xf32>
    %438 = arith.addf %434, %437 : vector<8x1xf32>
    %c55 = arith.constant 55 : index
    %439 = memref.load %arg3[%c55] : memref<96xf32, #tpu.memory_space<smem>>
    %440 = vector.broadcast %439 : f32 to vector<8x1xf32>
    %441 = arith.mulf %327, %440 : vector<8x1xf32>
    %442 = arith.addf %438, %441 : vector<8x1xf32>
    %c13_82 = arith.constant 13 : index
    %443 = memref.load %arg4[%c13_82] : memref<24xf32, #tpu.memory_space<smem>>
    %444 = vector.broadcast %443 : f32 to vector<8x1xf32>
    %445 = arith.addf %442, %444 : vector<8x1xf32>
    %cst_83 = arith.constant 0.000000e+00 : f32
    %446 = vector.broadcast %cst_83 : f32 to vector<8x1xf32>
    %447 = arith.maximumf %445, %446 : vector<8x1xf32>
    %c56 = arith.constant 56 : index
    %448 = memref.load %arg3[%c56] : memref<96xf32, #tpu.memory_space<smem>>
    %449 = vector.broadcast %448 : f32 to vector<8x1xf32>
    %450 = arith.mulf %315, %449 : vector<8x1xf32>
    %c57 = arith.constant 57 : index
    %451 = memref.load %arg3[%c57] : memref<96xf32, #tpu.memory_space<smem>>
    %452 = vector.broadcast %451 : f32 to vector<8x1xf32>
    %453 = arith.mulf %319, %452 : vector<8x1xf32>
    %454 = arith.addf %450, %453 : vector<8x1xf32>
    %c58 = arith.constant 58 : index
    %455 = memref.load %arg3[%c58] : memref<96xf32, #tpu.memory_space<smem>>
    %456 = vector.broadcast %455 : f32 to vector<8x1xf32>
    %457 = arith.mulf %323, %456 : vector<8x1xf32>
    %458 = arith.addf %454, %457 : vector<8x1xf32>
    %c59 = arith.constant 59 : index
    %459 = memref.load %arg3[%c59] : memref<96xf32, #tpu.memory_space<smem>>
    %460 = vector.broadcast %459 : f32 to vector<8x1xf32>
    %461 = arith.mulf %327, %460 : vector<8x1xf32>
    %462 = arith.addf %458, %461 : vector<8x1xf32>
    %c14_84 = arith.constant 14 : index
    %463 = memref.load %arg4[%c14_84] : memref<24xf32, #tpu.memory_space<smem>>
    %464 = vector.broadcast %463 : f32 to vector<8x1xf32>
    %465 = arith.addf %462, %464 : vector<8x1xf32>
    %cst_85 = arith.constant 0.000000e+00 : f32
    %466 = vector.broadcast %cst_85 : f32 to vector<8x1xf32>
    %467 = arith.maximumf %465, %466 : vector<8x1xf32>
    %c60 = arith.constant 60 : index
    %468 = memref.load %arg3[%c60] : memref<96xf32, #tpu.memory_space<smem>>
    %469 = vector.broadcast %468 : f32 to vector<8x1xf32>
    %470 = arith.mulf %315, %469 : vector<8x1xf32>
    %c61 = arith.constant 61 : index
    %471 = memref.load %arg3[%c61] : memref<96xf32, #tpu.memory_space<smem>>
    %472 = vector.broadcast %471 : f32 to vector<8x1xf32>
    %473 = arith.mulf %319, %472 : vector<8x1xf32>
    %474 = arith.addf %470, %473 : vector<8x1xf32>
    %c62 = arith.constant 62 : index
    %475 = memref.load %arg3[%c62] : memref<96xf32, #tpu.memory_space<smem>>
    %476 = vector.broadcast %475 : f32 to vector<8x1xf32>
    %477 = arith.mulf %323, %476 : vector<8x1xf32>
    %478 = arith.addf %474, %477 : vector<8x1xf32>
    %c63 = arith.constant 63 : index
    %479 = memref.load %arg3[%c63] : memref<96xf32, #tpu.memory_space<smem>>
    %480 = vector.broadcast %479 : f32 to vector<8x1xf32>
    %481 = arith.mulf %327, %480 : vector<8x1xf32>
    %482 = arith.addf %478, %481 : vector<8x1xf32>
    %c15_86 = arith.constant 15 : index
    %483 = memref.load %arg4[%c15_86] : memref<24xf32, #tpu.memory_space<smem>>
    %484 = vector.broadcast %483 : f32 to vector<8x1xf32>
    %485 = arith.addf %482, %484 : vector<8x1xf32>
    %cst_87 = arith.constant 0.000000e+00 : f32
    %486 = vector.broadcast %cst_87 : f32 to vector<8x1xf32>
    %487 = arith.maximumf %485, %486 : vector<8x1xf32>
    %c32_88 = arith.constant 32 : index
    %488 = memref.load %arg5[%c32_88] : memref<96xf32, #tpu.memory_space<smem>>
    %489 = vector.broadcast %488 : f32 to vector<8x1xf32>
    %490 = arith.mulf %347, %489 : vector<8x1xf32>
    %c33_89 = arith.constant 33 : index
    %491 = memref.load %arg5[%c33_89] : memref<96xf32, #tpu.memory_space<smem>>
    %492 = vector.broadcast %491 : f32 to vector<8x1xf32>
    %493 = arith.mulf %367, %492 : vector<8x1xf32>
    %494 = arith.addf %490, %493 : vector<8x1xf32>
    %c34_90 = arith.constant 34 : index
    %495 = memref.load %arg5[%c34_90] : memref<96xf32, #tpu.memory_space<smem>>
    %496 = vector.broadcast %495 : f32 to vector<8x1xf32>
    %497 = arith.mulf %387, %496 : vector<8x1xf32>
    %498 = arith.addf %494, %497 : vector<8x1xf32>
    %c35_91 = arith.constant 35 : index
    %499 = memref.load %arg5[%c35_91] : memref<96xf32, #tpu.memory_space<smem>>
    %500 = vector.broadcast %499 : f32 to vector<8x1xf32>
    %501 = arith.mulf %407, %500 : vector<8x1xf32>
    %502 = arith.addf %498, %501 : vector<8x1xf32>
    %c36_92 = arith.constant 36 : index
    %503 = memref.load %arg5[%c36_92] : memref<96xf32, #tpu.memory_space<smem>>
    %504 = vector.broadcast %503 : f32 to vector<8x1xf32>
    %505 = arith.mulf %427, %504 : vector<8x1xf32>
    %506 = arith.addf %502, %505 : vector<8x1xf32>
    %c37_93 = arith.constant 37 : index
    %507 = memref.load %arg5[%c37_93] : memref<96xf32, #tpu.memory_space<smem>>
    %508 = vector.broadcast %507 : f32 to vector<8x1xf32>
    %509 = arith.mulf %447, %508 : vector<8x1xf32>
    %510 = arith.addf %506, %509 : vector<8x1xf32>
    %c38_94 = arith.constant 38 : index
    %511 = memref.load %arg5[%c38_94] : memref<96xf32, #tpu.memory_space<smem>>
    %512 = vector.broadcast %511 : f32 to vector<8x1xf32>
    %513 = arith.mulf %467, %512 : vector<8x1xf32>
    %514 = arith.addf %510, %513 : vector<8x1xf32>
    %c39_95 = arith.constant 39 : index
    %515 = memref.load %arg5[%c39_95] : memref<96xf32, #tpu.memory_space<smem>>
    %516 = vector.broadcast %515 : f32 to vector<8x1xf32>
    %517 = arith.mulf %487, %516 : vector<8x1xf32>
    %518 = arith.addf %514, %517 : vector<8x1xf32>
    %c4_96 = arith.constant 4 : index
    %519 = memref.load %arg6[%c4_96] : memref<12xf32, #tpu.memory_space<smem>>
    %520 = vector.broadcast %519 : f32 to vector<8x1xf32>
    %521 = arith.addf %518, %520 : vector<8x1xf32>
    %c40_97 = arith.constant 40 : index
    %522 = memref.load %arg5[%c40_97] : memref<96xf32, #tpu.memory_space<smem>>
    %523 = vector.broadcast %522 : f32 to vector<8x1xf32>
    %524 = arith.mulf %347, %523 : vector<8x1xf32>
    %c41_98 = arith.constant 41 : index
    %525 = memref.load %arg5[%c41_98] : memref<96xf32, #tpu.memory_space<smem>>
    %526 = vector.broadcast %525 : f32 to vector<8x1xf32>
    %527 = arith.mulf %367, %526 : vector<8x1xf32>
    %528 = arith.addf %524, %527 : vector<8x1xf32>
    %c42_99 = arith.constant 42 : index
    %529 = memref.load %arg5[%c42_99] : memref<96xf32, #tpu.memory_space<smem>>
    %530 = vector.broadcast %529 : f32 to vector<8x1xf32>
    %531 = arith.mulf %387, %530 : vector<8x1xf32>
    %532 = arith.addf %528, %531 : vector<8x1xf32>
    %c43_100 = arith.constant 43 : index
    %533 = memref.load %arg5[%c43_100] : memref<96xf32, #tpu.memory_space<smem>>
    %534 = vector.broadcast %533 : f32 to vector<8x1xf32>
    %535 = arith.mulf %407, %534 : vector<8x1xf32>
    %536 = arith.addf %532, %535 : vector<8x1xf32>
    %c44_101 = arith.constant 44 : index
    %537 = memref.load %arg5[%c44_101] : memref<96xf32, #tpu.memory_space<smem>>
    %538 = vector.broadcast %537 : f32 to vector<8x1xf32>
    %539 = arith.mulf %427, %538 : vector<8x1xf32>
    %540 = arith.addf %536, %539 : vector<8x1xf32>
    %c45_102 = arith.constant 45 : index
    %541 = memref.load %arg5[%c45_102] : memref<96xf32, #tpu.memory_space<smem>>
    %542 = vector.broadcast %541 : f32 to vector<8x1xf32>
    %543 = arith.mulf %447, %542 : vector<8x1xf32>
    %544 = arith.addf %540, %543 : vector<8x1xf32>
    %c46_103 = arith.constant 46 : index
    %545 = memref.load %arg5[%c46_103] : memref<96xf32, #tpu.memory_space<smem>>
    %546 = vector.broadcast %545 : f32 to vector<8x1xf32>
    %547 = arith.mulf %467, %546 : vector<8x1xf32>
    %548 = arith.addf %544, %547 : vector<8x1xf32>
    %c47_104 = arith.constant 47 : index
    %549 = memref.load %arg5[%c47_104] : memref<96xf32, #tpu.memory_space<smem>>
    %550 = vector.broadcast %549 : f32 to vector<8x1xf32>
    %551 = arith.mulf %487, %550 : vector<8x1xf32>
    %552 = arith.addf %548, %551 : vector<8x1xf32>
    %c5_105 = arith.constant 5 : index
    %553 = memref.load %arg6[%c5_105] : memref<12xf32, #tpu.memory_space<smem>>
    %554 = vector.broadcast %553 : f32 to vector<8x1xf32>
    %555 = arith.addf %552, %554 : vector<8x1xf32>
    %c48_106 = arith.constant 48 : index
    %556 = memref.load %arg5[%c48_106] : memref<96xf32, #tpu.memory_space<smem>>
    %557 = vector.broadcast %556 : f32 to vector<8x1xf32>
    %558 = arith.mulf %347, %557 : vector<8x1xf32>
    %c49_107 = arith.constant 49 : index
    %559 = memref.load %arg5[%c49_107] : memref<96xf32, #tpu.memory_space<smem>>
    %560 = vector.broadcast %559 : f32 to vector<8x1xf32>
    %561 = arith.mulf %367, %560 : vector<8x1xf32>
    %562 = arith.addf %558, %561 : vector<8x1xf32>
    %c50_108 = arith.constant 50 : index
    %563 = memref.load %arg5[%c50_108] : memref<96xf32, #tpu.memory_space<smem>>
    %564 = vector.broadcast %563 : f32 to vector<8x1xf32>
    %565 = arith.mulf %387, %564 : vector<8x1xf32>
    %566 = arith.addf %562, %565 : vector<8x1xf32>
    %c51_109 = arith.constant 51 : index
    %567 = memref.load %arg5[%c51_109] : memref<96xf32, #tpu.memory_space<smem>>
    %568 = vector.broadcast %567 : f32 to vector<8x1xf32>
    %569 = arith.mulf %407, %568 : vector<8x1xf32>
    %570 = arith.addf %566, %569 : vector<8x1xf32>
    %c52_110 = arith.constant 52 : index
    %571 = memref.load %arg5[%c52_110] : memref<96xf32, #tpu.memory_space<smem>>
    %572 = vector.broadcast %571 : f32 to vector<8x1xf32>
    %573 = arith.mulf %427, %572 : vector<8x1xf32>
    %574 = arith.addf %570, %573 : vector<8x1xf32>
    %c53_111 = arith.constant 53 : index
    %575 = memref.load %arg5[%c53_111] : memref<96xf32, #tpu.memory_space<smem>>
    %576 = vector.broadcast %575 : f32 to vector<8x1xf32>
    %577 = arith.mulf %447, %576 : vector<8x1xf32>
    %578 = arith.addf %574, %577 : vector<8x1xf32>
    %c54_112 = arith.constant 54 : index
    %579 = memref.load %arg5[%c54_112] : memref<96xf32, #tpu.memory_space<smem>>
    %580 = vector.broadcast %579 : f32 to vector<8x1xf32>
    %581 = arith.mulf %467, %580 : vector<8x1xf32>
    %582 = arith.addf %578, %581 : vector<8x1xf32>
    %c55_113 = arith.constant 55 : index
    %583 = memref.load %arg5[%c55_113] : memref<96xf32, #tpu.memory_space<smem>>
    %584 = vector.broadcast %583 : f32 to vector<8x1xf32>
    %585 = arith.mulf %487, %584 : vector<8x1xf32>
    %586 = arith.addf %582, %585 : vector<8x1xf32>
    %c6_114 = arith.constant 6 : index
    %587 = memref.load %arg6[%c6_114] : memref<12xf32, #tpu.memory_space<smem>>
    %588 = vector.broadcast %587 : f32 to vector<8x1xf32>
    %589 = arith.addf %586, %588 : vector<8x1xf32>
    %c56_115 = arith.constant 56 : index
    %590 = memref.load %arg5[%c56_115] : memref<96xf32, #tpu.memory_space<smem>>
    %591 = vector.broadcast %590 : f32 to vector<8x1xf32>
    %592 = arith.mulf %347, %591 : vector<8x1xf32>
    %c57_116 = arith.constant 57 : index
    %593 = memref.load %arg5[%c57_116] : memref<96xf32, #tpu.memory_space<smem>>
    %594 = vector.broadcast %593 : f32 to vector<8x1xf32>
    %595 = arith.mulf %367, %594 : vector<8x1xf32>
    %596 = arith.addf %592, %595 : vector<8x1xf32>
    %c58_117 = arith.constant 58 : index
    %597 = memref.load %arg5[%c58_117] : memref<96xf32, #tpu.memory_space<smem>>
    %598 = vector.broadcast %597 : f32 to vector<8x1xf32>
    %599 = arith.mulf %387, %598 : vector<8x1xf32>
    %600 = arith.addf %596, %599 : vector<8x1xf32>
    %c59_118 = arith.constant 59 : index
    %601 = memref.load %arg5[%c59_118] : memref<96xf32, #tpu.memory_space<smem>>
    %602 = vector.broadcast %601 : f32 to vector<8x1xf32>
    %603 = arith.mulf %407, %602 : vector<8x1xf32>
    %604 = arith.addf %600, %603 : vector<8x1xf32>
    %c60_119 = arith.constant 60 : index
    %605 = memref.load %arg5[%c60_119] : memref<96xf32, #tpu.memory_space<smem>>
    %606 = vector.broadcast %605 : f32 to vector<8x1xf32>
    %607 = arith.mulf %427, %606 : vector<8x1xf32>
    %608 = arith.addf %604, %607 : vector<8x1xf32>
    %c61_120 = arith.constant 61 : index
    %609 = memref.load %arg5[%c61_120] : memref<96xf32, #tpu.memory_space<smem>>
    %610 = vector.broadcast %609 : f32 to vector<8x1xf32>
    %611 = arith.mulf %447, %610 : vector<8x1xf32>
    %612 = arith.addf %608, %611 : vector<8x1xf32>
    %c62_121 = arith.constant 62 : index
    %613 = memref.load %arg5[%c62_121] : memref<96xf32, #tpu.memory_space<smem>>
    %614 = vector.broadcast %613 : f32 to vector<8x1xf32>
    %615 = arith.mulf %467, %614 : vector<8x1xf32>
    %616 = arith.addf %612, %615 : vector<8x1xf32>
    %c63_122 = arith.constant 63 : index
    %617 = memref.load %arg5[%c63_122] : memref<96xf32, #tpu.memory_space<smem>>
    %618 = vector.broadcast %617 : f32 to vector<8x1xf32>
    %619 = arith.mulf %487, %618 : vector<8x1xf32>
    %620 = arith.addf %616, %619 : vector<8x1xf32>
    %c7_123 = arith.constant 7 : index
    %621 = memref.load %arg6[%c7_123] : memref<12xf32, #tpu.memory_space<smem>>
    %622 = vector.broadcast %621 : f32 to vector<8x1xf32>
    %623 = arith.addf %620, %622 : vector<8x1xf32>
    %624 = vector.broadcast %521 : vector<8x1xf32> to vector<8x128xf32>
    %625 = arith.addf %209, %624 : vector<8x128xf32>
    %626 = arith.negf %625 : vector<8x128xf32>
    %627 = math.exp %626 : vector<8x128xf32>
    %cst_124 = arith.constant 1.000000e+00 : f32
    %628 = vector.broadcast %cst_124 : f32 to vector<8x128xf32>
    %629 = arith.addf %628, %627 : vector<8x128xf32>
    %630 = arith.divf %628, %629 : vector<8x128xf32>
    %631 = arith.mulf %8, %630 : vector<8x128xf32>
    %632 = arith.addf %4, %631 : vector<8x128xf32>
    %633 = vector.broadcast %555 : vector<8x1xf32> to vector<8x128xf32>
    %634 = arith.addf %243, %633 : vector<8x128xf32>
    %635 = arith.negf %634 : vector<8x128xf32>
    %636 = math.exp %635 : vector<8x128xf32>
    %cst_125 = arith.constant 1.000000e+00 : f32
    %637 = vector.broadcast %cst_125 : f32 to vector<8x128xf32>
    %638 = arith.addf %637, %636 : vector<8x128xf32>
    %639 = arith.divf %637, %638 : vector<8x128xf32>
    %640 = arith.mulf %9, %639 : vector<8x128xf32>
    %641 = arith.addf %5, %640 : vector<8x128xf32>
    %642 = vector.broadcast %589 : vector<8x1xf32> to vector<8x128xf32>
    %643 = arith.addf %277, %642 : vector<8x128xf32>
    %644 = arith.negf %643 : vector<8x128xf32>
    %645 = math.exp %644 : vector<8x128xf32>
    %cst_126 = arith.constant 1.000000e+00 : f32
    %646 = vector.broadcast %cst_126 : f32 to vector<8x128xf32>
    %647 = arith.addf %646, %645 : vector<8x128xf32>
    %648 = arith.divf %646, %647 : vector<8x128xf32>
    %649 = arith.mulf %10, %648 : vector<8x128xf32>
    %650 = arith.addf %6, %649 : vector<8x128xf32>
    %651 = vector.broadcast %623 : vector<8x1xf32> to vector<8x128xf32>
    %652 = arith.addf %311, %651 : vector<8x128xf32>
    %653 = arith.negf %652 : vector<8x128xf32>
    %654 = math.exp %653 : vector<8x128xf32>
    %cst_127 = arith.constant 1.000000e+00 : f32
    %655 = vector.broadcast %cst_127 : f32 to vector<8x128xf32>
    %656 = arith.addf %655, %654 : vector<8x128xf32>
    %657 = arith.divf %655, %656 : vector<8x128xf32>
    %658 = arith.mulf %11, %657 : vector<8x128xf32>
    %659 = arith.addf %7, %658 : vector<8x128xf32>
    %c64 = arith.constant 64 : index
    %660 = memref.load %arg3[%c64] : memref<96xf32, #tpu.memory_space<smem>>
    %661 = vector.broadcast %660 : f32 to vector<8x128xf32>
    %662 = arith.mulf %632, %661 : vector<8x128xf32>
    %c65 = arith.constant 65 : index
    %663 = memref.load %arg3[%c65] : memref<96xf32, #tpu.memory_space<smem>>
    %664 = vector.broadcast %663 : f32 to vector<8x128xf32>
    %665 = arith.mulf %641, %664 : vector<8x128xf32>
    %666 = arith.addf %662, %665 : vector<8x128xf32>
    %c66 = arith.constant 66 : index
    %667 = memref.load %arg3[%c66] : memref<96xf32, #tpu.memory_space<smem>>
    %668 = vector.broadcast %667 : f32 to vector<8x128xf32>
    %669 = arith.mulf %650, %668 : vector<8x128xf32>
    %670 = arith.addf %666, %669 : vector<8x128xf32>
    %c67 = arith.constant 67 : index
    %671 = memref.load %arg3[%c67] : memref<96xf32, #tpu.memory_space<smem>>
    %672 = vector.broadcast %671 : f32 to vector<8x128xf32>
    %673 = arith.mulf %659, %672 : vector<8x128xf32>
    %674 = arith.addf %670, %673 : vector<8x128xf32>
    %c16_128 = arith.constant 16 : index
    %675 = memref.load %arg4[%c16_128] : memref<24xf32, #tpu.memory_space<smem>>
    %676 = vector.broadcast %675 : f32 to vector<8x128xf32>
    %677 = arith.addf %674, %676 : vector<8x128xf32>
    %cst_129 = arith.constant 0.000000e+00 : f32
    %678 = vector.broadcast %cst_129 : f32 to vector<8x128xf32>
    %679 = arith.maximumf %677, %678 : vector<8x128xf32>
    %c68 = arith.constant 68 : index
    %680 = memref.load %arg3[%c68] : memref<96xf32, #tpu.memory_space<smem>>
    %681 = vector.broadcast %680 : f32 to vector<8x128xf32>
    %682 = arith.mulf %632, %681 : vector<8x128xf32>
    %c69 = arith.constant 69 : index
    %683 = memref.load %arg3[%c69] : memref<96xf32, #tpu.memory_space<smem>>
    %684 = vector.broadcast %683 : f32 to vector<8x128xf32>
    %685 = arith.mulf %641, %684 : vector<8x128xf32>
    %686 = arith.addf %682, %685 : vector<8x128xf32>
    %c70 = arith.constant 70 : index
    %687 = memref.load %arg3[%c70] : memref<96xf32, #tpu.memory_space<smem>>
    %688 = vector.broadcast %687 : f32 to vector<8x128xf32>
    %689 = arith.mulf %650, %688 : vector<8x128xf32>
    %690 = arith.addf %686, %689 : vector<8x128xf32>
    %c71 = arith.constant 71 : index
    %691 = memref.load %arg3[%c71] : memref<96xf32, #tpu.memory_space<smem>>
    %692 = vector.broadcast %691 : f32 to vector<8x128xf32>
    %693 = arith.mulf %659, %692 : vector<8x128xf32>
    %694 = arith.addf %690, %693 : vector<8x128xf32>
    %c17_130 = arith.constant 17 : index
    %695 = memref.load %arg4[%c17_130] : memref<24xf32, #tpu.memory_space<smem>>
    %696 = vector.broadcast %695 : f32 to vector<8x128xf32>
    %697 = arith.addf %694, %696 : vector<8x128xf32>
    %cst_131 = arith.constant 0.000000e+00 : f32
    %698 = vector.broadcast %cst_131 : f32 to vector<8x128xf32>
    %699 = arith.maximumf %697, %698 : vector<8x128xf32>
    %c72 = arith.constant 72 : index
    %700 = memref.load %arg3[%c72] : memref<96xf32, #tpu.memory_space<smem>>
    %701 = vector.broadcast %700 : f32 to vector<8x128xf32>
    %702 = arith.mulf %632, %701 : vector<8x128xf32>
    %c73 = arith.constant 73 : index
    %703 = memref.load %arg3[%c73] : memref<96xf32, #tpu.memory_space<smem>>
    %704 = vector.broadcast %703 : f32 to vector<8x128xf32>
    %705 = arith.mulf %641, %704 : vector<8x128xf32>
    %706 = arith.addf %702, %705 : vector<8x128xf32>
    %c74 = arith.constant 74 : index
    %707 = memref.load %arg3[%c74] : memref<96xf32, #tpu.memory_space<smem>>
    %708 = vector.broadcast %707 : f32 to vector<8x128xf32>
    %709 = arith.mulf %650, %708 : vector<8x128xf32>
    %710 = arith.addf %706, %709 : vector<8x128xf32>
    %c75 = arith.constant 75 : index
    %711 = memref.load %arg3[%c75] : memref<96xf32, #tpu.memory_space<smem>>
    %712 = vector.broadcast %711 : f32 to vector<8x128xf32>
    %713 = arith.mulf %659, %712 : vector<8x128xf32>
    %714 = arith.addf %710, %713 : vector<8x128xf32>
    %c18_132 = arith.constant 18 : index
    %715 = memref.load %arg4[%c18_132] : memref<24xf32, #tpu.memory_space<smem>>
    %716 = vector.broadcast %715 : f32 to vector<8x128xf32>
    %717 = arith.addf %714, %716 : vector<8x128xf32>
    %cst_133 = arith.constant 0.000000e+00 : f32
    %718 = vector.broadcast %cst_133 : f32 to vector<8x128xf32>
    %719 = arith.maximumf %717, %718 : vector<8x128xf32>
    %c76 = arith.constant 76 : index
    %720 = memref.load %arg3[%c76] : memref<96xf32, #tpu.memory_space<smem>>
    %721 = vector.broadcast %720 : f32 to vector<8x128xf32>
    %722 = arith.mulf %632, %721 : vector<8x128xf32>
    %c77 = arith.constant 77 : index
    %723 = memref.load %arg3[%c77] : memref<96xf32, #tpu.memory_space<smem>>
    %724 = vector.broadcast %723 : f32 to vector<8x128xf32>
    %725 = arith.mulf %641, %724 : vector<8x128xf32>
    %726 = arith.addf %722, %725 : vector<8x128xf32>
    %c78 = arith.constant 78 : index
    %727 = memref.load %arg3[%c78] : memref<96xf32, #tpu.memory_space<smem>>
    %728 = vector.broadcast %727 : f32 to vector<8x128xf32>
    %729 = arith.mulf %650, %728 : vector<8x128xf32>
    %730 = arith.addf %726, %729 : vector<8x128xf32>
    %c79 = arith.constant 79 : index
    %731 = memref.load %arg3[%c79] : memref<96xf32, #tpu.memory_space<smem>>
    %732 = vector.broadcast %731 : f32 to vector<8x128xf32>
    %733 = arith.mulf %659, %732 : vector<8x128xf32>
    %734 = arith.addf %730, %733 : vector<8x128xf32>
    %c19_134 = arith.constant 19 : index
    %735 = memref.load %arg4[%c19_134] : memref<24xf32, #tpu.memory_space<smem>>
    %736 = vector.broadcast %735 : f32 to vector<8x128xf32>
    %737 = arith.addf %734, %736 : vector<8x128xf32>
    %cst_135 = arith.constant 0.000000e+00 : f32
    %738 = vector.broadcast %cst_135 : f32 to vector<8x128xf32>
    %739 = arith.maximumf %737, %738 : vector<8x128xf32>
    %c80 = arith.constant 80 : index
    %740 = memref.load %arg3[%c80] : memref<96xf32, #tpu.memory_space<smem>>
    %741 = vector.broadcast %740 : f32 to vector<8x128xf32>
    %742 = arith.mulf %632, %741 : vector<8x128xf32>
    %c81 = arith.constant 81 : index
    %743 = memref.load %arg3[%c81] : memref<96xf32, #tpu.memory_space<smem>>
    %744 = vector.broadcast %743 : f32 to vector<8x128xf32>
    %745 = arith.mulf %641, %744 : vector<8x128xf32>
    %746 = arith.addf %742, %745 : vector<8x128xf32>
    %c82 = arith.constant 82 : index
    %747 = memref.load %arg3[%c82] : memref<96xf32, #tpu.memory_space<smem>>
    %748 = vector.broadcast %747 : f32 to vector<8x128xf32>
    %749 = arith.mulf %650, %748 : vector<8x128xf32>
    %750 = arith.addf %746, %749 : vector<8x128xf32>
    %c83 = arith.constant 83 : index
    %751 = memref.load %arg3[%c83] : memref<96xf32, #tpu.memory_space<smem>>
    %752 = vector.broadcast %751 : f32 to vector<8x128xf32>
    %753 = arith.mulf %659, %752 : vector<8x128xf32>
    %754 = arith.addf %750, %753 : vector<8x128xf32>
    %c20_136 = arith.constant 20 : index
    %755 = memref.load %arg4[%c20_136] : memref<24xf32, #tpu.memory_space<smem>>
    %756 = vector.broadcast %755 : f32 to vector<8x128xf32>
    %757 = arith.addf %754, %756 : vector<8x128xf32>
    %cst_137 = arith.constant 0.000000e+00 : f32
    %758 = vector.broadcast %cst_137 : f32 to vector<8x128xf32>
    %759 = arith.maximumf %757, %758 : vector<8x128xf32>
    %c84 = arith.constant 84 : index
    %760 = memref.load %arg3[%c84] : memref<96xf32, #tpu.memory_space<smem>>
    %761 = vector.broadcast %760 : f32 to vector<8x128xf32>
    %762 = arith.mulf %632, %761 : vector<8x128xf32>
    %c85 = arith.constant 85 : index
    %763 = memref.load %arg3[%c85] : memref<96xf32, #tpu.memory_space<smem>>
    %764 = vector.broadcast %763 : f32 to vector<8x128xf32>
    %765 = arith.mulf %641, %764 : vector<8x128xf32>
    %766 = arith.addf %762, %765 : vector<8x128xf32>
    %c86 = arith.constant 86 : index
    %767 = memref.load %arg3[%c86] : memref<96xf32, #tpu.memory_space<smem>>
    %768 = vector.broadcast %767 : f32 to vector<8x128xf32>
    %769 = arith.mulf %650, %768 : vector<8x128xf32>
    %770 = arith.addf %766, %769 : vector<8x128xf32>
    %c87 = arith.constant 87 : index
    %771 = memref.load %arg3[%c87] : memref<96xf32, #tpu.memory_space<smem>>
    %772 = vector.broadcast %771 : f32 to vector<8x128xf32>
    %773 = arith.mulf %659, %772 : vector<8x128xf32>
    %774 = arith.addf %770, %773 : vector<8x128xf32>
    %c21_138 = arith.constant 21 : index
    %775 = memref.load %arg4[%c21_138] : memref<24xf32, #tpu.memory_space<smem>>
    %776 = vector.broadcast %775 : f32 to vector<8x128xf32>
    %777 = arith.addf %774, %776 : vector<8x128xf32>
    %cst_139 = arith.constant 0.000000e+00 : f32
    %778 = vector.broadcast %cst_139 : f32 to vector<8x128xf32>
    %779 = arith.maximumf %777, %778 : vector<8x128xf32>
    %c88 = arith.constant 88 : index
    %780 = memref.load %arg3[%c88] : memref<96xf32, #tpu.memory_space<smem>>
    %781 = vector.broadcast %780 : f32 to vector<8x128xf32>
    %782 = arith.mulf %632, %781 : vector<8x128xf32>
    %c89 = arith.constant 89 : index
    %783 = memref.load %arg3[%c89] : memref<96xf32, #tpu.memory_space<smem>>
    %784 = vector.broadcast %783 : f32 to vector<8x128xf32>
    %785 = arith.mulf %641, %784 : vector<8x128xf32>
    %786 = arith.addf %782, %785 : vector<8x128xf32>
    %c90 = arith.constant 90 : index
    %787 = memref.load %arg3[%c90] : memref<96xf32, #tpu.memory_space<smem>>
    %788 = vector.broadcast %787 : f32 to vector<8x128xf32>
    %789 = arith.mulf %650, %788 : vector<8x128xf32>
    %790 = arith.addf %786, %789 : vector<8x128xf32>
    %c91 = arith.constant 91 : index
    %791 = memref.load %arg3[%c91] : memref<96xf32, #tpu.memory_space<smem>>
    %792 = vector.broadcast %791 : f32 to vector<8x128xf32>
    %793 = arith.mulf %659, %792 : vector<8x128xf32>
    %794 = arith.addf %790, %793 : vector<8x128xf32>
    %c22_140 = arith.constant 22 : index
    %795 = memref.load %arg4[%c22_140] : memref<24xf32, #tpu.memory_space<smem>>
    %796 = vector.broadcast %795 : f32 to vector<8x128xf32>
    %797 = arith.addf %794, %796 : vector<8x128xf32>
    %cst_141 = arith.constant 0.000000e+00 : f32
    %798 = vector.broadcast %cst_141 : f32 to vector<8x128xf32>
    %799 = arith.maximumf %797, %798 : vector<8x128xf32>
    %c92 = arith.constant 92 : index
    %800 = memref.load %arg3[%c92] : memref<96xf32, #tpu.memory_space<smem>>
    %801 = vector.broadcast %800 : f32 to vector<8x128xf32>
    %802 = arith.mulf %632, %801 : vector<8x128xf32>
    %c93 = arith.constant 93 : index
    %803 = memref.load %arg3[%c93] : memref<96xf32, #tpu.memory_space<smem>>
    %804 = vector.broadcast %803 : f32 to vector<8x128xf32>
    %805 = arith.mulf %641, %804 : vector<8x128xf32>
    %806 = arith.addf %802, %805 : vector<8x128xf32>
    %c94 = arith.constant 94 : index
    %807 = memref.load %arg3[%c94] : memref<96xf32, #tpu.memory_space<smem>>
    %808 = vector.broadcast %807 : f32 to vector<8x128xf32>
    %809 = arith.mulf %650, %808 : vector<8x128xf32>
    %810 = arith.addf %806, %809 : vector<8x128xf32>
    %c95 = arith.constant 95 : index
    %811 = memref.load %arg3[%c95] : memref<96xf32, #tpu.memory_space<smem>>
    %812 = vector.broadcast %811 : f32 to vector<8x128xf32>
    %813 = arith.mulf %659, %812 : vector<8x128xf32>
    %814 = arith.addf %810, %813 : vector<8x128xf32>
    %c23_142 = arith.constant 23 : index
    %815 = memref.load %arg4[%c23_142] : memref<24xf32, #tpu.memory_space<smem>>
    %816 = vector.broadcast %815 : f32 to vector<8x128xf32>
    %817 = arith.addf %814, %816 : vector<8x128xf32>
    %cst_143 = arith.constant 0.000000e+00 : f32
    %818 = vector.broadcast %cst_143 : f32 to vector<8x128xf32>
    %819 = arith.maximumf %817, %818 : vector<8x128xf32>
    %c64_144 = arith.constant 64 : index
    %820 = memref.load %arg5[%c64_144] : memref<96xf32, #tpu.memory_space<smem>>
    %821 = vector.broadcast %820 : f32 to vector<8x128xf32>
    %822 = arith.mulf %679, %821 : vector<8x128xf32>
    %c65_145 = arith.constant 65 : index
    %823 = memref.load %arg5[%c65_145] : memref<96xf32, #tpu.memory_space<smem>>
    %824 = vector.broadcast %823 : f32 to vector<8x128xf32>
    %825 = arith.mulf %699, %824 : vector<8x128xf32>
    %826 = arith.addf %822, %825 : vector<8x128xf32>
    %c66_146 = arith.constant 66 : index
    %827 = memref.load %arg5[%c66_146] : memref<96xf32, #tpu.memory_space<smem>>
    %828 = vector.broadcast %827 : f32 to vector<8x128xf32>
    %829 = arith.mulf %719, %828 : vector<8x128xf32>
    %830 = arith.addf %826, %829 : vector<8x128xf32>
    %c67_147 = arith.constant 67 : index
    %831 = memref.load %arg5[%c67_147] : memref<96xf32, #tpu.memory_space<smem>>
    %832 = vector.broadcast %831 : f32 to vector<8x128xf32>
    %833 = arith.mulf %739, %832 : vector<8x128xf32>
    %834 = arith.addf %830, %833 : vector<8x128xf32>
    %c68_148 = arith.constant 68 : index
    %835 = memref.load %arg5[%c68_148] : memref<96xf32, #tpu.memory_space<smem>>
    %836 = vector.broadcast %835 : f32 to vector<8x128xf32>
    %837 = arith.mulf %759, %836 : vector<8x128xf32>
    %838 = arith.addf %834, %837 : vector<8x128xf32>
    %c69_149 = arith.constant 69 : index
    %839 = memref.load %arg5[%c69_149] : memref<96xf32, #tpu.memory_space<smem>>
    %840 = vector.broadcast %839 : f32 to vector<8x128xf32>
    %841 = arith.mulf %779, %840 : vector<8x128xf32>
    %842 = arith.addf %838, %841 : vector<8x128xf32>
    %c70_150 = arith.constant 70 : index
    %843 = memref.load %arg5[%c70_150] : memref<96xf32, #tpu.memory_space<smem>>
    %844 = vector.broadcast %843 : f32 to vector<8x128xf32>
    %845 = arith.mulf %799, %844 : vector<8x128xf32>
    %846 = arith.addf %842, %845 : vector<8x128xf32>
    %c71_151 = arith.constant 71 : index
    %847 = memref.load %arg5[%c71_151] : memref<96xf32, #tpu.memory_space<smem>>
    %848 = vector.broadcast %847 : f32 to vector<8x128xf32>
    %849 = arith.mulf %819, %848 : vector<8x128xf32>
    %850 = arith.addf %846, %849 : vector<8x128xf32>
    %c8_152 = arith.constant 8 : index
    %851 = memref.load %arg6[%c8_152] : memref<12xf32, #tpu.memory_space<smem>>
    %852 = vector.broadcast %851 : f32 to vector<8x128xf32>
    %853 = arith.addf %850, %852 : vector<8x128xf32>
    %c72_153 = arith.constant 72 : index
    %854 = memref.load %arg5[%c72_153] : memref<96xf32, #tpu.memory_space<smem>>
    %855 = vector.broadcast %854 : f32 to vector<8x128xf32>
    %856 = arith.mulf %679, %855 : vector<8x128xf32>
    %c73_154 = arith.constant 73 : index
    %857 = memref.load %arg5[%c73_154] : memref<96xf32, #tpu.memory_space<smem>>
    %858 = vector.broadcast %857 : f32 to vector<8x128xf32>
    %859 = arith.mulf %699, %858 : vector<8x128xf32>
    %860 = arith.addf %856, %859 : vector<8x128xf32>
    %c74_155 = arith.constant 74 : index
    %861 = memref.load %arg5[%c74_155] : memref<96xf32, #tpu.memory_space<smem>>
    %862 = vector.broadcast %861 : f32 to vector<8x128xf32>
    %863 = arith.mulf %719, %862 : vector<8x128xf32>
    %864 = arith.addf %860, %863 : vector<8x128xf32>
    %c75_156 = arith.constant 75 : index
    %865 = memref.load %arg5[%c75_156] : memref<96xf32, #tpu.memory_space<smem>>
    %866 = vector.broadcast %865 : f32 to vector<8x128xf32>
    %867 = arith.mulf %739, %866 : vector<8x128xf32>
    %868 = arith.addf %864, %867 : vector<8x128xf32>
    %c76_157 = arith.constant 76 : index
    %869 = memref.load %arg5[%c76_157] : memref<96xf32, #tpu.memory_space<smem>>
    %870 = vector.broadcast %869 : f32 to vector<8x128xf32>
    %871 = arith.mulf %759, %870 : vector<8x128xf32>
    %872 = arith.addf %868, %871 : vector<8x128xf32>
    %c77_158 = arith.constant 77 : index
    %873 = memref.load %arg5[%c77_158] : memref<96xf32, #tpu.memory_space<smem>>
    %874 = vector.broadcast %873 : f32 to vector<8x128xf32>
    %875 = arith.mulf %779, %874 : vector<8x128xf32>
    %876 = arith.addf %872, %875 : vector<8x128xf32>
    %c78_159 = arith.constant 78 : index
    %877 = memref.load %arg5[%c78_159] : memref<96xf32, #tpu.memory_space<smem>>
    %878 = vector.broadcast %877 : f32 to vector<8x128xf32>
    %879 = arith.mulf %799, %878 : vector<8x128xf32>
    %880 = arith.addf %876, %879 : vector<8x128xf32>
    %c79_160 = arith.constant 79 : index
    %881 = memref.load %arg5[%c79_160] : memref<96xf32, #tpu.memory_space<smem>>
    %882 = vector.broadcast %881 : f32 to vector<8x128xf32>
    %883 = arith.mulf %819, %882 : vector<8x128xf32>
    %884 = arith.addf %880, %883 : vector<8x128xf32>
    %c9_161 = arith.constant 9 : index
    %885 = memref.load %arg6[%c9_161] : memref<12xf32, #tpu.memory_space<smem>>
    %886 = vector.broadcast %885 : f32 to vector<8x128xf32>
    %887 = arith.addf %884, %886 : vector<8x128xf32>
    %c80_162 = arith.constant 80 : index
    %888 = memref.load %arg5[%c80_162] : memref<96xf32, #tpu.memory_space<smem>>
    %889 = vector.broadcast %888 : f32 to vector<8x128xf32>
    %890 = arith.mulf %679, %889 : vector<8x128xf32>
    %c81_163 = arith.constant 81 : index
    %891 = memref.load %arg5[%c81_163] : memref<96xf32, #tpu.memory_space<smem>>
    %892 = vector.broadcast %891 : f32 to vector<8x128xf32>
    %893 = arith.mulf %699, %892 : vector<8x128xf32>
    %894 = arith.addf %890, %893 : vector<8x128xf32>
    %c82_164 = arith.constant 82 : index
    %895 = memref.load %arg5[%c82_164] : memref<96xf32, #tpu.memory_space<smem>>
    %896 = vector.broadcast %895 : f32 to vector<8x128xf32>
    %897 = arith.mulf %719, %896 : vector<8x128xf32>
    %898 = arith.addf %894, %897 : vector<8x128xf32>
    %c83_165 = arith.constant 83 : index
    %899 = memref.load %arg5[%c83_165] : memref<96xf32, #tpu.memory_space<smem>>
    %900 = vector.broadcast %899 : f32 to vector<8x128xf32>
    %901 = arith.mulf %739, %900 : vector<8x128xf32>
    %902 = arith.addf %898, %901 : vector<8x128xf32>
    %c84_166 = arith.constant 84 : index
    %903 = memref.load %arg5[%c84_166] : memref<96xf32, #tpu.memory_space<smem>>
    %904 = vector.broadcast %903 : f32 to vector<8x128xf32>
    %905 = arith.mulf %759, %904 : vector<8x128xf32>
    %906 = arith.addf %902, %905 : vector<8x128xf32>
    %c85_167 = arith.constant 85 : index
    %907 = memref.load %arg5[%c85_167] : memref<96xf32, #tpu.memory_space<smem>>
    %908 = vector.broadcast %907 : f32 to vector<8x128xf32>
    %909 = arith.mulf %779, %908 : vector<8x128xf32>
    %910 = arith.addf %906, %909 : vector<8x128xf32>
    %c86_168 = arith.constant 86 : index
    %911 = memref.load %arg5[%c86_168] : memref<96xf32, #tpu.memory_space<smem>>
    %912 = vector.broadcast %911 : f32 to vector<8x128xf32>
    %913 = arith.mulf %799, %912 : vector<8x128xf32>
    %914 = arith.addf %910, %913 : vector<8x128xf32>
    %c87_169 = arith.constant 87 : index
    %915 = memref.load %arg5[%c87_169] : memref<96xf32, #tpu.memory_space<smem>>
    %916 = vector.broadcast %915 : f32 to vector<8x128xf32>
    %917 = arith.mulf %819, %916 : vector<8x128xf32>
    %918 = arith.addf %914, %917 : vector<8x128xf32>
    %c10_170 = arith.constant 10 : index
    %919 = memref.load %arg6[%c10_170] : memref<12xf32, #tpu.memory_space<smem>>
    %920 = vector.broadcast %919 : f32 to vector<8x128xf32>
    %921 = arith.addf %918, %920 : vector<8x128xf32>
    %c88_171 = arith.constant 88 : index
    %922 = memref.load %arg5[%c88_171] : memref<96xf32, #tpu.memory_space<smem>>
    %923 = vector.broadcast %922 : f32 to vector<8x128xf32>
    %924 = arith.mulf %679, %923 : vector<8x128xf32>
    %c89_172 = arith.constant 89 : index
    %925 = memref.load %arg5[%c89_172] : memref<96xf32, #tpu.memory_space<smem>>
    %926 = vector.broadcast %925 : f32 to vector<8x128xf32>
    %927 = arith.mulf %699, %926 : vector<8x128xf32>
    %928 = arith.addf %924, %927 : vector<8x128xf32>
    %c90_173 = arith.constant 90 : index
    %929 = memref.load %arg5[%c90_173] : memref<96xf32, #tpu.memory_space<smem>>
    %930 = vector.broadcast %929 : f32 to vector<8x128xf32>
    %931 = arith.mulf %719, %930 : vector<8x128xf32>
    %932 = arith.addf %928, %931 : vector<8x128xf32>
    %c91_174 = arith.constant 91 : index
    %933 = memref.load %arg5[%c91_174] : memref<96xf32, #tpu.memory_space<smem>>
    %934 = vector.broadcast %933 : f32 to vector<8x128xf32>
    %935 = arith.mulf %739, %934 : vector<8x128xf32>
    %936 = arith.addf %932, %935 : vector<8x128xf32>
    %c92_175 = arith.constant 92 : index
    %937 = memref.load %arg5[%c92_175] : memref<96xf32, #tpu.memory_space<smem>>
    %938 = vector.broadcast %937 : f32 to vector<8x128xf32>
    %939 = arith.mulf %759, %938 : vector<8x128xf32>
    %940 = arith.addf %936, %939 : vector<8x128xf32>
    %c93_176 = arith.constant 93 : index
    %941 = memref.load %arg5[%c93_176] : memref<96xf32, #tpu.memory_space<smem>>
    %942 = vector.broadcast %941 : f32 to vector<8x128xf32>
    %943 = arith.mulf %779, %942 : vector<8x128xf32>
    %944 = arith.addf %940, %943 : vector<8x128xf32>
    %c94_177 = arith.constant 94 : index
    %945 = memref.load %arg5[%c94_177] : memref<96xf32, #tpu.memory_space<smem>>
    %946 = vector.broadcast %945 : f32 to vector<8x128xf32>
    %947 = arith.mulf %799, %946 : vector<8x128xf32>
    %948 = arith.addf %944, %947 : vector<8x128xf32>
    %c95_178 = arith.constant 95 : index
    %949 = memref.load %arg5[%c95_178] : memref<96xf32, #tpu.memory_space<smem>>
    %950 = vector.broadcast %949 : f32 to vector<8x128xf32>
    %951 = arith.mulf %819, %950 : vector<8x128xf32>
    %952 = arith.addf %948, %951 : vector<8x128xf32>
    %c11_179 = arith.constant 11 : index
    %953 = memref.load %arg6[%c11_179] : memref<12xf32, #tpu.memory_space<smem>>
    %954 = vector.broadcast %953 : f32 to vector<8x128xf32>
    %955 = arith.addf %952, %954 : vector<8x128xf32>
    %cst_180 = arith.constant dense<0.000000e+00> : vector<8xf32>
    %956 = vector.multi_reduction <add>, %632, %cst_180 [1] : vector<8x128xf32> to vector<8xf32>
    %957 = vector.shape_cast %956 : vector<8xf32> to vector<8x1xf32>
    %cst_181 = arith.constant 1.280000e+02 : f32
    %958 = vector.broadcast %cst_181 : f32 to vector<8x1xf32>
    %959 = arith.divf %957, %958 : vector<8x1xf32>
    %cst_182 = arith.constant dense<0.000000e+00> : vector<8xf32>
    %960 = vector.multi_reduction <add>, %641, %cst_182 [1] : vector<8x128xf32> to vector<8xf32>
    %961 = vector.shape_cast %960 : vector<8xf32> to vector<8x1xf32>
    %cst_183 = arith.constant 1.280000e+02 : f32
    %962 = vector.broadcast %cst_183 : f32 to vector<8x1xf32>
    %963 = arith.divf %961, %962 : vector<8x1xf32>
    %cst_184 = arith.constant dense<0.000000e+00> : vector<8xf32>
    %964 = vector.multi_reduction <add>, %650, %cst_184 [1] : vector<8x128xf32> to vector<8xf32>
    %965 = vector.shape_cast %964 : vector<8xf32> to vector<8x1xf32>
    %cst_185 = arith.constant 1.280000e+02 : f32
    %966 = vector.broadcast %cst_185 : f32 to vector<8x1xf32>
    %967 = arith.divf %965, %966 : vector<8x1xf32>
    %cst_186 = arith.constant dense<0.000000e+00> : vector<8xf32>
    %968 = vector.multi_reduction <add>, %659, %cst_186 [1] : vector<8x128xf32> to vector<8xf32>
    %969 = vector.shape_cast %968 : vector<8xf32> to vector<8x1xf32>
    %cst_187 = arith.constant 1.280000e+02 : f32
    %970 = vector.broadcast %cst_187 : f32 to vector<8x1xf32>
    %971 = arith.divf %969, %970 : vector<8x1xf32>
    %c32_188 = arith.constant 32 : index
    %972 = memref.load %arg3[%c32_188] : memref<96xf32, #tpu.memory_space<smem>>
    %973 = vector.broadcast %972 : f32 to vector<8x1xf32>
    %974 = arith.mulf %959, %973 : vector<8x1xf32>
    %c33_189 = arith.constant 33 : index
    %975 = memref.load %arg3[%c33_189] : memref<96xf32, #tpu.memory_space<smem>>
    %976 = vector.broadcast %975 : f32 to vector<8x1xf32>
    %977 = arith.mulf %963, %976 : vector<8x1xf32>
    %978 = arith.addf %974, %977 : vector<8x1xf32>
    %c34_190 = arith.constant 34 : index
    %979 = memref.load %arg3[%c34_190] : memref<96xf32, #tpu.memory_space<smem>>
    %980 = vector.broadcast %979 : f32 to vector<8x1xf32>
    %981 = arith.mulf %967, %980 : vector<8x1xf32>
    %982 = arith.addf %978, %981 : vector<8x1xf32>
    %c35_191 = arith.constant 35 : index
    %983 = memref.load %arg3[%c35_191] : memref<96xf32, #tpu.memory_space<smem>>
    %984 = vector.broadcast %983 : f32 to vector<8x1xf32>
    %985 = arith.mulf %971, %984 : vector<8x1xf32>
    %986 = arith.addf %982, %985 : vector<8x1xf32>
    %c8_192 = arith.constant 8 : index
    %987 = memref.load %arg4[%c8_192] : memref<24xf32, #tpu.memory_space<smem>>
    %988 = vector.broadcast %987 : f32 to vector<8x1xf32>
    %989 = arith.addf %986, %988 : vector<8x1xf32>
    %cst_193 = arith.constant 0.000000e+00 : f32
    %990 = vector.broadcast %cst_193 : f32 to vector<8x1xf32>
    %991 = arith.maximumf %989, %990 : vector<8x1xf32>
    %c36_194 = arith.constant 36 : index
    %992 = memref.load %arg3[%c36_194] : memref<96xf32, #tpu.memory_space<smem>>
    %993 = vector.broadcast %992 : f32 to vector<8x1xf32>
    %994 = arith.mulf %959, %993 : vector<8x1xf32>
    %c37_195 = arith.constant 37 : index
    %995 = memref.load %arg3[%c37_195] : memref<96xf32, #tpu.memory_space<smem>>
    %996 = vector.broadcast %995 : f32 to vector<8x1xf32>
    %997 = arith.mulf %963, %996 : vector<8x1xf32>
    %998 = arith.addf %994, %997 : vector<8x1xf32>
    %c38_196 = arith.constant 38 : index
    %999 = memref.load %arg3[%c38_196] : memref<96xf32, #tpu.memory_space<smem>>
    %1000 = vector.broadcast %999 : f32 to vector<8x1xf32>
    %1001 = arith.mulf %967, %1000 : vector<8x1xf32>
    %1002 = arith.addf %998, %1001 : vector<8x1xf32>
    %c39_197 = arith.constant 39 : index
    %1003 = memref.load %arg3[%c39_197] : memref<96xf32, #tpu.memory_space<smem>>
    %1004 = vector.broadcast %1003 : f32 to vector<8x1xf32>
    %1005 = arith.mulf %971, %1004 : vector<8x1xf32>
    %1006 = arith.addf %1002, %1005 : vector<8x1xf32>
    %c9_198 = arith.constant 9 : index
    %1007 = memref.load %arg4[%c9_198] : memref<24xf32, #tpu.memory_space<smem>>
    %1008 = vector.broadcast %1007 : f32 to vector<8x1xf32>
    %1009 = arith.addf %1006, %1008 : vector<8x1xf32>
    %cst_199 = arith.constant 0.000000e+00 : f32
    %1010 = vector.broadcast %cst_199 : f32 to vector<8x1xf32>
    %1011 = arith.maximumf %1009, %1010 : vector<8x1xf32>
    %c40_200 = arith.constant 40 : index
    %1012 = memref.load %arg3[%c40_200] : memref<96xf32, #tpu.memory_space<smem>>
    %1013 = vector.broadcast %1012 : f32 to vector<8x1xf32>
    %1014 = arith.mulf %959, %1013 : vector<8x1xf32>
    %c41_201 = arith.constant 41 : index
    %1015 = memref.load %arg3[%c41_201] : memref<96xf32, #tpu.memory_space<smem>>
    %1016 = vector.broadcast %1015 : f32 to vector<8x1xf32>
    %1017 = arith.mulf %963, %1016 : vector<8x1xf32>
    %1018 = arith.addf %1014, %1017 : vector<8x1xf32>
    %c42_202 = arith.constant 42 : index
    %1019 = memref.load %arg3[%c42_202] : memref<96xf32, #tpu.memory_space<smem>>
    %1020 = vector.broadcast %1019 : f32 to vector<8x1xf32>
    %1021 = arith.mulf %967, %1020 : vector<8x1xf32>
    %1022 = arith.addf %1018, %1021 : vector<8x1xf32>
    %c43_203 = arith.constant 43 : index
    %1023 = memref.load %arg3[%c43_203] : memref<96xf32, #tpu.memory_space<smem>>
    %1024 = vector.broadcast %1023 : f32 to vector<8x1xf32>
    %1025 = arith.mulf %971, %1024 : vector<8x1xf32>
    %1026 = arith.addf %1022, %1025 : vector<8x1xf32>
    %c10_204 = arith.constant 10 : index
    %1027 = memref.load %arg4[%c10_204] : memref<24xf32, #tpu.memory_space<smem>>
    %1028 = vector.broadcast %1027 : f32 to vector<8x1xf32>
    %1029 = arith.addf %1026, %1028 : vector<8x1xf32>
    %cst_205 = arith.constant 0.000000e+00 : f32
    %1030 = vector.broadcast %cst_205 : f32 to vector<8x1xf32>
    %1031 = arith.maximumf %1029, %1030 : vector<8x1xf32>
    %c44_206 = arith.constant 44 : index
    %1032 = memref.load %arg3[%c44_206] : memref<96xf32, #tpu.memory_space<smem>>
    %1033 = vector.broadcast %1032 : f32 to vector<8x1xf32>
    %1034 = arith.mulf %959, %1033 : vector<8x1xf32>
    %c45_207 = arith.constant 45 : index
    %1035 = memref.load %arg3[%c45_207] : memref<96xf32, #tpu.memory_space<smem>>
    %1036 = vector.broadcast %1035 : f32 to vector<8x1xf32>
    %1037 = arith.mulf %963, %1036 : vector<8x1xf32>
    %1038 = arith.addf %1034, %1037 : vector<8x1xf32>
    %c46_208 = arith.constant 46 : index
    %1039 = memref.load %arg3[%c46_208] : memref<96xf32, #tpu.memory_space<smem>>
    %1040 = vector.broadcast %1039 : f32 to vector<8x1xf32>
    %1041 = arith.mulf %967, %1040 : vector<8x1xf32>
    %1042 = arith.addf %1038, %1041 : vector<8x1xf32>
    %c47_209 = arith.constant 47 : index
    %1043 = memref.load %arg3[%c47_209] : memref<96xf32, #tpu.memory_space<smem>>
    %1044 = vector.broadcast %1043 : f32 to vector<8x1xf32>
    %1045 = arith.mulf %971, %1044 : vector<8x1xf32>
    %1046 = arith.addf %1042, %1045 : vector<8x1xf32>
    %c11_210 = arith.constant 11 : index
    %1047 = memref.load %arg4[%c11_210] : memref<24xf32, #tpu.memory_space<smem>>
    %1048 = vector.broadcast %1047 : f32 to vector<8x1xf32>
    %1049 = arith.addf %1046, %1048 : vector<8x1xf32>
    %cst_211 = arith.constant 0.000000e+00 : f32
    %1050 = vector.broadcast %cst_211 : f32 to vector<8x1xf32>
    %1051 = arith.maximumf %1049, %1050 : vector<8x1xf32>
    %c48_212 = arith.constant 48 : index
    %1052 = memref.load %arg3[%c48_212] : memref<96xf32, #tpu.memory_space<smem>>
    %1053 = vector.broadcast %1052 : f32 to vector<8x1xf32>
    %1054 = arith.mulf %959, %1053 : vector<8x1xf32>
    %c49_213 = arith.constant 49 : index
    %1055 = memref.load %arg3[%c49_213] : memref<96xf32, #tpu.memory_space<smem>>
    %1056 = vector.broadcast %1055 : f32 to vector<8x1xf32>
    %1057 = arith.mulf %963, %1056 : vector<8x1xf32>
    %1058 = arith.addf %1054, %1057 : vector<8x1xf32>
    %c50_214 = arith.constant 50 : index
    %1059 = memref.load %arg3[%c50_214] : memref<96xf32, #tpu.memory_space<smem>>
    %1060 = vector.broadcast %1059 : f32 to vector<8x1xf32>
    %1061 = arith.mulf %967, %1060 : vector<8x1xf32>
    %1062 = arith.addf %1058, %1061 : vector<8x1xf32>
    %c51_215 = arith.constant 51 : index
    %1063 = memref.load %arg3[%c51_215] : memref<96xf32, #tpu.memory_space<smem>>
    %1064 = vector.broadcast %1063 : f32 to vector<8x1xf32>
    %1065 = arith.mulf %971, %1064 : vector<8x1xf32>
    %1066 = arith.addf %1062, %1065 : vector<8x1xf32>
    %c12_216 = arith.constant 12 : index
    %1067 = memref.load %arg4[%c12_216] : memref<24xf32, #tpu.memory_space<smem>>
    %1068 = vector.broadcast %1067 : f32 to vector<8x1xf32>
    %1069 = arith.addf %1066, %1068 : vector<8x1xf32>
    %cst_217 = arith.constant 0.000000e+00 : f32
    %1070 = vector.broadcast %cst_217 : f32 to vector<8x1xf32>
    %1071 = arith.maximumf %1069, %1070 : vector<8x1xf32>
    %c52_218 = arith.constant 52 : index
    %1072 = memref.load %arg3[%c52_218] : memref<96xf32, #tpu.memory_space<smem>>
    %1073 = vector.broadcast %1072 : f32 to vector<8x1xf32>
    %1074 = arith.mulf %959, %1073 : vector<8x1xf32>
    %c53_219 = arith.constant 53 : index
    %1075 = memref.load %arg3[%c53_219] : memref<96xf32, #tpu.memory_space<smem>>
    %1076 = vector.broadcast %1075 : f32 to vector<8x1xf32>
    %1077 = arith.mulf %963, %1076 : vector<8x1xf32>
    %1078 = arith.addf %1074, %1077 : vector<8x1xf32>
    %c54_220 = arith.constant 54 : index
    %1079 = memref.load %arg3[%c54_220] : memref<96xf32, #tpu.memory_space<smem>>
    %1080 = vector.broadcast %1079 : f32 to vector<8x1xf32>
    %1081 = arith.mulf %967, %1080 : vector<8x1xf32>
    %1082 = arith.addf %1078, %1081 : vector<8x1xf32>
    %c55_221 = arith.constant 55 : index
    %1083 = memref.load %arg3[%c55_221] : memref<96xf32, #tpu.memory_space<smem>>
    %1084 = vector.broadcast %1083 : f32 to vector<8x1xf32>
    %1085 = arith.mulf %971, %1084 : vector<8x1xf32>
    %1086 = arith.addf %1082, %1085 : vector<8x1xf32>
    %c13_222 = arith.constant 13 : index
    %1087 = memref.load %arg4[%c13_222] : memref<24xf32, #tpu.memory_space<smem>>
    %1088 = vector.broadcast %1087 : f32 to vector<8x1xf32>
    %1089 = arith.addf %1086, %1088 : vector<8x1xf32>
    %cst_223 = arith.constant 0.000000e+00 : f32
    %1090 = vector.broadcast %cst_223 : f32 to vector<8x1xf32>
    %1091 = arith.maximumf %1089, %1090 : vector<8x1xf32>
    %c56_224 = arith.constant 56 : index
    %1092 = memref.load %arg3[%c56_224] : memref<96xf32, #tpu.memory_space<smem>>
    %1093 = vector.broadcast %1092 : f32 to vector<8x1xf32>
    %1094 = arith.mulf %959, %1093 : vector<8x1xf32>
    %c57_225 = arith.constant 57 : index
    %1095 = memref.load %arg3[%c57_225] : memref<96xf32, #tpu.memory_space<smem>>
    %1096 = vector.broadcast %1095 : f32 to vector<8x1xf32>
    %1097 = arith.mulf %963, %1096 : vector<8x1xf32>
    %1098 = arith.addf %1094, %1097 : vector<8x1xf32>
    %c58_226 = arith.constant 58 : index
    %1099 = memref.load %arg3[%c58_226] : memref<96xf32, #tpu.memory_space<smem>>
    %1100 = vector.broadcast %1099 : f32 to vector<8x1xf32>
    %1101 = arith.mulf %967, %1100 : vector<8x1xf32>
    %1102 = arith.addf %1098, %1101 : vector<8x1xf32>
    %c59_227 = arith.constant 59 : index
    %1103 = memref.load %arg3[%c59_227] : memref<96xf32, #tpu.memory_space<smem>>
    %1104 = vector.broadcast %1103 : f32 to vector<8x1xf32>
    %1105 = arith.mulf %971, %1104 : vector<8x1xf32>
    %1106 = arith.addf %1102, %1105 : vector<8x1xf32>
    %c14_228 = arith.constant 14 : index
    %1107 = memref.load %arg4[%c14_228] : memref<24xf32, #tpu.memory_space<smem>>
    %1108 = vector.broadcast %1107 : f32 to vector<8x1xf32>
    %1109 = arith.addf %1106, %1108 : vector<8x1xf32>
    %cst_229 = arith.constant 0.000000e+00 : f32
    %1110 = vector.broadcast %cst_229 : f32 to vector<8x1xf32>
    %1111 = arith.maximumf %1109, %1110 : vector<8x1xf32>
    %c60_230 = arith.constant 60 : index
    %1112 = memref.load %arg3[%c60_230] : memref<96xf32, #tpu.memory_space<smem>>
    %1113 = vector.broadcast %1112 : f32 to vector<8x1xf32>
    %1114 = arith.mulf %959, %1113 : vector<8x1xf32>
    %c61_231 = arith.constant 61 : index
    %1115 = memref.load %arg3[%c61_231] : memref<96xf32, #tpu.memory_space<smem>>
    %1116 = vector.broadcast %1115 : f32 to vector<8x1xf32>
    %1117 = arith.mulf %963, %1116 : vector<8x1xf32>
    %1118 = arith.addf %1114, %1117 : vector<8x1xf32>
    %c62_232 = arith.constant 62 : index
    %1119 = memref.load %arg3[%c62_232] : memref<96xf32, #tpu.memory_space<smem>>
    %1120 = vector.broadcast %1119 : f32 to vector<8x1xf32>
    %1121 = arith.mulf %967, %1120 : vector<8x1xf32>
    %1122 = arith.addf %1118, %1121 : vector<8x1xf32>
    %c63_233 = arith.constant 63 : index
    %1123 = memref.load %arg3[%c63_233] : memref<96xf32, #tpu.memory_space<smem>>
    %1124 = vector.broadcast %1123 : f32 to vector<8x1xf32>
    %1125 = arith.mulf %971, %1124 : vector<8x1xf32>
    %1126 = arith.addf %1122, %1125 : vector<8x1xf32>
    %c15_234 = arith.constant 15 : index
    %1127 = memref.load %arg4[%c15_234] : memref<24xf32, #tpu.memory_space<smem>>
    %1128 = vector.broadcast %1127 : f32 to vector<8x1xf32>
    %1129 = arith.addf %1126, %1128 : vector<8x1xf32>
    %cst_235 = arith.constant 0.000000e+00 : f32
    %1130 = vector.broadcast %cst_235 : f32 to vector<8x1xf32>
    %1131 = arith.maximumf %1129, %1130 : vector<8x1xf32>
    %c32_236 = arith.constant 32 : index
    %1132 = memref.load %arg5[%c32_236] : memref<96xf32, #tpu.memory_space<smem>>
    %1133 = vector.broadcast %1132 : f32 to vector<8x1xf32>
    %1134 = arith.mulf %991, %1133 : vector<8x1xf32>
    %c33_237 = arith.constant 33 : index
    %1135 = memref.load %arg5[%c33_237] : memref<96xf32, #tpu.memory_space<smem>>
    %1136 = vector.broadcast %1135 : f32 to vector<8x1xf32>
    %1137 = arith.mulf %1011, %1136 : vector<8x1xf32>
    %1138 = arith.addf %1134, %1137 : vector<8x1xf32>
    %c34_238 = arith.constant 34 : index
    %1139 = memref.load %arg5[%c34_238] : memref<96xf32, #tpu.memory_space<smem>>
    %1140 = vector.broadcast %1139 : f32 to vector<8x1xf32>
    %1141 = arith.mulf %1031, %1140 : vector<8x1xf32>
    %1142 = arith.addf %1138, %1141 : vector<8x1xf32>
    %c35_239 = arith.constant 35 : index
    %1143 = memref.load %arg5[%c35_239] : memref<96xf32, #tpu.memory_space<smem>>
    %1144 = vector.broadcast %1143 : f32 to vector<8x1xf32>
    %1145 = arith.mulf %1051, %1144 : vector<8x1xf32>
    %1146 = arith.addf %1142, %1145 : vector<8x1xf32>
    %c36_240 = arith.constant 36 : index
    %1147 = memref.load %arg5[%c36_240] : memref<96xf32, #tpu.memory_space<smem>>
    %1148 = vector.broadcast %1147 : f32 to vector<8x1xf32>
    %1149 = arith.mulf %1071, %1148 : vector<8x1xf32>
    %1150 = arith.addf %1146, %1149 : vector<8x1xf32>
    %c37_241 = arith.constant 37 : index
    %1151 = memref.load %arg5[%c37_241] : memref<96xf32, #tpu.memory_space<smem>>
    %1152 = vector.broadcast %1151 : f32 to vector<8x1xf32>
    %1153 = arith.mulf %1091, %1152 : vector<8x1xf32>
    %1154 = arith.addf %1150, %1153 : vector<8x1xf32>
    %c38_242 = arith.constant 38 : index
    %1155 = memref.load %arg5[%c38_242] : memref<96xf32, #tpu.memory_space<smem>>
    %1156 = vector.broadcast %1155 : f32 to vector<8x1xf32>
    %1157 = arith.mulf %1111, %1156 : vector<8x1xf32>
    %1158 = arith.addf %1154, %1157 : vector<8x1xf32>
    %c39_243 = arith.constant 39 : index
    %1159 = memref.load %arg5[%c39_243] : memref<96xf32, #tpu.memory_space<smem>>
    %1160 = vector.broadcast %1159 : f32 to vector<8x1xf32>
    %1161 = arith.mulf %1131, %1160 : vector<8x1xf32>
    %1162 = arith.addf %1158, %1161 : vector<8x1xf32>
    %c4_244 = arith.constant 4 : index
    %1163 = memref.load %arg6[%c4_244] : memref<12xf32, #tpu.memory_space<smem>>
    %1164 = vector.broadcast %1163 : f32 to vector<8x1xf32>
    %1165 = arith.addf %1162, %1164 : vector<8x1xf32>
    %c40_245 = arith.constant 40 : index
    %1166 = memref.load %arg5[%c40_245] : memref<96xf32, #tpu.memory_space<smem>>
    %1167 = vector.broadcast %1166 : f32 to vector<8x1xf32>
    %1168 = arith.mulf %991, %1167 : vector<8x1xf32>
    %c41_246 = arith.constant 41 : index
    %1169 = memref.load %arg5[%c41_246] : memref<96xf32, #tpu.memory_space<smem>>
    %1170 = vector.broadcast %1169 : f32 to vector<8x1xf32>
    %1171 = arith.mulf %1011, %1170 : vector<8x1xf32>
    %1172 = arith.addf %1168, %1171 : vector<8x1xf32>
    %c42_247 = arith.constant 42 : index
    %1173 = memref.load %arg5[%c42_247] : memref<96xf32, #tpu.memory_space<smem>>
    %1174 = vector.broadcast %1173 : f32 to vector<8x1xf32>
    %1175 = arith.mulf %1031, %1174 : vector<8x1xf32>
    %1176 = arith.addf %1172, %1175 : vector<8x1xf32>
    %c43_248 = arith.constant 43 : index
    %1177 = memref.load %arg5[%c43_248] : memref<96xf32, #tpu.memory_space<smem>>
    %1178 = vector.broadcast %1177 : f32 to vector<8x1xf32>
    %1179 = arith.mulf %1051, %1178 : vector<8x1xf32>
    %1180 = arith.addf %1176, %1179 : vector<8x1xf32>
    %c44_249 = arith.constant 44 : index
    %1181 = memref.load %arg5[%c44_249] : memref<96xf32, #tpu.memory_space<smem>>
    %1182 = vector.broadcast %1181 : f32 to vector<8x1xf32>
    %1183 = arith.mulf %1071, %1182 : vector<8x1xf32>
    %1184 = arith.addf %1180, %1183 : vector<8x1xf32>
    %c45_250 = arith.constant 45 : index
    %1185 = memref.load %arg5[%c45_250] : memref<96xf32, #tpu.memory_space<smem>>
    %1186 = vector.broadcast %1185 : f32 to vector<8x1xf32>
    %1187 = arith.mulf %1091, %1186 : vector<8x1xf32>
    %1188 = arith.addf %1184, %1187 : vector<8x1xf32>
    %c46_251 = arith.constant 46 : index
    %1189 = memref.load %arg5[%c46_251] : memref<96xf32, #tpu.memory_space<smem>>
    %1190 = vector.broadcast %1189 : f32 to vector<8x1xf32>
    %1191 = arith.mulf %1111, %1190 : vector<8x1xf32>
    %1192 = arith.addf %1188, %1191 : vector<8x1xf32>
    %c47_252 = arith.constant 47 : index
    %1193 = memref.load %arg5[%c47_252] : memref<96xf32, #tpu.memory_space<smem>>
    %1194 = vector.broadcast %1193 : f32 to vector<8x1xf32>
    %1195 = arith.mulf %1131, %1194 : vector<8x1xf32>
    %1196 = arith.addf %1192, %1195 : vector<8x1xf32>
    %c5_253 = arith.constant 5 : index
    %1197 = memref.load %arg6[%c5_253] : memref<12xf32, #tpu.memory_space<smem>>
    %1198 = vector.broadcast %1197 : f32 to vector<8x1xf32>
    %1199 = arith.addf %1196, %1198 : vector<8x1xf32>
    %c48_254 = arith.constant 48 : index
    %1200 = memref.load %arg5[%c48_254] : memref<96xf32, #tpu.memory_space<smem>>
    %1201 = vector.broadcast %1200 : f32 to vector<8x1xf32>
    %1202 = arith.mulf %991, %1201 : vector<8x1xf32>
    %c49_255 = arith.constant 49 : index
    %1203 = memref.load %arg5[%c49_255] : memref<96xf32, #tpu.memory_space<smem>>
    %1204 = vector.broadcast %1203 : f32 to vector<8x1xf32>
    %1205 = arith.mulf %1011, %1204 : vector<8x1xf32>
    %1206 = arith.addf %1202, %1205 : vector<8x1xf32>
    %c50_256 = arith.constant 50 : index
    %1207 = memref.load %arg5[%c50_256] : memref<96xf32, #tpu.memory_space<smem>>
    %1208 = vector.broadcast %1207 : f32 to vector<8x1xf32>
    %1209 = arith.mulf %1031, %1208 : vector<8x1xf32>
    %1210 = arith.addf %1206, %1209 : vector<8x1xf32>
    %c51_257 = arith.constant 51 : index
    %1211 = memref.load %arg5[%c51_257] : memref<96xf32, #tpu.memory_space<smem>>
    %1212 = vector.broadcast %1211 : f32 to vector<8x1xf32>
    %1213 = arith.mulf %1051, %1212 : vector<8x1xf32>
    %1214 = arith.addf %1210, %1213 : vector<8x1xf32>
    %c52_258 = arith.constant 52 : index
    %1215 = memref.load %arg5[%c52_258] : memref<96xf32, #tpu.memory_space<smem>>
    %1216 = vector.broadcast %1215 : f32 to vector<8x1xf32>
    %1217 = arith.mulf %1071, %1216 : vector<8x1xf32>
    %1218 = arith.addf %1214, %1217 : vector<8x1xf32>
    %c53_259 = arith.constant 53 : index
    %1219 = memref.load %arg5[%c53_259] : memref<96xf32, #tpu.memory_space<smem>>
    %1220 = vector.broadcast %1219 : f32 to vector<8x1xf32>
    %1221 = arith.mulf %1091, %1220 : vector<8x1xf32>
    %1222 = arith.addf %1218, %1221 : vector<8x1xf32>
    %c54_260 = arith.constant 54 : index
    %1223 = memref.load %arg5[%c54_260] : memref<96xf32, #tpu.memory_space<smem>>
    %1224 = vector.broadcast %1223 : f32 to vector<8x1xf32>
    %1225 = arith.mulf %1111, %1224 : vector<8x1xf32>
    %1226 = arith.addf %1222, %1225 : vector<8x1xf32>
    %c55_261 = arith.constant 55 : index
    %1227 = memref.load %arg5[%c55_261] : memref<96xf32, #tpu.memory_space<smem>>
    %1228 = vector.broadcast %1227 : f32 to vector<8x1xf32>
    %1229 = arith.mulf %1131, %1228 : vector<8x1xf32>
    %1230 = arith.addf %1226, %1229 : vector<8x1xf32>
    %c6_262 = arith.constant 6 : index
    %1231 = memref.load %arg6[%c6_262] : memref<12xf32, #tpu.memory_space<smem>>
    %1232 = vector.broadcast %1231 : f32 to vector<8x1xf32>
    %1233 = arith.addf %1230, %1232 : vector<8x1xf32>
    %c56_263 = arith.constant 56 : index
    %1234 = memref.load %arg5[%c56_263] : memref<96xf32, #tpu.memory_space<smem>>
    %1235 = vector.broadcast %1234 : f32 to vector<8x1xf32>
    %1236 = arith.mulf %991, %1235 : vector<8x1xf32>
    %c57_264 = arith.constant 57 : index
    %1237 = memref.load %arg5[%c57_264] : memref<96xf32, #tpu.memory_space<smem>>
    %1238 = vector.broadcast %1237 : f32 to vector<8x1xf32>
    %1239 = arith.mulf %1011, %1238 : vector<8x1xf32>
    %1240 = arith.addf %1236, %1239 : vector<8x1xf32>
    %c58_265 = arith.constant 58 : index
    %1241 = memref.load %arg5[%c58_265] : memref<96xf32, #tpu.memory_space<smem>>
    %1242 = vector.broadcast %1241 : f32 to vector<8x1xf32>
    %1243 = arith.mulf %1031, %1242 : vector<8x1xf32>
    %1244 = arith.addf %1240, %1243 : vector<8x1xf32>
    %c59_266 = arith.constant 59 : index
    %1245 = memref.load %arg5[%c59_266] : memref<96xf32, #tpu.memory_space<smem>>
    %1246 = vector.broadcast %1245 : f32 to vector<8x1xf32>
    %1247 = arith.mulf %1051, %1246 : vector<8x1xf32>
    %1248 = arith.addf %1244, %1247 : vector<8x1xf32>
    %c60_267 = arith.constant 60 : index
    %1249 = memref.load %arg5[%c60_267] : memref<96xf32, #tpu.memory_space<smem>>
    %1250 = vector.broadcast %1249 : f32 to vector<8x1xf32>
    %1251 = arith.mulf %1071, %1250 : vector<8x1xf32>
    %1252 = arith.addf %1248, %1251 : vector<8x1xf32>
    %c61_268 = arith.constant 61 : index
    %1253 = memref.load %arg5[%c61_268] : memref<96xf32, #tpu.memory_space<smem>>
    %1254 = vector.broadcast %1253 : f32 to vector<8x1xf32>
    %1255 = arith.mulf %1091, %1254 : vector<8x1xf32>
    %1256 = arith.addf %1252, %1255 : vector<8x1xf32>
    %c62_269 = arith.constant 62 : index
    %1257 = memref.load %arg5[%c62_269] : memref<96xf32, #tpu.memory_space<smem>>
    %1258 = vector.broadcast %1257 : f32 to vector<8x1xf32>
    %1259 = arith.mulf %1111, %1258 : vector<8x1xf32>
    %1260 = arith.addf %1256, %1259 : vector<8x1xf32>
    %c63_270 = arith.constant 63 : index
    %1261 = memref.load %arg5[%c63_270] : memref<96xf32, #tpu.memory_space<smem>>
    %1262 = vector.broadcast %1261 : f32 to vector<8x1xf32>
    %1263 = arith.mulf %1131, %1262 : vector<8x1xf32>
    %1264 = arith.addf %1260, %1263 : vector<8x1xf32>
    %c7_271 = arith.constant 7 : index
    %1265 = memref.load %arg6[%c7_271] : memref<12xf32, #tpu.memory_space<smem>>
    %1266 = vector.broadcast %1265 : f32 to vector<8x1xf32>
    %1267 = arith.addf %1264, %1266 : vector<8x1xf32>
    %1268 = vector.broadcast %1165 : vector<8x1xf32> to vector<8x128xf32>
    %1269 = arith.addf %853, %1268 : vector<8x128xf32>
    %1270 = arith.negf %1269 : vector<8x128xf32>
    %1271 = math.exp %1270 : vector<8x128xf32>
    %cst_272 = arith.constant 1.000000e+00 : f32
    %1272 = vector.broadcast %cst_272 : f32 to vector<8x128xf32>
    %1273 = arith.addf %1272, %1271 : vector<8x128xf32>
    %1274 = arith.divf %1272, %1273 : vector<8x128xf32>
    %1275 = arith.mulf %8, %1274 : vector<8x128xf32>
    %1276 = arith.addf %4, %1275 : vector<8x128xf32>
    %c0_273 = arith.constant 0 : index
    %c0_274 = arith.constant 0 : index
    %1277 = vector.load %arg7[%c0_273, %c0_274] : memref<8x512xf32, #tpu.memory_space<vmem>>, vector<8x128xf32>
    tpu.vector_store %arg7[%c0_273, %c0_274], %1276 {strides = array<i32>} : memref<8x512xf32, #tpu.memory_space<vmem>>, vector<8x128xf32>,
    %1278 = vector.broadcast %1199 : vector<8x1xf32> to vector<8x128xf32>
    %1279 = arith.addf %887, %1278 : vector<8x128xf32>
    %1280 = arith.negf %1279 : vector<8x128xf32>
    %1281 = math.exp %1280 : vector<8x128xf32>
    %cst_275 = arith.constant 1.000000e+00 : f32
    %1282 = vector.broadcast %cst_275 : f32 to vector<8x128xf32>
    %1283 = arith.addf %1282, %1281 : vector<8x128xf32>
    %1284 = arith.divf %1282, %1283 : vector<8x128xf32>
    %1285 = arith.mulf %9, %1284 : vector<8x128xf32>
    %1286 = arith.addf %5, %1285 : vector<8x128xf32>
    %c0_276 = arith.constant 0 : index
    %c128_277 = arith.constant 128 : index
    %1287 = vector.load %arg7[%c0_276, %c128_277] : memref<8x512xf32, #tpu.memory_space<vmem>>, vector<8x128xf32>
    tpu.vector_store %arg7[%c0_276, %c128_277], %1286 {strides = array<i32>} : memref<8x512xf32, #tpu.memory_space<vmem>>, vector<8x128xf32>,
    %1288 = vector.broadcast %1233 : vector<8x1xf32> to vector<8x128xf32>
    %1289 = arith.addf %921, %1288 : vector<8x128xf32>
    %1290 = arith.negf %1289 : vector<8x128xf32>
    %1291 = math.exp %1290 : vector<8x128xf32>
    %cst_278 = arith.constant 1.000000e+00 : f32
    %1292 = vector.broadcast %cst_278 : f32 to vector<8x128xf32>
    %1293 = arith.addf %1292, %1291 : vector<8x128xf32>
    %1294 = arith.divf %1292, %1293 : vector<8x128xf32>
    %1295 = arith.mulf %10, %1294 : vector<8x128xf32>
    %1296 = arith.addf %6, %1295 : vector<8x128xf32>
    %c0_279 = arith.constant 0 : index
    %c256_280 = arith.constant 256 : index
    %1297 = vector.load %arg7[%c0_279, %c256_280] : memref<8x512xf32, #tpu.memory_space<vmem>>, vector<8x128xf32>
    tpu.vector_store %arg7[%c0_279, %c256_280], %1296 {strides = array<i32>} : memref<8x512xf32, #tpu.memory_space<vmem>>, vector<8x128xf32>,
    %1298 = vector.broadcast %1267 : vector<8x1xf32> to vector<8x128xf32>
    %1299 = arith.addf %955, %1298 : vector<8x128xf32>
    %1300 = arith.negf %1299 : vector<8x128xf32>
    %1301 = math.exp %1300 : vector<8x128xf32>
    %cst_281 = arith.constant 1.000000e+00 : f32
    %1302 = vector.broadcast %cst_281 : f32 to vector<8x128xf32>
    %1303 = arith.addf %1302, %1301 : vector<8x128xf32>
    %1304 = arith.divf %1302, %1303 : vector<8x128xf32>
    %1305 = arith.mulf %11, %1304 : vector<8x128xf32>
    %1306 = arith.addf %7, %1305 : vector<8x128xf32>
    %c0_282 = arith.constant 0 : index
    %c384_283 = arith.constant 384 : index
    %1307 = vector.load %arg7[%c0_282, %c384_283] : memref<8x512xf32, #tpu.memory_space<vmem>>, vector<8x128xf32>
    tpu.vector_store %arg7[%c0_282, %c384_283], %1306 {strides = array<i32>} : memref<8x512xf32, #tpu.memory_space<vmem>>, vector<8x128xf32>,
    return
  }
  func.func @transform_0(%arg0: i32) -> (i32, i32) {
    %c0_i32 = arith.constant 0 : i32
    %c0_i32_0 = arith.constant 0 : i32
    return %arg0, %c0_i32 : i32, i32
  }
  func.func @transform_1(%arg0: i32) -> (i32, i32) {
    %c0_i32 = arith.constant 0 : i32
    %c0_i32_0 = arith.constant 0 : i32
    return %arg0, %c0_i32 : i32, i32
  }
  func.func @transform_2(%arg0: i32) -> i32 {
    %c0_i32 = arith.constant 0 : i32
    %c0_i32_0 = arith.constant 0 : i32
    return %c0_i32 : i32
  }
  func.func @transform_3(%arg0: i32) -> i32 {
    %c0_i32 = arith.constant 0 : i32
    %c0_i32_0 = arith.constant 0 : i32
    return %c0_i32 : i32
  }
  func.func @transform_4(%arg0: i32) -> i32 {
    %c0_i32 = arith.constant 0 : i32
    %c0_i32_0 = arith.constant 0 : i32
    return %c0_i32 : i32
  }
  func.func @transform_5(%arg0: i32) -> i32 {
    %c0_i32 = arith.constant 0 : i32
    %c0_i32_0 = arith.constant 0 : i32
    return %c0_i32 : i32
  }
  func.func @transform_6(%arg0: i32) -> (i32, i32) {
    %c0_i32 = arith.constant 0 : i32
    %c0_i32_0 = arith.constant 0 : i32
    return %arg0, %c0_i32 : i32, i32
  }
}

</mosaic_0001>

<bundles_post_ra>
// kernel: tpu_custom_call.1
= control target key start
LH: loop header
LB: loop body
LE: loop exit
PB: predicated region body
PF: predicated region fallthrough
CT: control target
= control target key end

     0   :  { %s3776_s0 = inlined_call_operand.hbm [shape: f32[16,512], index: 0, kind: input, shape index: {}]   ;;  %s3777_s1 = inlined_call_operand.hbm [shape: f32[16,512], index: 1, kind: input, shape index: {}]   ;;  %s3778_s2 = inlined_call_operand.vmem [shape: f32[96], index: 2, kind: input, shape index: {}]   ;;  %s3779_s3 = inlined_call_operand.vmem [shape: f32[24], index: 3, kind: input, shape index: {}]   ;;  %s3780_s4 = inlined_call_operand.vmem [shape: f32[96], index: 4, kind: input, shape index: {}]   ;;  %s3781_s5 = inlined_call_operand.vmem [shape: f32[12], index: 5, kind: input, shape index: {}]   ;;  %s3782_s6 = inlined_call_operand.hbm [shape: f32[16,512], index: 6, kind: output, shape index: {}]  }
   0x1   :  { %4014 = sst [smem:[#allocation144_spill]] %s3776_s0 }
   0x2   :  { %4015 = sst [smem:[#allocation145_spill]] %s3777_s1 }
   0x3   :  { %4016 = sst [smem:[#allocation146_spill]] %s3778_s2 }
   0x4   :  { %4017 = sst [smem:[#allocation147_spill]] %s3779_s3 }
   0x5   :  { %4018 = sst [smem:[#allocation148_spill]] %s3780_s4 }
   0x6   :  { %4019 = sst [smem:[#allocation149_spill]] %s3781_s5 }
   0x7   :  { %4020 = sst [smem:[#allocation150_spill]] %s3782_s6 }
   0x8   :  { %11 = vsyncpa [#allocation3], 0 }
   0x9   :  { %13 = vsyncpa [#allocation3 + $0x1], 0 }
   0xa   :  { %14 = vsyncpa [#allocation7], 0 }
   0xb   :  { %16 = vsyncpa [#allocation7 + $0x1], 0 }
   0xc   :  { %17 = vsyncpa [#allocation5], 0 }
   0xd   :  { %18 = vsyncpa [#allocation10], 0 }
   0xe   :  { %19 = vsyncpa [#allocation13], 0 }
   0xf   :  { %20 = vsyncpa [#allocation4], 0 }
  0x10   :  { %22 = vsyncpa [#allocation4 + $0x1], 0  ;;  %s2263_s21 = smov 0   ;;  %s2265_s22 = smov 0  }
  0x11   :  { %s2267_s23 = smov 0   ;;  %s2269_s24 = smov 0  }
  0x12 LB: > { %4021 = sst [smem:[#allocation21_spill]] %s2207_s21  ;;  %s2287_s28 = sadd.s32 4294967295, %s2219_s24   ;;  %s2219_s24 = sphi %s2269_s24, %s4490_s24   ;;  %s2215_s23 = sphi %s2267_s23, %s4493_s23   ;;  %s2211_s22 = sphi %s2265_s22, %s4492_s22   ;;  %s2207_s21 = sphi %s2263_s21, %s4491_s21  }
  0x13   : > { %4022 = sst [smem:[#allocation22_spill]] %s2211_s22  ;;  %s4025_s3 = sld [smem:[#allocation147_spill]] }
  0x14   : > { %4023 = sst [smem:[#allocation23_spill]] %s2215_s23  ;;  %p1625_p0 = scmp.ge.s32.totalorder %s2219_s24, 1 }
  0x15   : > { %4024 = sst [smem:[#allocation24_spill]] %s2219_s24  ;;  %p3783_p1 = scmp.eq.s32.totalorder %s2287_s28, 0 }
  0x16   : > { %4026 = sst [smem:[#allocation25_spill]] %s2287_s28  ;;  %p195_p2 = scmp.lt.s32.totalorder %s2219_s24, 3 }
  0x17   : > { %s4028_s2 = sld [smem:[#allocation146_spill]]  ;;  %s4029_s4 = sld [smem:[#allocation148_spill]] }
  0x18   : > { %p2292_p3 = pnand %p1625_p0, %p195_p2  ;;  %s4031_s5 = sld [smem:[#allocation149_spill]] }
  0x19   : > { %s219_s27 = sshll.u32 %s4025_s3, 4  ;;  %s220_s27 = int_to_ptr.vmem [resolvable:$true] %s219_s27 }
  0x1a   : > { %s4027_s29 = scalar_select %p2292_p3, 1, 0 }
  0x1b   : > { %p1907_p5 = pneg %p2292_p3  ;;  %s2017_s16 = scalar_lea.vmem %s220_s27, 16 }
  0x1c   : > { %p2018_p7 = scmp.ne.s32.totalorder %s220_s27, %s2017_s16  ;;  %p2025_p11 = scmp.lt.s32.totalorder %s220_s27, %s220_s27 }
  0x1d   : > { %s208_s8 = sshll.u32 %s4028_s2, 4  ;;  %s230_s11 = sshll.u32 %s4029_s4, 4  ;;  %s209_s8 = int_to_ptr.vmem [resolvable:$true] %s208_s8  ;;  %s2311_s11 = int_to_ptr.vmem [resolvable:$true] %s230_s11 }
  0x1e   : > { %p2307_p6 = pnand %p1907_p5, %p3783_p1  ;;  %s241_s15 = sshll.u32 %s4031_s5, 4  ;;  %s2316_s15 = int_to_ptr.vmem [resolvable:$true] %s241_s15 }
  0x1f   : > { %p2026_p12 = scmp.lt.s32.totalorder %s2017_s16, %s2017_s16 }
  0x20   : > { %p2019_p8 = pneg %p2307_p6 }
  0x21   : > { %p2027_p13 = por %p2026_p12, %p2025_p11 }
  0x22   : > { %p2020_p9 = pnand %p2019_p8, %p2018_p7 }
  0x24   : > { %p2021_p10 = pneg %p2020_p9 }
  0x26   : > { %p2028_p0 = pnand %p2027_p13, %p2021_p10 }
  0x28   : > { %2031 = shalt.err (!%p2028_p0)
}
  0x29   : > { %s2221_s17 = smov [#allocation9]   ;;  %s2032_s18 = scalar_lea.vmem %s209_s8, 16 }
  0x2a   : > { %1913 = dma.vmem_to_smem (!%p2307_p6), %s220_s27, 16, %s2221_s17, [#allocation10]  }
  0x2b   : > { %p2033_p2 = scmp.ne.s32.totalorder %s209_s8, %s2032_s18  ;;  %p2040_p1 = scmp.lt.s32.totalorder %s209_s8, %s209_s8 }
  0x2c   : > { %p2041_p3 = scmp.lt.s32.totalorder %s2032_s18, %s2032_s18 }
  0x2d   : > { %p2035_p5 = pnand %p2033_p2, %p2019_p8 }
  0x2e   : > { %p2042_p7 = por %p2041_p3, %p2040_p1 }
  0x2f   : > { %p2036_p4 = pneg %p2035_p5 }
  0x31   : > { %p2043_p9 = pnand %p2042_p7, %p2036_p4 }
  0x33   : > { %2046 = shalt.err (!%p2043_p9)
}
  0x34   : > { %s2222_s19 = smov [#allocation8]   ;;  %s2047_s20 = scalar_lea.vmem %s2311_s11, 16 }
  0x35   : > { %1910 = dma.vmem_to_smem (!%p2307_p6), %s209_s8, 16, %s2222_s19, [#allocation5]  }
  0x36   : > { %p2048_p10 = scmp.ne.s32.totalorder %s2311_s11, %s2047_s20  ;;  %p2055_p13 = scmp.lt.s32.totalorder %s2311_s11, %s2311_s11 }
  0x37   : > { %p2056_p0 = scmp.lt.s32.totalorder %s2047_s20, %s2047_s20 }
  0x38   : > { %p2050_p11 = pnand %p2048_p10, %p2019_p8 }
  0x39   : > { %p2057_p1 = por %p2056_p0, %p2055_p13 }
  0x3a   : > { %p2051_p12 = pneg %p2050_p11 }
  0x3c   : > { %p2058_p3 = pnand %p2057_p1, %p2051_p12 }
  0x3e   : > { %2061 = shalt.err (!%p2058_p3)
}
  0x3f   : > { %s2223_s25 = smov [#allocation11]   ;;  %s2062_s26 = scalar_lea.vmem %s2316_s15, 16 }
  0x40   : > { %1916 = dma.vmem_to_smem (!%p2307_p6), %s2311_s11, 16, %s2223_s25, [#allocation10]  }
  0x41   : > { %p2063_p4 = scmp.ne.s32.totalorder %s2316_s15, %s2062_s26  ;;  %p2070_p7 = scmp.lt.s32.totalorder %s2316_s15, %s2316_s15 }
  0x42   : > { %p2071_p9 = scmp.lt.s32.totalorder %s2062_s26, %s2062_s26 }
  0x43   : > { %p2065_p2 = pnand %p2063_p4, %p2019_p8 }
  0x44   : > { %p2072_p10 = por %p2071_p9, %p2070_p7 }
  0x45   : > { %p2066_p5 = pneg %p2065_p2 }
  0x47   : > { %p2073_p11 = pnand %p2072_p10, %p2066_p5 }
  0x49   : > { %2076 = shalt.err (!%p2073_p11)
}
  0x4a   : > { %s2224_s27 = smov [#allocation12]   ;;  %s1624_s30 = sadd.s32 4294967294, %s2219_s24  }
  0x4b   : > { %1919 = dma.vmem_to_smem (!%p2307_p6), %s2316_s15, 16, %s2224_s27, [#allocation13]  }
  0x4c   : > { %s2352_s7 = sadd.s32 1, %s2219_s24   ;;  %s35_s9 = sadd.s32 1, %s2215_s23 }
  0x4d   : > { %4032 = sst [smem:[#allocation26_spill]] %s2352_s7  ;;  %s32_s8 = ssub.s32 %s2219_s24, %s2352_s7 }
  0x4e   : > { %p33_p8 = scmp.eq.s32.totalorder %s32_s8, 0  ;;  %p42_p12 = scmp.ne.s32.totalorder %s2215_s23, %s2211_s22 }
  0x4f   : > { %p43_p13 = scmp.eq.s32.totalorder %s2219_s24, 0  ;;  %p48_p0 = scmp.ne.s32.totalorder %s2211_s22, %s2207_s21 }
  0x50   : > { %s2363_s10 = scalar_select %p33_p8, %s2215_s23, %s35_s9  }
  0x51   : > { %p2365_p1 = por %p43_p13, %p42_p12  ;;  %p4035_p3 = scmp.eq.s32.totalorder %s2287_s28, 0 }
  0x52   : > { %4033 = sst [smem:[#allocation27_spill]] %s2363_s10  ;;  %p182_p4 = scmp.eq.s32.totalorder %s2287_s28, 1 }
  0x53   : > { %p2371_p6 = por %p4035_p3, %p48_p0  ;;  %p188_p2 = scmp.eq.s32.totalorder %s1624_s30, 1 }
  0x54   : > { %p1935_p5 = scmp.lt.s32.totalorder %s2219_s24, 2  ;;  %s2378_s13 = sand.u32 1, %s2215_s23  }
  0x55   : > { %s4036_s12 = scalar_select %p2371_p6, 1, 0 }
  0x56   : > { %p2380_p7 = por %p182_p4, %p42_p12  ;;  %p2384_p9 = por %p188_p2, %p48_p0 }
  0x57   : > { %s3785_s16 = sshll.u32 %s2378_s13, 5  ;;  %s1882_s17 = sshll.u32 %s2219_s24, 9 }
  0x58   : > { %s4037_s14 = scalar_select %p2380_p7, 1, 0 }
  0x59   : > { %s4039_s15 = scalar_select %p2384_p9, 1, 0 }
  0x5a   : > { %4038 = sst [smem:[#allocation28_spill]] %s4037_s14  ;;  %s4041_s0 = sld [smem:[#allocation144_spill]] }
  0x5b   : > { %4040 = sst [smem:[#allocation29_spill]] %s4039_s15  ;;  %s256_s25 = scalar_lea.vmem [#allocation2], %s3785_s16 }
  0x5c   : > { %s264_s26 = sshll.u32 %s256_s25, 4  ;;  %p2401_p10 = pnand %p1935_p5, %p2365_p1  ;;  %s2397_s26 = int_to_ptr.vmem [resolvable:$true] %s264_s26 }
  0x5d   : > { %s4043_s1 = sld [smem:[#allocation145_spill]]  ;;  %s253_s18 = scalar_lea.sflag [#allocation3], %s2378_s13 }
  0x5e   : > { %p2079_p8 = pneg %p2401_p10 }
  0x60   : > { %s2393_s20 = scalar_lea.hbm %s4041_s0, %s1882_s17  ;;  %s2082_s16 = scalar_lea.hbm %s4041_s0, 1024 }
  0x61   : > { %s2077_s19 = scalar_lea.hbm %s2393_s20, 512  ;;  %p2083_p0 = scmp.lt.u32.totalorder %s2393_s20, %s4041_s0 }
  0x62   : > { %p2078_p11 = scmp.ne.s32.totalorder %s2393_s20, %s2077_s19  ;;  %p2084_p1 = scmp.lt.u32.totalorder %s2082_s16, %s2077_s19 }
  0x63   : > { %s2408_s9 = scalar_lea.hbm %s4043_s1, %s1882_s17  ;;  %p2086_p4 = scmp.lt.u32.totalorder %s2077_s19, %s2393_s20 }
  0x64   : > { %p2080_p12 = pnand %p2079_p8, %p2078_p11  ;;  %p2085_p3 = por %p2084_p1, %p2083_p0 }
  0x66   : > { %p2081_p13 = pneg %p2080_p12  ;;  %p2087_p2 = por %p2086_p4, %p2085_p3 }
  0x68   : > { %p2088_p5 = pnand %p2087_p2, %p2081_p13 }
  0x6a   : > { %2091 = shalt.err (!%p2088_p5)
}
  0x6b   : > { %s2092_s17 = scalar_lea.vmem %s2397_s26, 512  ;;  %s2225_s30 = smov [#allocation2]  }
  0x6c   : > { %p2093_p11 = scmp.ne.s32.totalorder %s2397_s26, %s2092_s17  ;;  %s2097_s8 = sshll.u32 %s2225_s30, 4  ;;  %s2098_s8 = int_to_ptr.vmem [resolvable:$false] %s2097_s8 }
  0x6d   : > { %s2099_s2 = scalar_lea.vmem %s2098_s8, 1024  ;;  %p2100_p7 = scmp.lt.s32.totalorder %s2397_s26, %s2098_s8 }
  0x6e   : > { %p2095_p12 = pnand %p2093_p11, %p2079_p8  ;;  %p2101_p0 = scmp.lt.s32.totalorder %s2099_s2, %s2092_s17 }
  0x70   : > { %p2096_p9 = pneg %p2095_p12  ;;  %p2102_p1 = por %p2101_p0, %p2100_p7 }
  0x72   : > { %p2103_p3 = pnand %p2102_p1, %p2096_p9 }
  0x74   : > { %2106 = shalt.err (!%p2103_p3)
}
  0x75   : > { %1923 = dma.hbm_to_vmem [thread:$0]  (!%p2401_p10), %s2393_s20, 512, %s2397_s26, %s253_s18  }
  0x76   : > { %s4044_s3 = sshll.u32 %s2378_s13, 5  ;;  %s272_s11 = scalar_lea.sflag [#allocation7], %s2378_s13 }
  0x77   : > { %s275_s16 = scalar_lea.vmem [#allocation6], %s4044_s3  ;;  %s2107_s25 = scalar_lea.hbm %s2408_s9, 512 }
  0x78   : > { %s283_s19 = sshll.u32 %s275_s16, 4  ;;  %p2108_p7 = scmp.ne.s32.totalorder %s2408_s9, %s2107_s25  ;;  %s284_s19 = int_to_ptr.vmem [resolvable:$true] %s283_s19 }
  0x79   : > { %s2112_s8 = scalar_lea.hbm %s4043_s1, 1024  ;;  %p2113_p4 = scmp.lt.u32.totalorder %s2408_s9, %s4043_s1 }
  0x7a   : > { %p2110_p9 = pnand %p2108_p7, %p2079_p8  ;;  %p2114_p2 = scmp.lt.u32.totalorder %s2112_s8, %s2107_s25 }
  0x7b   : > { %p2116_p11 = scmp.lt.u32.totalorder %s2107_s25, %s2408_s9 }
  0x7c   : > { %p2111_p13 = pneg %p2110_p9  ;;  %p2115_p5 = por %p2114_p2, %p2113_p4 }
  0x7e   : > { %p2117_p12 = por %p2116_p11, %p2115_p5 }
  0x80   : > { %p2118_p0 = pnand %p2117_p12, %p2111_p13 }
  0x82   : > { %2121 = shalt.err (!%p2118_p0)
}
  0x83   : > { %s2122_s13 = scalar_lea.vmem %s284_s19, 512  ;;  %s2226_s20 = smov [#allocation6]  }
  0x84   : > { %p2123_p1 = scmp.ne.s32.totalorder %s284_s19, %s2122_s13  ;;  %s2127_s26 = sshll.u32 %s2226_s20, 4  ;;  %s2128_s26 = int_to_ptr.vmem [resolvable:$false] %s2127_s26 }
  0x85   : > { %s2129_s18 = scalar_lea.vmem %s2128_s26, 1024  ;;  %p2130_p9 = scmp.lt.s32.totalorder %s284_s19, %s2128_s26 }
  0x86   : > { %p2125_p3 = pnand %p2123_p1, %p2079_p8  ;;  %p2131_p6 = scmp.lt.s32.totalorder %s2129_s18, %s2122_s13 }
  0x88   : > { %p2126_p7 = pneg %p2125_p3  ;;  %p2132_p2 = por %p2131_p6, %p2130_p9 }
  0x8a   : > { %p2133_p4 = pnand %p2132_p2, %p2126_p7 }
  0x8c   : > { %2136 = shalt.err (!%p2133_p4)
}
  0x8d   : > { %1926 = dma.hbm_to_vmem [thread:$0]  (!%p2401_p10), %s2408_s9, 512, %s284_s19, %s272_s11  }
  0x8e   : > { %p4045_p13 = scmp.ne.s32.totalorder %s4027_s29, 0 }
  0x90   : > { %292 = sbr.rel (%p4045_p13) target bundleno = 637 (0x27d), region = 44 }
  0x97   : > { %s2461_s0 = sand.u32 1, %s2211_s22   ;;  %p4049_p6 = scmp.ne.s32.totalorder %s4036_s12, 0 }
  0x98   : > { %4046 = sst [smem:[#allocation30_spill]] %s2461_s0  ;;  %s2464_s3 = sshll.u32 %s2461_s0, 5 }
  0x99   : > { %4047 = sst [smem:[#allocation31_spill]] %s2464_s3  ;;  %s295_s16 = scalar_lea.sflag [#allocation3], %s2461_s0 }
  0x9a   : > { %s2468_s25 = scalar_lea.vmem [#allocation2], %s2464_s3 }
  0x9b   : > { %4048 = sst [smem:[#allocation32_spill]] %s2468_s25 }
  0x9c   : > { %2182 = dma.done.wait (%p4049_p6), %s295_s16, 512  }
  0x9d   : > { %2184 = vsyncadd (%p4049_p6), %s295_s16, 4294966784  ;;  %s304_s29 = scalar_lea.sflag [#allocation7], %s2461_s0  ;;  %s2476_s27 = scalar_lea.vmem [#allocation6], %s2464_s3 }
  0x9e   : > { %4050 = sst [smem:[#allocation33_spill]] %s2476_s27 }
  0x9f   : > { %2186 = dma.done.wait (%p4049_p6), %s304_s29, 512  }
  0xa0   : > { %2188 = vsyncadd (%p4049_p6), %s304_s29, 4294966784  ;;  %p4051_p10 = scmp.eq.s32.totalorder %s2287_s28, 0 }
  0xa2   : > { %2190 = dma.done.wait (%p4051_p10), [#allocation5], 16   ;;  %p4052_p8 = pmov %p4051_p10 }
  0xa4   : > { %2192 = vsyncadd (%p4052_p8), [#allocation5], 4294967280  ;;  %p4053_p5 = pmov %p4052_p8 }
  0xa6   : > { %2194 = dma.done.wait (%p4053_p5), [#allocation10], 32   ;;  %p4054_p11 = pmov %p4053_p5 }
  0xa7   : > { %p4055_p12 = pmov %p4053_p5 }
  0xa8   : > { %2196 = vsyncadd (%p4054_p11), [#allocation10], 4294967264 }
  0xa9   : > { %2198 = dma.done.wait (%p4055_p12), [#allocation13], 16   ;;  %p4056_p0 = pmov %p4053_p5 }
  0xab   : > { %2200 = vsyncadd (%p4056_p0), [#allocation13], 4294967280 }
  0xac   : > { %328 = sfence }
  0xad   : > { %v358_v0 = vld [vmem:[%s2468_s25] sm:$0xff]  ;;  %v360_v2 = vld [vmem:[%s2468_s25 + $0x10] sm:$0xff]  ;;  %v359_v5 = vld [vmem:[%s2468_s25 + $0x8] sm:$0xff]  ;;  %s374_s12 = sld [smem:[#allocation8]]  ;;  %s1645_s9 = sld [smem:[#allocation8 + $0x1]] }
  0xae   : > { %v362_v1 = vld [vmem:[%s2476_s27] sm:$0xff]  ;;  %v364_v4 = vld [vmem:[%s2476_s27 + $0x10] sm:$0xff]  ;;  %v363_v6 = vld [vmem:[%s2476_s27 + $0x8] sm:$0xff]  ;;  %s1648_s19 = sld [smem:[#allocation8 + $0x4]]  ;;  %s1649_s11 = sld [smem:[#allocation8 + $0x5]] }
  0xaf   : > { %v2497_v3 = vadd.f32 %v362_v1, %v358_v0  ;;  %v2502_v7 = vadd.f32 %v364_v4, %v360_v2  ;;  %v361_v8 = vld [vmem:[%s2468_s25 + $0x18] sm:$0xff]  ;;  %v2507_v10 = vadd.f32 %v363_v6, %v359_v5  ;;  %s1646_s17 = sld [smem:[#allocation8 + $0x2]]  ;;  %s1650_s30 = sld [smem:[#allocation8 + $0x6]] }
  0xb0   : > { %v365_v9 = vld [vmem:[%s2476_s27 + $0x18] sm:$0xff]  ;;  %s2514_s8 = sld [smem:[#allocation8 + $0x8]]  ;;  %s2516_s2 = sld [smem:[#allocation8 + $0x9]] }
  0xb1   : > { %662 = vadd.xlane.f32.xlu0 %v2497_v3  ;;  %669 = vadd.xlane.f32.xlu1 %v2502_v7  ;;  %v2510_v11 = vadd.f32 %v365_v9, %v361_v8  ;;  %s1647_s13 = sld [smem:[#allocation8 + $0x3]]  ;;  %s1651_s20 = sld [smem:[#allocation8 + $0x7]] }
  0xb2   : > { %s2518_s26 = sld [smem:[#allocation9]]  ;;  %s2520_s18 = sld [smem:[#allocation9 + $0x1]] }
  0xb3   : > { %v375_v12 = vstv %s374_s12  ;;  %v378_v13 = vstv %s1645_s9  ;;  %s2522_s16 = sld [smem:[#allocation8 + $0xa]]  ;;  %s2524_s29 = sld [smem:[#allocation8 + $0xb]] }
  0xb4   : > { %v376_v14 = vmul.f32 %v375_v12, %v2497_v3  ;;  %v379_v15 = vmul.f32 %v378_v13, %v2507_v10  ;;  %v394_v16 = vstv %s1648_s19  ;;  %v397_v17 = vstv %s1649_s11  ;;  %s2528_s1 = sld [smem:[#allocation8 + $0xc]]  ;;  %s2532_s12 = sld [smem:[#allocation8 + $0xd]] }
  0xb5   : > { %666 = vadd.xlane.f32.xlu0 %v2507_v10  ;;  %672 = vadd.xlane.f32.xlu1 %v2510_v11  ;;  %v382_v18 = vstv %s1646_s17  ;;  %v395_v19 = vmul.f32 %v394_v16, %v2497_v3  ;;  %v398_v20 = vmul.f32 %v397_v17, %v2507_v10  ;;  %v401_v21 = vstv %s1650_s30  ;;  %s2534_s9 = sld [smem:[#allocation8 + $0xe]]  ;;  %s2539_s19 = sld [smem:[#allocation9 + $0x2]] }
  0xb6   : > { %v380_v22 = vadd.f32 %v379_v15, %v376_v14  ;;  %v383_v23 = vmul.f32 %v382_v18, %v2502_v7  ;;  %v402_v24 = vmul.f32 %v401_v21, %v2502_v7  ;;  %v413_v25 = vstv %s2514_s8  ;;  %s2541_s11 = sld [smem:[#allocation8 + $0xf]]  ;;  %s2543_s17 = sld [smem:[#allocation8 + $0x10]] }
  0xb7   : > { %v386_v26 = vstv %s1647_s13  ;;  %v399_v27 = vadd.f32 %v398_v20, %v395_v19  ;;  %v405_v28 = vstv %s1651_s20  ;;  %v414_v32 = vmul.f32 %v413_v25, %v2497_v3  ;;  %s2548_s30 = sld [smem:[#allocation8 + $0x11]]  ;;  %s2550_s8 = sld [smem:[#allocation8 + $0x12]] }
  0xb8   : > { %v384_v29 = vadd.f32 %v383_v23, %v380_v22  ;;  %v387_v30 = vmul.f32 %v386_v26, %v2510_v11  ;;  %v406_v31 = vmul.f32 %v405_v28, %v2510_v11  ;;  %v390_v33 = vstv %s2518_s26  ;;  %s2555_s13 = sld [smem:[#allocation8 + $0x13]]  ;;  %s2560_s20 = sld [smem:[#allocation8 + $0x14]] }
  0xb9   : > { %v403_v34 = vadd.f32 %v402_v24, %v399_v27  ;;  %v416_v35 = vstv %s2516_s2  ;;  %v420_v36 = vstv %s2522_s16  ;;  %v424_v40 = vstv %s2524_s29  ;;  %s2565_s2 = sld [smem:[#allocation9 + $0x3]]  ;;  %s2567_s26 = sld [smem:[#allocation8 + $0x15]] }
  0xba   : > { %v388_v37 = vadd.f32 %v387_v30, %v384_v29  ;;  %v417_v38 = vmul.f32 %v416_v35, %v2507_v10  ;;  %v421_v39 = vmul.f32 %v420_v36, %v2502_v7  ;;  %v409_v42 = vstv %s2520_s18  ;;  %s2571_s16 = sld [smem:[#allocation8 + $0x16]]  ;;  %s2573_s29 = sld [smem:[#allocation8 + $0x17]] }
  0xbb   : > { %v407_v41 = vadd.f32 %v406_v31, %v403_v34  ;;  %v425_v43 = vmul.f32 %v424_v40, %v2510_v11  ;;  %v432_v44 = vstv %s2528_s1  ;;  %v435_v48 = vstv %s2532_s12  ;;  %s2578_s1 = sld [smem:[#allocation9 + $0x4]]  ;;  %s2582_s18 = sld [smem:[#allocation8 + $0x18]] }
  0xbc   : > { %v391_v45 = vadd.f32 %v390_v33, %v388_v37  ;;  %v418_v46 = vadd.f32 %v417_v38, %v414_v32  ;;  %v433_v47 = vmul.f32 %v432_v44, %v2497_v3  ;;  %v436_v49 = vmul.f32 %v435_v48, %v2507_v10  ;;  %s2584_s12 = sld [smem:[#allocation8 + $0x19]]  ;;  %s2620_s4 = sld [smem:[#allocation8 + $0x1f]] }
  0xbd   : > { %v439_v50 = vstv %s2534_s9  ;;  %v443_v51 = vstv %s2541_s11  ;;  %v410_v52 = vadd.f32 %v409_v42, %v407_v41  ;;  %v428_v54 = vstv %s2539_s19  ;;  %s2590_s9 = sld [smem:[#allocation9 + $0x5]]  ;;  %s2595_s19 = sld [smem:[#allocation8 + $0x1a]] }
  0xbe   : > { %v422_v53 = vadd.f32 %v421_v39, %v418_v46  ;;  %v440_v55 = vmul.f32 %v439_v50, %v2502_v7  ;;  %v2586_v56 = vmax.f32 %v391_v45, 0.0  ;;  %v437_v57 = vadd.f32 %v436_v49, %v433_v47  ;;  %s2597_s11 = sld [smem:[#allocation8 + $0x1b]]  ;;  %s2766_s5 = sld [smem:[#allocation8 + $0x29]] }
  0xbf   : > { %v444_v58 = vmul.f32 %v443_v51, %v2510_v11  ;;  %v451_v59 = vstv %s2543_s17  ;;  %v454_v62 = vstv %s2548_s30  ;;  %v458_v63 = vstv %s2550_s8  ;;  %s2602_s17 = sld [smem:[#allocation8 + $0x1c]]  ;;  %s2608_s30 = sld [smem:[#allocation8 + $0x1d]] }
  0xc0   : > { %v426_v60 = vadd.f32 %v425_v43, %v422_v53  ;;  %v452_v61 = vmul.f32 %v451_v59, %v2497_v3  ;;  %v441_v0 = vadd.f32 %v440_v55, %v437_v57  ;;  %v455_v1 = vmul.f32 %v454_v62, %v2507_v10  ;;  %s2610_s8 = sld [smem:[#allocation8 + $0x1e]]  ;;  %s2768_s10 = sld [smem:[#allocation8 + $0x2a]] }
  0xc1   : > { %v459_v2 = vmul.f32 %v458_v63, %v2502_v7  ;;  %v462_v4 = vstv %s2555_s13  ;;  %v2604_v5 = vmax.f32 %v410_v52, 0.0  ;;  %v470_v9 = vstv %s2560_s20  ;;  %s2618_s13 = sld [smem:[#allocation9 + $0x6]]  ;;  %s2626_s20 = sld [smem:[#allocation11 + $0x8]] }
  0xc2   : > { %v429_v6 = vadd.f32 %v428_v54, %v426_v60  ;;  %v463_v8 = vmul.f32 %v462_v4, %v2510_v11  ;;  %v445_v12 = vadd.f32 %v444_v58, %v441_v0  ;;  %v456_v13 = vadd.f32 %v455_v1, %v452_v61  ;;  %s2770_s23 = sld [smem:[#allocation8 + $0x2b]]  ;;  %s2772_s22 = sld [smem:[#allocation9 + $0xa]] }
  0xc3   : > { %v471_v14 = vmul.f32 %v470_v9, %v2497_v3  ;;  %v473_v15 = vstv %s2567_s26  ;;  %v447_v16 = vstv %s2565_s2  ;;  %v477_v18 = vstv %s2571_s16  ;;  %s2631_s2 = sld [smem:[#allocation11 + $0x9]]  ;;  %s2633_s26 = sld [smem:[#allocation11 + $0xa]] }
  0xc4   : > { %v474_v17 = vmul.f32 %v473_v15, %v2507_v10  ;;  %v481_v19 = vstv %s2573_s29  ;;  %v2622_v20 = vmax.f32 %v429_v6, 0.0  ;;  %v460_v21 = vadd.f32 %v459_v2, %v456_v13  ;;  %s2637_s16 = sld [smem:[#allocation9 + $0x7]]  ;;  %s2642_s29 = sld [smem:[#allocation11 + $0xb]] }
  0xc5   : > { %v466_v22 = vstv %s2578_s1  ;;  %v478_v23 = vmul.f32 %v477_v18, %v2502_v7  ;;  %v482_v25 = vmul.f32 %v481_v19, %v2510_v11  ;;  %v489_v26 = vstv %s2582_s18  ;;  %s2644_s1 = sld [smem:[#allocation11 + $0xc]]  ;;  %s2651_s18 = sld [smem:[#allocation11 + $0xd]] }
  0xc6   : > { %v475_v24 = vadd.f32 %v474_v17, %v471_v14  ;;  %v492_v27 = vstv %s2584_s12  ;;  %v448_v28 = vadd.f32 %v447_v16, %v445_v12  ;;  %v464_v29 = vadd.f32 %v463_v8, %v460_v21  ;;  %s2660_s12 = sld [smem:[#allocation11 + $0xe]]  ;;  %4072 = sst [smem:[#allocation49_spill]] %s2766_s5 }
  0xc7   : > { %v490_v30 = vmul.f32 %v489_v26, %v2497_v3  ;;  %v493_v31 = vmul.f32 %v492_v27, %v2507_v10  ;;  %v485_v33 = vstv %s2590_s9  ;;  %v496_v34 = vstv %s2595_s19  ;;  %s1697_s9 = sld [smem:[#allocation11 + $0xf]]  ;;  %s1683_s19 = sld [smem:[#allocation11 + $0x1]] }
  0xc8   : > { %v479_v32 = vadd.f32 %v478_v23, %v475_v24  ;;  %v500_v35 = vstv %s2597_s11  ;;  %v467_v36 = vadd.f32 %v466_v22, %v464_v29  ;;  %v497_v38 = vmul.f32 %v496_v34, %v2502_v7  ;;  %s1684_s11 = sld [smem:[#allocation11 + $0x2]]  ;;  %4073 = sst [smem:[#allocation50_spill]] %s2768_s10 }
  0xc9   : > { %v494_v37 = vadd.f32 %v493_v31, %v490_v30  ;;  %v501_v39 = vmul.f32 %v500_v35, %v2510_v11  ;;  %v508_v41 = vstv %s2602_s17  ;;  %v511_v42 = vstv %s2608_s30  ;;  %s1685_s17 = sld [smem:[#allocation11 + $0x3]]  ;;  %s1686_s30 = sld [smem:[#allocation11 + $0x4]] }
  0xca   : > { %v483_v40 = vadd.f32 %v482_v25, %v479_v32  ;;  %v515_v43 = vstv %s2610_s8  ;;  %v2653_v44 = vmax.f32 %v448_v28, 0.0  ;;  %v509_v46 = vmul.f32 %v508_v41, %v2497_v3  ;;  %s1687_s8 = sld [smem:[#allocation11 + $0x5]]  ;;  %4074 = sst [smem:[#allocation51_spill]] %s2770_s23 }
  0xcb   : > { %v498_v45 = vadd.f32 %v497_v38, %v494_v37  ;;  %v512_v47 = vmul.f32 %v511_v42, %v2507_v10  ;;  %v504_v49 = vstv %s2618_s13  ;;  %v516_v50 = vmul.f32 %v515_v43, %v2502_v7  ;;  %s1688_s13 = sld [smem:[#allocation11 + $0x6]]  ;;  %4075 = sst [smem:[#allocation52_spill]] %s2772_s22 }
  0xcc   : > { %v486_v48 = vadd.f32 %v485_v33, %v483_v40  ;;  %v519_v51 = vstv %s2620_s4  ;;  %v561_v55 = vstv %s2626_s20  ;;  %v2664_v57 = vmax.f32 %v467_v36, 0.0  ;;  %s526_s4 = sld [smem:[#allocation11]]  ;;  %s2690_s20 = sld [smem:[#allocation11 + $0x7]] }
  0xcd   : > { %v502_v52 = vadd.f32 %v501_v39, %v498_v45  ;;  %v513_v53 = vadd.f32 %v512_v47, %v509_v46  ;;  %v520_v54 = vmul.f32 %v519_v51, %v2510_v11  ;;  %v562_v3 = vmul.f32 %v561_v55, %v2586_v56  ;;  %s2774_s7 = sld [smem:[#allocation8 + $0x2d]]  ;;  %s2776_s24 = sld [smem:[#allocation8 + $0x2e]] }
  0xce   : > { %v564_v10 = vstv %s2631_s2  ;;  %v568_v58 = vstv %s2633_s26  ;;  %v523_v62 = vstv %s2637_s16  ;;  %v572_v63 = vstv %s2642_s29  ;;  %s1708_s2 = sld [smem:[#allocation11 + $0x18]]  ;;  %s1709_s26 = sld [smem:[#allocation11 + $0x19]] }
  0xcf   : > { %v505_v7 = vadd.f32 %v504_v49, %v502_v52  ;;  %v517_v59 = vadd.f32 %v516_v50, %v513_v53  ;;  %v565_v60 = vmul.f32 %v564_v10, %v2604_v5  ;;  %v569_v61 = vmul.f32 %v568_v58, %v2622_v20  ;;  %s1710_s16 = sld [smem:[#allocation11 + $0x1a]]  ;;  %s1711_s29 = sld [smem:[#allocation11 + $0x1b]] }
  0xd0   : > { %v576_v0 = vstv %s2644_s1  ;;  %v2674_v11 = vmax.f32 %v486_v48, 0.0  ;;  %v573_v4 = vmul.f32 %v572_v63, %v2653_v44  ;;  %v580_v6 = vstv %s2651_s18  ;;  %s2695_s1 = sld [smem:[#allocation11 + $0x1c]]  ;;  %s2698_s18 = sld [smem:[#allocation11 + $0x1d]] }
  0xd1   : > { %v521_v1 = vadd.f32 %v520_v54, %v517_v59  ;;  %v566_v2 = vadd.f32 %v565_v60, %v562_v3  ;;  %v2678_v8 = vmax.f32 %v505_v7, 0.0  ;;  %v577_v13 = vmul.f32 %v576_v0, %v2664_v57  ;;  %s2778_s15 = sld [smem:[#allocation8 + $0x2f]]  ;;  %s2780_s21 = sld [smem:[#allocation9 + $0xb]] }
  0xd2   : > { %v584_v14 = vstv %s2660_s12  ;;  %v581_v17 = vmul.f32 %v580_v6, %v2674_v11  ;;  %v588_v18 = vstv %s1697_s9  ;;  %v527_v26 = vstv %s526_s4  ;;  %s2700_s12 = sld [smem:[#allocation11 + $0x1e]]  ;;  %s2706_s9 = sld [smem:[#allocation11 + $0x1f]] }
  0xd3   : > { %v524_v9 = vadd.f32 %v523_v62, %v521_v1  ;;  %v570_v12 = vadd.f32 %v569_v61, %v566_v2  ;;  %v585_v21 = vmul.f32 %v584_v14, %v2678_v8  ;;  %v528_v27 = vmul.f32 %v527_v26, %v2586_v56  ;;  %s1699_s4 = sld [smem:[#allocation11 + $0x10]]  ;;  %4077 = sst [smem:[#allocation54_spill]] %s2776_s24 }
  0xd4   : > { %v530_v28 = vstv %s1683_s19  ;;  %v534_v29 = vstv %s1684_s11  ;;  %v538_v32 = vstv %s1685_s17  ;;  %v542_v33 = vstv %s1686_s30  ;;  %s1700_s19 = sld [smem:[#allocation11 + $0x11]]  ;;  %s1701_s11 = sld [smem:[#allocation11 + $0x12]] }
  0xd5   : > { %v2682_v15 = vmax.f32 %v524_v9, 0.0  ;;  %v574_v16 = vadd.f32 %v573_v4, %v570_v12  ;;  %v531_v30 = vmul.f32 %v530_v28, %v2604_v5  ;;  %v535_v31 = vmul.f32 %v534_v29, %v2622_v20  ;;  %s1702_s17 = sld [smem:[#allocation11 + $0x13]]  ;;  %s1703_s30 = sld [smem:[#allocation11 + $0x14]] }
  0xd6   : > { %v539_v35 = vmul.f32 %v538_v32, %v2653_v44  ;;  %v546_v36 = vstv %s1687_s8  ;;  %v543_v38 = vmul.f32 %v542_v33, %v2664_v57  ;;  %v550_v39 = vstv %s1688_s13  ;;  %s1704_s8 = sld [smem:[#allocation11 + $0x15]]  ;;  %s1705_s13 = sld [smem:[#allocation11 + $0x16]] }
  0xd7   : > { %v578_v19 = vadd.f32 %v577_v13, %v574_v16  ;;  %v589_v23 = vmul.f32 %v588_v18, %v2682_v15  ;;  %v532_v34 = vadd.f32 %v531_v30, %v528_v27  ;;  %v547_v41 = vmul.f32 %v546_v36, %v2674_v11  ;;  %4076 = sst [smem:[#allocation53_spill]] %s2774_s7  ;;  %s2782_s6 = sld [smem:[#allocation8 + $0x31]] }
  0xd8   : > { %v551_v42 = vmul.f32 %v550_v39, %v2678_v8  ;;  %v554_v43 = vstv %s2690_s20  ;;  %v629_v45 = vstv %s1708_s2  ;;  %v632_v48 = vstv %s1709_s26  ;;  %s1706_s20 = sld [smem:[#allocation11 + $0x17]]  ;;  %s2734_s2 = sld [smem:[#allocation8 + $0x20]] }
  0xd9   : > { %v582_v22 = vadd.f32 %v581_v17, %v578_v19  ;;  %v536_v37 = vadd.f32 %v535_v31, %v532_v34  ;;  %v630_v47 = vmul.f32 %v629_v45, %v2586_v56  ;;  %v636_v49 = vstv %s1710_s16  ;;  %s2736_s26 = sld [smem:[#allocation8 + $0x24]]  ;;  %s2738_s16 = sld [smem:[#allocation8 + $0x28]] }
  0xda   : > { %v633_v50 = vmul.f32 %v632_v48, %v2604_v5  ;;  %v637_v51 = vmul.f32 %v636_v49, %v2622_v20  ;;  %v640_v52 = vstv %s1711_s29  ;;  %v555_v54 = vmul.f32 %v554_v43, %v2682_v15  ;;  %s2740_s29 = sld [smem:[#allocation8 + $0x2c]]  ;;  %4078 = sst [smem:[#allocation55_spill]] %s2778_s15 }
  0xdb   : > { %v586_v24 = vadd.f32 %v585_v21, %v582_v22  ;;  %v540_v40 = vadd.f32 %v539_v35, %v536_v37  ;;  %v644_v55 = vstv %s2695_s1  ;;  %v641_v10 = vmul.f32 %v640_v52, %v2653_v44  ;;  %s2742_s1 = sld [smem:[#allocation8 + $0x30]]  ;;  %4079 = sst [smem:[#allocation56_spill]] %s2780_s21 }
  0xdc   : > { %v634_v3 = vadd.f32 %v633_v50, %v630_v47  ;;  %v648_v7 = vstv %s2698_s18  ;;  %v645_v60 = vmul.f32 %v644_v55, %v2664_v57  ;;  %v652_v61 = vstv %s2700_s12  ;;  %s2744_s18 = sld [smem:[#allocation8 + $0x34]]  ;;  %s2746_s12 = sld [smem:[#allocation8 + $0x38]] }
  0xdd   : > { %v2687_v25 = vadd.f32 %v589_v23, %v586_v24  ;;  %v544_v46 = vadd.f32 %v543_v38, %v540_v40  ;;  %v649_v0 = vmul.f32 %v648_v7, %v2674_v11  ;;  %v653_v1 = vmul.f32 %v652_v61, %v2678_v8  ;;  %4080 = sst [smem:[#allocation57_spill]] %s2782_s6  ;;  %s2784_s14 = sld [smem:[#allocation8 + $0x32]] }
  0xde   : > { %v638_v59 = vadd.f32 %v637_v51, %v634_v3  ;;  %v656_v2 = vstv %s2706_s9  ;;  %v595_v4 = vstv %s1699_s4  ;;  %v598_v12 = vstv %s1700_s19  ;;  %4057 = sst [smem:[#allocation34_spill]] %s2734_s2  ;;  %s2748_s9 = sld [smem:[#allocation12 + $0x1]] }
  0xdf   : > { %v548_v53 = vadd.f32 %v547_v41, %v544_v46  ;;  %v596_v9 = vmul.f32 %v595_v4, %v2586_v56  ;;  %v602_v13 = vstv %s1701_s11  ;;  %v599_v14 = vmul.f32 %v598_v12, %v2604_v5  ;;  %4058 = sst [smem:[#allocation35_spill]] %s2736_s26  ;;  %s2750_s4 = sld [smem:[#allocation8 + $0x21]] }
  0xe0   : > { %v642_v63 = vadd.f32 %v641_v10, %v638_v59  ;;  %v603_v16 = vmul.f32 %v602_v13, %v2622_v20  ;;  %v606_v17 = vstv %s1702_s17  ;;  %v657_v19 = vmul.f32 %v656_v2, %v2682_v15  ;;  %4059 = sst [smem:[#allocation36_spill]] %s2738_s16  ;;  %s2752_s19 = sld [smem:[#allocation8 + $0x22]] }
  0xe1   : > { %v552_v58 = vadd.f32 %v551_v42, %v548_v53  ;;  %v610_v21 = vstv %s1703_s30  ;;  %v600_v22 = vadd.f32 %v599_v14, %v596_v9  ;;  %v607_v23 = vmul.f32 %v606_v17, %v2653_v44  ;;  %4060 = sst [smem:[#allocation37_spill]] %s2740_s29  ;;  %s2754_s11 = sld [smem:[#allocation8 + $0x23]] }
  0xe2   : > { %v646_v6 = vadd.f32 %v645_v60, %v642_v63  ;;  %v614_v26 = vstv %s1704_s8  ;;  %v611_v56 = vmul.f32 %v610_v21, %v2664_v57  ;;  %v618_v29 = vstv %s1705_s13  ;;  %4061 = sst [smem:[#allocation38_spill]] %s2742_s1  ;;  %s2756_s17 = sld [smem:[#allocation9 + $0x8]] }
  0xe3   : > { %v2716_v62 = vadd.f32 %v555_v54, %v552_v58  ;;  %v604_v27 = vadd.f32 %v603_v16, %v600_v22  ;;  %v615_v5 = vmul.f32 %v614_v26, %v2674_v11  ;;  %v622_v20 = vstv %s1706_s20  ;;  %4062 = sst [smem:[#allocation39_spill]] %s2744_s18  ;;  %s2758_s30 = sld [smem:[#allocation8 + $0x25]] }
  0xe4   : > { %v650_v18 = vadd.f32 %v649_v0, %v646_v6  ;;  %v619_v32 = vmul.f32 %v618_v29, %v2678_v8  ;;  %v623_v34 = vmul.f32 %v622_v20, %v2682_v15  ;;  %4063 = sst [smem:[#allocation40_spill]] %s2746_s12  ;;  %s2760_s8 = sld [smem:[#allocation8 + $0x26]]  ;;  %v3898_v57 = vstv %s2734_s2 }
  0xe5   : > { %v608_v30 = vadd.f32 %v607_v23, %v604_v27  ;;  %4064 = sst [smem:[#allocation41_spill]] %s2750_s4  ;;  %s2762_s13 = sld [smem:[#allocation8 + $0x27]]  ;;  %v3893_v11 = vstv %s2736_s26  ;;  %v3894_v8 = vstv %s2738_s16  ;;  %v3895_v15 = vstv %s2740_s29 }
  0xe6   : > { %v654_v24 = vadd.f32 %v653_v1, %v650_v18  ;;  %4065 = sst [smem:[#allocation42_spill]] %s2752_s19  ;;  %s2764_s20 = sld [smem:[#allocation9 + $0x9]]  ;;  %v592_v36 = vstv %s2748_s9  ;;  %v3903_v37 = vstv %s2742_s1  ;;  %v3905_v38 = vstv %s2744_s18 }
  0xe7   : > { %v612_v31 = vadd.f32 %v611_v56, %v608_v30  ;;  %4066 = sst [smem:[#allocation43_spill]] %s2754_s11  ;;  %s2786_s0 = sld [smem:[#allocation8 + $0x33]]  ;;  %v3907_v39 = vstv %s2746_s12  ;;  %v3909_v40 = vstv %s2750_s4  ;;  %v3899_v41 = vstv %s2752_s19 }
  0xe8   : > { %v2727_v28 = vadd.f32 %v657_v19, %v654_v24  ;;  %4067 = sst [smem:[#allocation44_spill]] %s2756_s17  ;;  %s2788_s28 = sld [smem:[#allocation9 + $0xc]]  ;;  %v3913_v42 = vstv %s2754_s11  ;;  %v3997_v43 = vstv %s2756_s17  ;;  %v3911_v49 = vstv %s2766_s5 }
  0xe9   : > { %v616_v33 = vadd.f32 %v615_v5, %v612_v31  ;;  %4068 = sst [smem:[#allocation45_spill]] %s2758_s30  ;;  %s2790_s3 = sld [smem:[#allocation8 + $0x35]]  ;;  %v3910_v45 = vstv %s2758_s30  ;;  %v3901_v50 = vstv %s2768_s10  ;;  %v3915_v51 = vstv %s2770_s23 }
  0xea   : > { %4069 = sst [smem:[#allocation46_spill]] %s2760_s8  ;;  %s2792_s27 = sld [smem:[#allocation8 + $0x36]]  ;;  %v3900_v46 = vstv %s2760_s8  ;;  %v3995_v52 = vstv %s2772_s22  ;;  %v3902_v54 = vstv %s2776_s24  ;;  %v4010_v10 = vstv %s2782_s6 }
  0xeb   : > { %v620_v35 = vadd.f32 %v619_v32, %v616_v33  ;;  %4070 = sst [smem:[#allocation47_spill]] %s2762_s13  ;;  %s2794_s25 = sld [smem:[#allocation8 + $0x37]]  ;;  %v3914_v47 = vstv %s2762_s13  ;;  %v2909_v21 = vadd.f32 %v592_v36, %v2687_v25 }
  0xec   : > { %4071 = sst [smem:[#allocation48_spill]] %s2764_s20  ;;  %s2796_s7 = sld [smem:[#allocation9 + $0xd]]  ;;  %v3996_v48 = vstv %s2764_s20 }
  0xed   : > { %v2732_v44 = vadd.f32 %v623_v34, %v620_v35  ;;  %4081 = sst [smem:[#allocation58_spill]] %s2784_s14  ;;  %s2798_s15 = sld [smem:[#allocation8 + $0x39]] }
  0xee   : > { %4082 = sst [smem:[#allocation59_spill]] %s2786_s0  ;;  %s2800_s21 = sld [smem:[#allocation8 + $0x3a]] }
  0xef   : > { %4083 = sst [smem:[#allocation60_spill]] %s2788_s28  ;;  %s2802_s14 = sld [smem:[#allocation8 + $0x3b]] }
  0xf0   : > { %4084 = sst [smem:[#allocation61_spill]] %s2790_s3  ;;  %s2804_s0 = sld [smem:[#allocation9 + $0xe]] }
  0xf1   : > { %4085 = sst [smem:[#allocation62_spill]] %s2792_s27  ;;  %s2806_s28 = sld [smem:[#allocation8 + $0x3c]] }
  0xf2   : > { %4086 = sst [smem:[#allocation63_spill]] %s2794_s25  ;;  %s2808_s3 = sld [smem:[#allocation8 + $0x3d]] }
  0xf3   : > { %4087 = sst [smem:[#allocation64_spill]] %s2796_s7  ;;  %s2810_s25 = sld [smem:[#allocation8 + $0x3e]] }
  0xf4   : > { %4088 = sst [smem:[#allocation65_spill]] %s2798_s15  ;;  %s2812_s7 = sld [smem:[#allocation8 + $0x3f]] }
  0xf5   : > { %4089 = sst [smem:[#allocation66_spill]] %s2800_s21  ;;  %s2814_s15 = sld [smem:[#allocation9 + $0xf]] }
  0xf6   : > { %4090 = sst [smem:[#allocation67_spill]] %s2802_s14  ;;  %s2816_s21 = sld [smem:[#allocation11 + $0x28]]  ;;  %v3991_v6 = vstv %s2804_s0 }
  0xf7   : > { %4091 = sst [smem:[#allocation68_spill]] %s2804_s0  ;;  %s2818_s14 = sld [smem:[#allocation11 + $0x29]] }
  0xf8   : > { %4092 = sst [smem:[#allocation69_spill]] %s2806_s28  ;;  %s2820_s27 = sld [smem:[#allocation11 + $0x2a]] }
  0xf9   : > { %4093 = sst [smem:[#allocation70_spill]] %s2808_s3  ;;  %s2822_s28 = sld [smem:[#allocation11 + $0x2b]] }
  0xfa   : > { %4094 = sst [smem:[#allocation71_spill]] %s2810_s25  ;;  %s2824_s3 = sld [smem:[#allocation11 + $0x2c]]  ;;  %v3998_v14 = vstv %s2812_s7 }
  0xfb   : > { %4095 = sst [smem:[#allocation72_spill]] %s2812_s7  ;;  %s2826_s25 = sld [smem:[#allocation11 + $0x2d]] }
  0xfc   : > { %4096 = sst [smem:[#allocation73_spill]] %s2814_s15  ;;  %s2842_s26 = sld [smem:[#allocation12]] }
  0xfd   : > { %4097 = sst [smem:[#allocation74_spill]] %s2816_s21  ;;  %s2832_s21 = sld [smem:[#allocation11 + $0x2e]]  ;;  %v3989_v18 = vstv %s2818_s14 }
  0xfe   : > { %4098 = sst [smem:[#allocation75_spill]] %s2818_s14  ;;  %s4107_s29 = sld [smem:[#allocation53_spill]] }
  0xff   : > { %4099 = sst [smem:[#allocation76_spill]] %s2820_s27  ;;  %s2848_s16 = sld [smem:[#allocation11 + $0x20]] }
 0x100   : > { %4100 = sst [smem:[#allocation77_spill]] %s2822_s28  ;;  %s2834_s27 = sld [smem:[#allocation11 + $0x2f]] }
 0x101   : > { %4101 = sst [smem:[#allocation78_spill]] %s2824_s3  ;;  %s4109_s9 = sld [smem:[#allocation55_spill]] }
 0x102   : > { %4102 = sst [smem:[#allocation79_spill]] %s2826_s25  ;;  %s2840_s25 = sld [smem:[#allocation12 + $0x5]] }
 0x103   : > { %4103 = sst [smem:[#allocation80_spill]] %s2832_s21  ;;  %s2850_s1 = sld [smem:[#allocation11 + $0x21]] }
 0x104   : > { %4106 = sst [smem:[#allocation83_spill]] %s2842_s26  ;;  %s4111_s18 = sld [smem:[#allocation56_spill]]  ;;  %v3912_v53 = vstv %s4107_s29 }
 0x105   : > { %4108 = sst [smem:[#allocation84_spill]] %s2848_s16  ;;  %s4112_s12 = sld [smem:[#allocation58_spill]] }
 0x106   : > { %4104 = sst [smem:[#allocation81_spill]] %s2834_s27  ;;  %s2856_s2 = sld [smem:[#allocation11 + $0x22]] }
 0x107   : > { %s4114_s4 = sld [smem:[#allocation59_spill]]  ;;  %s2858_s19 = sld [smem:[#allocation11 + $0x23]]  ;;  %v3916_v55 = vstv %s4109_s9 }
 0x108   : > { %4105 = sst [smem:[#allocation82_spill]] %s2840_s25  ;;  %s4116_s11 = sld [smem:[#allocation60_spill]] }
 0x109   : > { %4110 = sst [smem:[#allocation85_spill]] %s2850_s1  ;;  %s4118_s16 = sld [smem:[#allocation62_spill]] }
 0x10a   : > { %s4117_s17 = sld [smem:[#allocation61_spill]]  ;;  %s2864_s1 = sld [smem:[#allocation11 + $0x24]]  ;;  %v3994_v3 = vstv %s4111_s18 }
 0x10b   : > { %s4120_s30 = sld [smem:[#allocation63_spill]]  ;;  %s2866_s8 = sld [smem:[#allocation11 + $0x25]]  ;;  %v3904_v58 = vstv %s4112_s12 }
 0x10c   : > { %4113 = sst [smem:[#allocation86_spill]] %s2856_s2  ;;  %s4122_s13 = sld [smem:[#allocation64_spill]] }
 0x10d   : > { %4115 = sst [smem:[#allocation87_spill]] %s2858_s19  ;;  %s4123_s20 = sld [smem:[#allocation65_spill]]  ;;  %v4002_v7 = vstv %s4114_s4 }
 0x10e   : > { %s4124_s2 = sld [smem:[#allocation66_spill]]  ;;  %s2872_s19 = sld [smem:[#allocation11 + $0x26]]  ;;  %v3993_v59 = vstv %s4116_s11 }
 0x10f   : > { %s4126_s5 = sld [smem:[#allocation67_spill]]  ;;  %s2874_s10 = sld [smem:[#allocation11 + $0x27]]  ;;  %v3906_v61 = vstv %s4118_s16 }
 0x110   : > { %4119 = sst [smem:[#allocation88_spill]] %s2864_s1  ;;  %s4128_s22 = sld [smem:[#allocation69_spill]]  ;;  %v4009_v60 = vstv %s4117_s17 }
 0x111   : > { %4121 = sst [smem:[#allocation89_spill]] %s2866_s8  ;;  %s4129_s23 = sld [smem:[#allocation70_spill]]  ;;  %v4001_v63 = vstv %s4120_s30 }
 0x112   : > { %s2880_s8 = sld [smem:[#allocation12 + $0x4]]  ;;  %s4131_s29 = sld [smem:[#allocation71_spill]]  ;;  %v3992_v0 = vstv %s4122_s13 }
 0x113   : > { %s2882_s24 = sld [smem:[#allocation12 + $0x3]]  ;;  %s4133_s18 = sld [smem:[#allocation74_spill]]  ;;  %v4006_v1 = vstv %s4123_s20 }
 0x114   : > { %4125 = sst [smem:[#allocation90_spill]] %s2872_s19  ;;  %s4134_s9 = sld [smem:[#allocation76_spill]]  ;;  %v3908_v2 = vstv %s4124_s2 }
 0x115   : > { %4127 = sst [smem:[#allocation91_spill]] %s2874_s10  ;;  %s2888_s6 = sld [smem:[#allocation11 + $0x38]]  ;;  %v3999_v4 = vstv %s4126_s5 }
 0x116   : > { %s2890_s4 = sld [smem:[#allocation11 + $0x39]]  ;;  %s2896_s17 = sld [smem:[#allocation11 + $0x3a]]  ;;  %v4005_v9 = vstv %s4128_s22 }
 0x117   : > { %s2898_s30 = sld [smem:[#allocation11 + $0x3b]]  ;;  %s4140_s13 = sld [smem:[#allocation84_spill]]  ;;  %v4004_v12 = vstv %s4129_s23 }
 0x118   : > { %4130 = sst [smem:[#allocation92_spill]] %s2880_s8  ;;  %s4141_s16 = sld [smem:[#allocation85_spill]]  ;;  %v4000_v13 = vstv %s4131_s29 }
 0x119   : > { %4132 = sst [smem:[#allocation93_spill]] %s2882_s24  ;;  %v3990_v17 = vstv %s4133_s18  ;;  %s2997_s25 = sld [smem:[#allocation11 + $0x3c]] }
 0x11a   : > { %v3988_v19 = vstv %s4134_s9  ;;  %s2999_s28 = sld [smem:[#allocation11 + $0x3d]]  ;;  %s3001_s21 = sld [smem:[#allocation11 + $0x3e]] }
 0x11b   : > { %4135 = sst [smem:[#allocation94_spill]] %s2888_s6  ;;  %s3005_s9 = sld [smem:[#allocation11 + $0x3f]] }
 0x11c   : > { %4136 = sst [smem:[#allocation95_spill]] %s2890_s4  ;;  %s3007_s12 = sld [smem:[#allocation11 + $0x30]] }
 0x11d   : > { %4138 = sst [smem:[#allocation96_spill]] %s2896_s17  ;;  %s3019_s3 = sld [smem:[#allocation11 + $0x31]] }
 0x11e   : > { %4139 = sst [smem:[#allocation97_spill]] %s2898_s30  ;;  %s3029_s30 = sld [smem:[#allocation11 + $0x32]] }
 0x11f   : > { %4174 = sst [smem:[#allocation98_spill]] %s2997_s25  ;;  %s4186_s10 = sld [smem:[#allocation77_spill]] }
 0x120   : > { %4176 = sst [smem:[#allocation99_spill]] %s2999_s28  ;;  %s4187_s5 = sld [smem:[#allocation86_spill]] }
 0x121   : > { %4177 = sst [smem:[#allocation100_spill]] %s3001_s21  ;;  %s4188_s20 = sld [smem:[#allocation73_spill]] }
 0x122   : > { %4179 = sst [smem:[#allocation101_spill]] %s3005_s9  ;;  %s4190_s18 = sld [smem:[#allocation78_spill]] }
 0x123   : > { %4181 = sst [smem:[#allocation102_spill]] %s3007_s12  ;;  %s3051_s14 = sld [smem:[#allocation11 + $0x33]] }
 0x124   : > { %4183 = sst [smem:[#allocation103_spill]] %s3019_s3  ;;  %s3212_s2 = sld [smem:[#allocation9 + $0x10]] }
 0x125   : > { %4185 = sst [smem:[#allocation104_spill]] %s3029_s30  ;;  %s4193_s22 = sld [smem:[#allocation87_spill]] }
 0x126   : > { %s4195_s11 = sld [smem:[#allocation79_spill]]  ;;  %s3219_s7 = sld [smem:[#allocation9 + $0x13]] }
 0x127   : > { %s3223_s29 = sld [smem:[#allocation8 + $0x51]]  ;;  %s3227_s23 = sld [smem:[#allocation8 + $0x52]] }
 0x128   : > { %s3229_s19 = sld [smem:[#allocation8 + $0x53]]  ;;  %s3231_s27 = sld [smem:[#allocation9 + $0x14]] }
 0x129   : > { %4191 = sst [smem:[#allocation105_spill]] %s3051_s14  ;;  %s4255_s15 = sld [smem:[#allocation32_spill]] }
 0x12a   : > { %4246 = sst [smem:[#allocation125_spill]] %s3212_s2  ;;  %s3233_s26 = sld [smem:[#allocation8 + $0x54]] }
 0x12b   : > { %s4256_s0 = sld [smem:[#allocation33_spill]]  ;;  %s3235_s8 = sld [smem:[#allocation8 + $0x55]] }
 0x12c   : > { %4249 = sst [smem:[#allocation128_spill]] %s3219_s7  ;;  %s3237_s24 = sld [smem:[#allocation8 + $0x56]] }
 0x12d   : > { %4251 = sst [smem:[#allocation130_spill]] %s3223_s29  ;;  %s3239_s29 = sld [smem:[#allocation8 + $0x57]] }
 0x12e   : > { %4252 = sst [smem:[#allocation131_spill]] %s3229_s19  ;;  %s3243_s19 = sld [smem:[#allocation8 + $0x58]] }
 0x12f   : > { %4253 = sst [smem:[#allocation132_spill]] %s3231_s27  ;;  %s3247_s27 = sld [smem:[#allocation8 + $0x5a]] }
 0x130   : > { %4254 = sst [smem:[#allocation133_spill]] %s3233_s26  ;;  %s3245_s26 = sld [smem:[#allocation8 + $0x59]] }
 0x131   : > { %4257 = sst [smem:[#allocation32_spill]] %s3235_s8 }
 0x132   : > { %4258 = sst [smem:[#allocation33_spill]] %s3237_s24  ;;  %s3249_s8 = sld [smem:[#allocation8 + $0x5b]] }
 0x133   : > { %4259 = sst [smem:[#allocation134_spill]] %s3239_s29  ;;  %s3251_s29 = sld [smem:[#allocation9 + $0x16]] }
 0x134   : > { %s3253_s24 = sld [smem:[#allocation8 + $0x5c]] }
 0x139   : > { %4260 = sst [smem:[#allocation135_spill]] %s3251_s29  ;;  %s3285_s29 = sld [smem:[#allocation8 + $0x5e]] }
 0x13a   : > { %4261 = sst [smem:[#allocation136_spill]] %s3253_s24  ;;  %s3283_s24 = sld [smem:[#allocation8 + $0x5d]] }
 0x13e   : > { %v663_v31 = vpop.xlane.xlu0 %662  ;;  %v670_v36 = vpop.xlane.xlu1 %669 }
 0x13f   : > { %v665_v29 = vmul.f32 0.0078125, %v663_v31  ;;  %v2929_v24 = vmul.f32 0.0078125, %v670_v36  ;;  %4263 = sst [smem:[#allocation138_spill]] %s3285_s29  ;;  %s3297_s29 = sld [smem:[#allocation11 + $0x40]] }
 0x140   : > { %4262 = sst [smem:[#allocation137_spill]] %s3283_s24  ;;  %s3299_s24 = sld [smem:[#allocation11 + $0x41]] }
 0x141   : > { %v677_v34 = vmul.f32 %v3898_v57, %v665_v29  ;;  %v696_v35 = vmul.f32 %v3893_v11, %v665_v29  ;;  %v715_v31 = vmul.f32 %v3894_v8, %v665_v29  ;;  %v734_v27 = vmul.f32 %v3895_v15, %v665_v29 }
 0x142   : > { %v667_v36 = vpop.xlane.xlu0 %666  ;;  %v684_v56 = vmul.f32 %v3899_v41, %v2929_v24  ;;  %v703_v23 = vmul.f32 %v3900_v46, %v2929_v24  ;;  %v722_v11 = vmul.f32 %v3901_v50, %v2929_v24  ;;  %v741_v8 = vmul.f32 %v3902_v54, %v2929_v24  ;;  %v673_v15 = vpop.xlane.xlu1 %672 }
 0x143   : > { %v668_v57 = vmul.f32 0.0078125, %v667_v36  ;;  %v753_v33 = vmul.f32 %v3903_v37, %v665_v29  ;;  %v760_v41 = vmul.f32 %v3904_v58, %v2929_v24  ;;  %v772_v32 = vmul.f32 %v3905_v38, %v665_v29 }
 0x144   : > { %v674_v46 = vmul.f32 0.0078125, %v673_v15  ;;  %v779_v50 = vmul.f32 %v3906_v61, %v2929_v24  ;;  %v791_v25 = vmul.f32 %v3907_v39, %v665_v29  ;;  %v798_v54 = vmul.f32 %v3908_v2, %v2929_v24 }
 0x145   : > { %v680_v36 = vmul.f32 %v3909_v40, %v668_v57  ;;  %v699_v37 = vmul.f32 %v3910_v45, %v668_v57  ;;  %v718_v58 = vmul.f32 %v3911_v49, %v668_v57  ;;  %v737_v15 = vmul.f32 %v3912_v53, %v668_v57 }
 0x146   : > { %v688_v38 = vmul.f32 %v3913_v42, %v674_v46  ;;  %v707_v61 = vmul.f32 %v3914_v47, %v674_v46  ;;  %v726_v26 = vmul.f32 %v3915_v51, %v674_v46  ;;  %v745_v39 = vmul.f32 %v3916_v55, %v674_v46  ;;  %4265 = sst [smem:[#allocation140_spill]] %s3299_s24 }
 0x147   : > { %v681_v2 = vadd.f32 %v680_v36, %v677_v34  ;;  %v700_v16 = vadd.f32 %v699_v37, %v696_v35  ;;  %v719_v20 = vadd.f32 %v718_v58, %v715_v31  ;;  %v738_v40 = vadd.f32 %v737_v15, %v734_v27 }
 0x148   : > { %v756_v45 = vmul.f32 %v4010_v10, %v668_v57  ;;  %v764_v49 = vmul.f32 %v4002_v7, %v674_v46  ;;  %v775_v53 = vmul.f32 %v4009_v60, %v668_v57  ;;  %v783_v42 = vmul.f32 %v4001_v63, %v674_v46 }
 0x149   : > { %v685_v22 = vadd.f32 %v684_v56, %v681_v2  ;;  %v704_v47 = vadd.f32 %v703_v23, %v700_v16  ;;  %v723_v5 = vadd.f32 %v722_v11, %v719_v20  ;;  %v742_v51 = vadd.f32 %v741_v8, %v738_v40 }
 0x14a   : > { %v757_v30 = vadd.f32 %v756_v45, %v753_v33  ;;  %v776_v55 = vadd.f32 %v775_v53, %v772_v32  ;;  %v794_v37 = vmul.f32 %v4006_v1, %v668_v57  ;;  %v802_v58 = vmul.f32 %v3999_v4, %v674_v46 }
 0x14b   : > { %v689_v27 = vadd.f32 %v688_v38, %v685_v22  ;;  %v708_v2 = vadd.f32 %v707_v61, %v704_v47  ;;  %v727_v16 = vadd.f32 %v726_v26, %v723_v5  ;;  %v746_v11 = vadd.f32 %v745_v39, %v742_v51 }
 0x14c   : > { %v761_v8 = vadd.f32 %v760_v41, %v757_v30  ;;  %v780_v40 = vadd.f32 %v779_v50, %v776_v55  ;;  %v795_v45 = vadd.f32 %v794_v37, %v791_v25  ;;  %v810_v53 = vmul.f32 %v4005_v9, %v665_v29 }
 0x14d   : > { %v692_v23 = vadd.f32 %v3997_v43, %v689_v27  ;;  %v711_v38 = vadd.f32 %v3996_v48, %v708_v2  ;;  %v730_v47 = vadd.f32 %v3995_v52, %v727_v16  ;;  %v749_v39 = vadd.f32 %v3994_v3, %v746_v11 }
 0x14e   : > { %v765_v41 = vadd.f32 %v764_v49, %v761_v8  ;;  %v784_v50 = vadd.f32 %v783_v42, %v780_v40  ;;  %v799_v51 = vadd.f32 %v798_v54, %v795_v45  ;;  %v813_v55 = vmul.f32 %v4004_v12, %v668_v57 }
 0x14f   : > { %v693_v61 = vmax.f32 %v692_v23, 0.0  ;;  %v712_v22 = vmax.f32 %v711_v38, 0.0  ;;  %v3021_v26 = vmax.f32 %v730_v47, 0.0  ;;  %v3023_v56 = vmax.f32 %v749_v39, 0.0 }
 0x150   : > { %v768_v49 = vadd.f32 %v3993_v59, %v765_v41  ;;  %v787_v42 = vadd.f32 %v3992_v0, %v784_v50  ;;  %v803_v54 = vadd.f32 %v802_v58, %v799_v51  ;;  %v814_v57 = vadd.f32 %v813_v55, %v810_v53 }
 0x151   : > { %v817_v29 = vmul.f32 %v4000_v13, %v2929_v24  ;;  %v821_v30 = vmul.f32 %v3998_v14, %v674_v46  ;;  %v863_v5 = vmul.f32 %v3990_v17, %v693_v61  ;;  %v866_v20 = vmul.f32 %v3989_v18, %v712_v22 }
 0x152   : > { %v3040_v25 = vmax.f32 %v768_v49, 0.0  ;;  %v806_v32 = vadd.f32 %v3991_v6, %v803_v54  ;;  %v3981_v33 = vstv %s2997_s25  ;;  %v3977_v34 = vstv %s2999_s28  ;;  %s3141_s25 = sld [smem:[#allocation12 + $0x6]]  ;;  %s4227_s28 = sld [smem:[#allocation92_spill]] }
 0x153   : > { %v818_v35 = vadd.f32 %v817_v29, %v814_v57  ;;  %v867_v31 = vadd.f32 %v866_v20, %v863_v5  ;;  %v870_v24 = vmul.f32 %v3988_v19, %v3021_v26  ;;  %v4189_v46 = vstv %s4140_s13  ;;  %s4202_s13 = sld [smem:[#allocation89_spill]] }
 0x154   : > { %v829_v36 = vmul.f32 %v4189_v46, %v693_v61  ;;  %v4192_v15 = vstv %s4141_s16  ;;  %v3970_v58 = vstv %s3001_s21  ;;  %v3969_v27 = vstv %s3005_s9  ;;  %s3076_s16 = sld [smem:[#allocation11 + $0x34]]  ;;  %s3161_s21 = sld [smem:[#allocation8 + $0x43]] }
 0x155   : > { %v832_v37 = vmul.f32 %v4192_v15, %v712_v22  ;;  %v3987_v2 = vstv %s3007_s12  ;;  %v3058_v16 = vmax.f32 %v787_v42, 0.0  ;;  %v822_v11 = vadd.f32 %v821_v30, %v818_v35  ;;  %s3186_s9 = sld [smem:[#allocation8 + $0x48]]  ;;  %s3200_s12 = sld [smem:[#allocation8 + $0x4d]] }
 0x156   : > { %v871_v8 = vadd.f32 %v870_v24, %v867_v31  ;;  %v4194_v40 = vstv %s4186_s10  ;;  %v3063_v53 = vmax.f32 %v806_v32, 0.0  ;;  %v4196_v38 = vstv %s4187_s5  ;;  %s4200_s10 = sld [smem:[#allocation80_spill]]  ;;  %s4205_s5 = sld [smem:[#allocation97_spill]] }
 0x157   : > { %v874_v45 = vmul.f32 %v4194_v40, %v3023_v56  ;;  %v833_v23 = vadd.f32 %v832_v37, %v829_v36  ;;  %v836_v47 = vmul.f32 %v4196_v38, %v3021_v26  ;;  %v3986_v39 = vstv %s3019_s3  ;;  %s3195_s3 = sld [smem:[#allocation8 + $0x4b]] }
 0x158   : > { %v4197_v41 = vstv %s4188_s20  ;;  %v4198_v55 = vstv %s4190_s18  ;;  %v4199_v42 = vstv %s2888_s6  ;;  %v4203_v29 = vstv %s4193_s22  ;;  %s4208_s18 = sld [smem:[#allocation81_spill]]  ;;  %s3092_s6 = sld [smem:[#allocation11 + $0x35]] }
 0x159   : > { %v825_v50 = vadd.f32 %v4197_v41, %v822_v11  ;;  %v875_v51 = vadd.f32 %v874_v45, %v871_v8  ;;  %v878_v49 = vmul.f32 %v4198_v55, %v3040_v25  ;;  %v931_v54 = vmul.f32 %v4199_v42, %v693_v61  ;;  %s4210_s22 = sld [smem:[#allocation90_spill]]  ;;  %s3209_s20 = sld [smem:[#allocation8 + $0x4f]] }
 0x15a   : > { %4201 = sst [smem:[#allocation106_spill]] %s3076_s16  ;;  %v837_v57 = vadd.f32 %v836_v47, %v833_v23  ;;  %v840_v30 = vmul.f32 %v4203_v29, %v3023_v56  ;;  %v4204_v5 = vstv %s2890_s4  ;;  %v3985_v32 = vstv %s3029_s30  ;;  %s4215_s4 = sld [smem:[#allocation91_spill]] }
 0x15b   : > { %v934_v20 = vmul.f32 %v4204_v5, %v712_v22  ;;  %v3084_v35 = vmax.f32 %v825_v50, 0.0  ;;  %v879_v31 = vadd.f32 %v878_v49, %v875_v51  ;;  %v4206_v24 = vstv %s4195_s11  ;;  %s3106_s11 = sld [smem:[#allocation11 + $0x36]]  ;;  %4232 = sst [smem:[#allocation113_spill]] %s3161_s21 }
 0x15c   : > { %v882_v46 = vmul.f32 %v4206_v24, %v3058_v16  ;;  %v4207_v36 = vstv %s2864_s1  ;;  %v841_v37 = vadd.f32 %v840_v30, %v837_v57  ;;  %v4211_v8 = vstv %s2896_s17  ;;  %s4220_s17 = sld [smem:[#allocation82_spill]]  ;;  %s3179_s1 = sld [smem:[#allocation8 + $0x47]] }
 0x15d   : > { %v844_v15 = vmul.f32 %v4207_v36, %v3040_v25  ;;  %v935_v11 = vadd.f32 %v934_v20, %v931_v54  ;;  %v938_v40 = vmul.f32 %v4211_v8, %v3021_v26  ;;  %v897_v45 = vmul.f32 %v3987_v2, %v693_v61  ;;  %s3170_s30 = sld [smem:[#allocation8 + $0x45]]  ;;  %4239 = sst [smem:[#allocation118_spill]] %s3186_s9 }
 0x15e   : > { %4209 = sst [smem:[#allocation107_spill]] %s3092_s6  ;;  %v883_v23 = vadd.f32 %v882_v46, %v879_v31  ;;  %v4212_v38 = vstv %s4200_s10  ;;  %v4213_v41 = vstv %s4202_s13  ;;  %v3984_v51 = vstv %s3051_s14  ;;  %s3122_s10 = sld [smem:[#allocation12 + $0x7]] }
 0x15f   : > { %v886_v47 = vmul.f32 %v4212_v38, %v3063_v53  ;;  %v848_v50 = vmul.f32 %v4213_v41, %v3058_v16  ;;  %v845_v55 = vadd.f32 %v844_v15, %v841_v37  ;;  %v939_v49 = vadd.f32 %v938_v40, %v935_v11  ;;  %s3124_s13 = sld [smem:[#allocation11 + $0x37]]  ;;  %s3168_s14 = sld [smem:[#allocation8 + $0x44]] }
 0x160   : > { %v4216_v42 = vstv %s4205_s5  ;;  %v900_v61 = vmul.f32 %v3986_v39, %v712_v22  ;;  %v4217_v29 = vstv %s4208_s18  ;;  %v4218_v5 = vstv %s4210_s22  ;;  %s4222_s5 = sld [smem:[#allocation83_spill]]  ;;  %s3135_s18 = sld [smem:[#allocation12 + $0x2]] }
 0x161   : > { %4214 = sst [smem:[#allocation108_spill]] %s3106_s11  ;;  %v942_v54 = vmul.f32 %v4216_v42, %v3023_v56  ;;  %v887_v57 = vadd.f32 %v886_v47, %v883_v23  ;;  %v890_v30 = vmul.f32 %v4217_v29, %v3084_v35  ;;  %v852_v20 = vmul.f32 %v4218_v5, %v3063_v53  ;;  %s3154_s22 = sld [smem:[#allocation8 + $0x41]] }
 0x162   : > { %v946_v31 = vmul.f32 %v3981_v33, %v3040_v25  ;;  %v849_v24 = vadd.f32 %v848_v50, %v845_v55  ;;  %v901_v46 = vadd.f32 %v900_v61, %v897_v45  ;;  %v904_v36 = vmul.f32 %v3985_v32, %v3021_v26  ;;  %4224 = sst [smem:[#allocation83_spill]] %s3141_s25 }
 0x163   : > { %v943_v22 = vadd.f32 %v942_v54, %v939_v49  ;;  %v891_v15 = vadd.f32 %v890_v30, %v887_v57  ;;  %v4223_v37 = vstv %s4215_s4  ;;  %v950_v8 = vmul.f32 %v3977_v34, %v3058_v16  ;;  %s3152_s4 = sld [smem:[#allocation8 + $0x40]]  ;;  %4234 = sst [smem:[#allocation115_spill]] %s3170_s30 }
 0x164   : > { %4219 = sst [smem:[#allocation109_spill]] %s3122_s10  ;;  %v856_v11 = vmul.f32 %v4223_v37, %v3084_v35  ;;  %v3983_v40 = vstv %s3076_s16  ;;  %v853_v23 = vadd.f32 %v852_v20, %v849_v24  ;;  %v905_v47 = vadd.f32 %v904_v36, %v901_v46  ;;  %s3177_s16 = sld [smem:[#allocation8 + $0x46]] }
 0x165   : > { %4221 = sst [smem:[#allocation110_spill]] %s3124_s13  ;;  %v947_v38 = vadd.f32 %v946_v31, %v943_v22  ;;  %v908_v45 = vmul.f32 %v3984_v51, %v3023_v56  ;;  %v4225_v26 = vstv %s4220_s17  ;;  %v954_v49 = vmul.f32 %v3970_v58, %v3063_v53  ;;  %s4230_s17 = sld [smem:[#allocation93_spill]] }
 0x166   : > { %v894_v41 = vadd.f32 %v4225_v26, %v891_v15  ;;  %v4226_v50 = vstv %s4222_s5  ;;  %v3982_v42 = vstv %s3092_s6  ;;  %v857_v54 = vadd.f32 %v856_v11, %v853_v23  ;;  %s3159_s5 = sld [smem:[#allocation8 + $0x42]]  ;;  %4233 = sst [smem:[#allocation114_spill]] %s3168_s14 }
 0x167   : > { %v559_v55 = vadd.f32 %v4226_v50, %v2716_v62  ;;  %4229 = sst [smem:[#allocation112_spill]] %s3154_s22  ;;  %v951_v56 = vadd.f32 %v950_v8, %v947_v38  ;;  %v909_v61 = vadd.f32 %v908_v45, %v905_v47  ;;  %v912_v57 = vmul.f32 %v3983_v40, %v3040_v25  ;;  %s3193_s6 = sld [smem:[#allocation8 + $0x4a]] }
 0x168   : > { %v972_v62 = vadd.f32 %v894_v41, %v2909_v21  ;;  %v958_v29 = vmul.f32 %v3969_v27, %v3084_v35  ;;  %v3980_v30 = vstv %s3106_s11  ;;  %v4235_v5 = vstv %s4227_s28  ;;  %4237 = sst [smem:[#allocation117_spill]] %s3179_s1  ;;  %s3188_s28 = sld [smem:[#allocation8 + $0x49]] }
 0x169   : > { %4228 = sst [smem:[#allocation111_spill]] %s3152_s4  ;;  %v860_v20 = vadd.f32 %v4235_v5, %v857_v54  ;;  %v955_v25 = vadd.f32 %v954_v49, %v951_v56  ;;  %v913_v31 = vadd.f32 %v912_v57, %v909_v61  ;;  %v916_v24 = vmul.f32 %v3982_v42, %v3058_v16  ;;  %s3207_s11 = sld [smem:[#allocation8 + $0x4e]]  ;;  %v2009_v61 = vld [vmem:[%s4255_s15 + $0x8] sm:$0xff]  ;;  %v3264_v5 = vld [vmem:[%s4256_s0] sm:$0xff] }
 0x16a   : > { %4236 = sst [smem:[#allocation116_spill]] %s3177_s16  ;;  %v1794_v21 = vmul.f32 -1.442695, %v972_v62  ;;  %v3967_v36 = vstv %s3122_s10  ;;  %v3975_v15 = vstv %s3124_s13  ;;  %v920_v8 = vmul.f32 %v3980_v30, %v3063_v53  ;;  %s3217_s10 = sld [smem:[#allocation9 + $0x12]]  ;;  %v3257_v57 = vld [vmem:[%s4256_s0 + $0x8] sm:$0xff] }
 0x16b   : > { %v4238_v22 = vstv %s4230_s17  ;;  %v963_v37 = vadd.f32 %v860_v20, %v559_v55  ;;  %v959_v16 = vadd.f32 %v958_v29, %v955_v25  ;;  %v917_v11 = vadd.f32 %v916_v24, %v913_v31  ;;  %4242 = sst [smem:[#allocation121_spill]] %s3195_s3  ;;  %s3221_s13 = sld [smem:[#allocation8 + $0x50]]  ;;  %v2011_v29 = vld [vmem:[%s4255_s15] sm:$0xff]  ;;  %v2013_v25 = vld [vmem:[%s4255_s15 + $0x18] sm:$0xff] }
 0x16c   : > { %4231 = sst [smem:[#allocation93_spill]] %s3159_s5  ;;  %v661_v46 = vadd.f32 %v4238_v22, %v2727_v28  ;;  %1977 = vpow2.f32 %v1794_v21  ;;  %v626_v28 = vstv %s3135_s18  ;;  %s3198_s17 = sld [smem:[#allocation8 + $0x4c]]  ;;  %v924_v45 = vmul.f32 %v3975_v15, %v3084_v35  ;;  %v3271_v31 = vld [vmem:[%s4256_s0 + $0x18] sm:$0xff]  ;;  %v2015_v21 = vld [vmem:[%s4255_s15 + $0x10] sm:$0xff] }
 0x16d   : > { %4241 = sst [smem:[#allocation120_spill]] %s3193_s6  ;;  %v1793_v23 = vmul.f32 -1.442695, %v963_v37  ;;  %v962_v38 = vadd.f32 %v3967_v36, %v959_v16  ;;  %v921_v47 = vadd.f32 %v920_v8, %v917_v11  ;;  %v3968_v53 = vstv %s3141_s25  ;;  %s3214_s18 = sld [smem:[#allocation9 + $0x11]]  ;;  %v3278_v22 = vld [vmem:[%s4256_s0 + $0x10] sm:$0xff] }
 0x16e   : > { %4240 = sst [smem:[#allocation119_spill]] %s3188_s28  ;;  %v627_v41 = vadd.f32 %v626_v28, %v2732_v44  ;;  %s3241_s25 = sld [smem:[#allocation9 + $0x15]]  ;;  %v3260_v62 = vsub.f32 %v2009_v61, %v3257_v57  ;;  %v3267_v20 = vsub.f32 %v2011_v29, %v3264_v5  ;;  %v3274_v24 = vsub.f32 %v2013_v25, %v3271_v31 }
 0x16f   : > { %4244 = sst [smem:[#allocation123_spill]] %s3207_s11  ;;  %1979 = vpow2.f32 %v1793_v23  ;;  %v990_v26 = vadd.f32 %v962_v38, %v661_v46  ;;  %v925_v50 = vadd.f32 %v924_v45, %v921_v47  ;;  %v3281_v46 = vsub.f32 %v2015_v21, %v3278_v22  ;;  %s3290_s15 = sld [smem:[#allocation8 + $0x5f]] }
 0x170   : > { %4245 = sst [smem:[#allocation124_spill]] %s3209_s20  ;;  %v1000_v16 = vstv %s3152_s4  ;;  %v1003_v11 = vstv %s3154_s22  ;;  %v1007_v8 = vstv %s3159_s5  ;;  %v1011_v23 = vstv %s3161_s21  ;;  %s3305_s5 = sld [smem:[#allocation11 + $0x42]] }
 0x171   : > { %4248 = sst [smem:[#allocation127_spill]] %s3217_s10  ;;  %v1796_v35 = vmul.f32 -1.442695, %v990_v26  ;;  %v928_v55 = vadd.f32 %v3968_v53, %v925_v50  ;;  %s3292_s0 = sld [smem:[#allocation9 + $0x17]]  ;;  %v1019_v38 = vstv %s3168_s14  ;;  %v1022_v47 = vstv %s3170_s30 }
 0x172   : > { %4243 = sst [smem:[#allocation122_spill]] %s3198_s17  ;;  %v1026_v45 = vstv %s3177_s16  ;;  %v1030_v26 = vstv %s3179_s1  ;;  %v1041_v50 = vstv %s3188_s28  ;;  %s3307_s4 = sld [smem:[#allocation11 + $0x43]]  ;;  %v1064_v61 = vstv %s3207_s11 }
 0x173   : > { %4247 = sst [smem:[#allocation126_spill]] %s3214_s18  ;;  %1981 = vpow2.f32 %v1796_v35  ;;  %v981_v44 = vadd.f32 %v928_v55, %v627_v41  ;;  %v1038_v41 = vstv %s3186_s9  ;;  %v1045_v35 = vstv %s3193_s6  ;;  %s3312_s21 = sld [smem:[#allocation11 + $0x44]] }
 0x174   : > { %4250 = sst [smem:[#allocation129_spill]] %s3221_s13  ;;  %v1049_v55 = vstv %s3195_s3  ;;  %s4269_s14 = sld [smem:[#allocation130_spill]]  ;;  %v1068_v29 = vstv %s3209_s20  ;;  %v1034_v21 = vstv %s3214_s18  ;;  %v1076_v36 = vstv %s3221_s13 }
 0x175   : > { %v1795_v49 = vmul.f32 -1.442695, %v981_v44  ;;  %v1057_v44 = vstv %s3198_s17  ;;  %s3314_s16 = sld [smem:[#allocation11 + $0x45]]  ;;  %s4271_s1 = sld [smem:[#allocation131_spill]]  ;;  %v1083_v27 = vstv %s3227_s23  ;;  %v1110_v40 = vstv %s3241_s25 }
 0x176   : > { %v1978_v54 = vpop.eup %1977  ;;  %4266 = sst [smem:[#allocation141_spill]] %s3305_s5  ;;  %s4272_s9 = sld [smem:[#allocation132_spill]]  ;;  %v1117_v32 = vstv %s3245_s26  ;;  %v1121_v39 = vstv %s3247_s27  ;;  %v1125_v2 = vstv %s3249_s8  ;;  %v1144_v3 = vstv %s3290_s15 }
 0x177   : > { %v976_v56 = vadd.f32 1.0, %v1978_v54  ;;  %1983 = vpow2.f32 %v1795_v49  ;;  %4264 = sst [smem:[#allocation139_spill]] %s3292_s0  ;;  %v1015_v54 = vstv %s3212_s2  ;;  %s4274_s30 = sld [smem:[#allocation133_spill]]  ;;  %v1152_v52 = vstv %s3297_s29 }
 0x178   : > { %4267 = sst [smem:[#allocation142_spill]] %s3307_s4  ;;  %s3320_s28 = sld [smem:[#allocation11 + $0x46]]  ;;  %v1155_v48 = vstv %s3299_s24 }
 0x179   : > { %v1980_v37 = vpop.eup %1979  ;;  %1985 = vrcp.f32 %v976_v56  ;;  %4268 = sst [smem:[#allocation143_spill]] %s3312_s21  ;;  %v1060_v56 = vstv %s3200_s12  ;;  %s3322_s6 = sld [smem:[#allocation11 + $0x47]] }
 0x17a   : > { %v967_v28 = vadd.f32 1.0, %v1980_v37  ;;  %s4276_s3 = sld [smem:[#allocation32_spill]]  ;;  %v1053_v37 = vstv %s3217_s10  ;;  %s4277_s17 = sld [smem:[#allocation33_spill]]  ;;  %v1079_v53 = vstv %s4269_s14 }
 0x17b   : > { %4270 = sst [smem:[#allocation130_spill]] %s3314_s16  ;;  %s3327_s22 = sld [smem:[#allocation11 + $0x48]]  ;;  %v1087_v58 = vstv %s4271_s1 }
 0x17c   : > { %1987 = vrcp.f32 %v967_v28  ;;  %v1072_v28 = vstv %s3219_s7  ;;  %s4278_s16 = sld [smem:[#allocation134_spill]]  ;;  %s3335_s2 = sld [smem:[#allocation11 + $0x4a]] }
 0x17d   : > { %v1982_v49 = vpop.eup %1981  ;;  %s3329_s21 = sld [smem:[#allocation11 + $0x49]]  ;;  %s3337_s18 = sld [smem:[#allocation11 + $0x4b]]  ;;  %v1095_v15 = vstv %s4274_s30 }
 0x17e   : > { %4273 = sst [smem:[#allocation131_spill]] %s3320_s28  ;;  %v994_v25 = vadd.f32 1.0, %v1982_v49  ;;  %s4279_s7 = sld [smem:[#allocation135_spill]]  ;;  %v1091_v49 = vstv %s4272_s9 }
 0x17f   : > { %4275 = sst [smem:[#allocation132_spill]] %s3322_s6  ;;  %s4280_s10 = sld [smem:[#allocation136_spill]] }
 0x180   : > { %1989 = vrcp.f32 %v994_v25  ;;  %s4281_s11 = sld [smem:[#allocation137_spill]]  ;;  %v1098_v34 = vstv %s4276_s3  ;;  %s4282_s20 = sld [smem:[#allocation138_spill]]  ;;  %v1102_v33 = vstv %s4277_s17  ;;  %v1114_v25 = vstv %s3243_s19 }
 0x181   : > { %s3342_s13 = sld [smem:[#allocation11 + $0x4c]]  ;;  %s3344_s14 = sld [smem:[#allocation11 + $0x4d]]  ;;  %v1984_v30 = vpop.eup %1983 }
 0x182   : > { %v1106_v42 = vstv %s4278_s16  ;;  %v985_v51 = vadd.f32 1.0, %v1984_v30  ;;  %v1148_v30 = vstv %s3292_s0  ;;  %s3374_s4 = sld [smem:[#allocation11 + $0x4f]]  ;;  %s3376_s5 = sld [smem:[#allocation11 + $0x50]] }
 0x183   : > { %v1986_v19 = vpop.eup %1985  ;;  %s3382_s24 = sld [smem:[#allocation11 + $0x51]]  ;;  %s3429_s19 = sld [smem:[#allocation11 + $0x52]] }
 0x184   : > { %v1129_v18 = vstv %s4279_s7  ;;  %v979_v59 = vmul.f32 %v1986_v19, %v3260_v62  ;;  %1991 = vrcp.f32 %v985_v51  ;;  %s3431_s12 = sld [smem:[#allocation11 + $0x53]]  ;;  %s3443_s16 = sld [smem:[#allocation11 + $0x55]] }
 0x185   : > { %v1133_v17 = vstv %s4280_s10  ;;  %s3441_s10 = sld [smem:[#allocation11 + $0x54]]  ;;  %s3451_s1 = sld [smem:[#allocation11 + $0x56]] }
 0x186   : > { %v1136_v6 = vstv %s4281_s11  ;;  %v1140_v0 = vstv %s4282_s20  ;;  %v1988_v4 = vpop.eup %1987  ;;  %v980_v13 = vadd.f32 %v3257_v57, %v979_v59  ;;  %s3368_s11 = sld [smem:[#allocation11 + $0x4e]]  ;;  %s3453_s8 = sld [smem:[#allocation11 + $0x57]] }
 0x187   : > { %v970_v51 = vmul.f32 %v1988_v4, %v3267_v20  ;;  %s3455_s15 = sld [smem:[#allocation11 + $0x58]]  ;;  %s3459_s3 = sld [smem:[#allocation11 + $0x59]] }
 0x188   : > { %1290 = vadd.xlane.f32.xlu1 %v980_v13  ;;  %v1004_v12 = vmul.f32 %v1003_v11, %v980_v13  ;;  %v1023_v7 = vmul.f32 %v1022_v47, %v980_v13  ;;  %v1042_v63 = vmul.f32 %v1041_v50, %v980_v13  ;;  %v1061_v59 = vmul.f32 %v1060_v56, %v980_v13  ;;  %s3461_s28 = sld [smem:[#allocation11 + $0x5a]]  ;;  %s3463_s20 = sld [smem:[#allocation11 + $0x5b]] }
 0x189   : > { %v971_v4 = vadd.f32 %v3264_v5, %v970_v51  ;;  %v1080_v60 = vmul.f32 %v1079_v53, %v980_v13  ;;  %v1099_v1 = vmul.f32 %v1098_v34, %v980_v13  ;;  %v1118_v10 = vmul.f32 %v1117_v32, %v980_v13  ;;  %s3465_s6 = sld [smem:[#allocation11 + $0x5c]]  ;;  %s4308_s0 = sld [smem:[#allocation141_spill]] }
 0x18a   : > { %v1990_v14 = vpop.eup %1989  ;;  %s4309_s9 = sld [smem:[#allocation142_spill]]  ;;  %s4313_s25 = sld [smem:[#allocation143_spill]] }
 0x18b   : > { %1287 = vadd.xlane.f32.xlu0 %v971_v4  ;;  %v997_v19 = vmul.f32 %v1990_v14, %v3274_v24  ;;  %v1001_v9 = vmul.f32 %v1000_v16, %v971_v4  ;;  %v1020_v43 = vmul.f32 %v1019_v38, %v971_v4  ;;  %v1039_v51 = vmul.f32 %v1038_v41, %v971_v4  ;;  %s4314_s29 = sld [smem:[#allocation130_spill]]  ;;  %s4338_s23 = sld [smem:[#allocation39_spill]] }
 0x18c   : > { %v1058_v11 = vmul.f32 %v1057_v44, %v971_v4  ;;  %v1077_v47 = vmul.f32 %v1076_v36, %v971_v4  ;;  %v1096_v50 = vmul.f32 %v1095_v15, %v971_v4  ;;  %v1115_v34 = vmul.f32 %v1114_v25, %v971_v4  ;;  %s4339_s17 = sld [smem:[#allocation40_spill]]  ;;  %s4342_s27 = sld [smem:[#allocation69_spill]] }
 0x18d   : > { %v998_v32 = vadd.f32 %v3271_v31, %v997_v19  ;;  %v1005_v14 = vadd.f32 %v1004_v12, %v1001_v9  ;;  %v1024_v53 = vadd.f32 %v1023_v7, %v1020_v43  ;;  %v1043_v16 = vadd.f32 %v1042_v63, %v1039_v51  ;;  %s4359_s7 = sld [smem:[#allocation55_spill]]  ;;  %s4361_s30 = sld [smem:[#allocation59_spill]] }
 0x18e   : > { %v1992_v38 = vpop.eup %1991  ;;  %v1062_v41 = vadd.f32 %v1061_v59, %v1058_v11  ;;  %v1081_v44 = vadd.f32 %v1080_v60, %v1077_v47  ;;  %v1100_v56 = vadd.f32 %v1099_v1, %v1096_v50  ;;  %v1119_v36 = vadd.f32 %v1118_v10, %v1115_v34  ;;  %s4363_s26 = sld [smem:[#allocation63_spill]] }
 0x18f   : > { %1296 = vadd.xlane.f32.xlu1 %v998_v32  ;;  %v988_v15 = vmul.f32 %v1992_v38, %v3281_v46  ;;  %v1209_v25 = vstv %s3368_s11  ;;  %v1213_v9 = vstv %s3374_s4  ;;  %v1220_v12 = vstv %s3376_s5  ;;  %s3520_s5 = sld [smem:[#allocation11 + $0x5e]]  ;;  %s4327_s4 = sld [smem:[#allocation45_spill]] }
 0x190   : > { %v1012_v43 = vmul.f32 %v1011_v23, %v998_v32  ;;  %v1031_v7 = vmul.f32 %v1030_v26, %v998_v32  ;;  %v1137_v60 = vmul.f32 %v1136_v6, %v980_v13  ;;  %v1223_v63 = vstv %s3382_s24  ;;  %s3528_s24 = sld [smem:[#allocation11 + $0x5f]]  ;;  %s4330_s11 = sld [smem:[#allocation57_spill]] }
 0x191   : > { %v989_v10 = vadd.f32 %v3278_v22, %v988_v15  ;;  %v1050_v1 = vmul.f32 %v1049_v55, %v998_v32  ;;  %v1069_v19 = vmul.f32 %v1068_v29, %v998_v32  ;;  %v1134_v59 = vmul.f32 %v1133_v17, %v971_v4 }
 0x192   : > { %v1088_v23 = vmul.f32 %v1087_v58, %v998_v32  ;;  %v1107_v51 = vmul.f32 %v1106_v42, %v998_v32  ;;  %v1126_v26 = vmul.f32 %v1125_v2, %v998_v32  ;;  %v1145_v6 = vmul.f32 %v1144_v3, %v998_v32 }
 0x193   : > { %1293 = vadd.xlane.f32.xlu0 %v989_v10  ;;  %v1008_v13 = vmul.f32 %v1007_v8, %v989_v10  ;;  %v1027_v55 = vmul.f32 %v1026_v45, %v989_v10  ;;  %v1046_v17 = vmul.f32 %v1045_v35, %v989_v10  ;;  %v1065_v29 = vmul.f32 %v1064_v61, %v989_v10 }
 0x194   : > { %v1084_v3 = vmul.f32 %v1083_v27, %v989_v10  ;;  %v1103_v58 = vmul.f32 %v1102_v33, %v989_v10  ;;  %v1122_v2 = vmul.f32 %v1121_v39, %v989_v10  ;;  %v1138_v42 = vadd.f32 %v1137_v60, %v1134_v59 }
 0x195   : > { %v1009_v8 = vadd.f32 %v1008_v13, %v1005_v14  ;;  %v1028_v45 = vadd.f32 %v1027_v55, %v1024_v53  ;;  %v1047_v35 = vadd.f32 %v1046_v17, %v1043_v16  ;;  %v1066_v61 = vadd.f32 %v1065_v29, %v1062_v41 }
 0x196   : > { %v1085_v4 = vadd.f32 %v1084_v3, %v1081_v44  ;;  %v1104_v11 = vadd.f32 %v1103_v58, %v1100_v56  ;;  %v1123_v27 = vadd.f32 %v1122_v2, %v1119_v36  ;;  %v1141_v33 = vmul.f32 %v1140_v0, %v989_v10 }
 0x197   : > { %v1013_v39 = vadd.f32 %v1012_v43, %v1009_v8  ;;  %v1032_v47 = vadd.f32 %v1031_v7, %v1028_v45  ;;  %v1051_v50 = vadd.f32 %v1050_v1, %v1047_v35  ;;  %v1070_v34 = vadd.f32 %v1069_v19, %v1066_v61 }
 0x198   : > { %v1089_v32 = vadd.f32 %v1088_v23, %v1085_v4  ;;  %v1108_v14 = vadd.f32 %v1107_v51, %v1104_v11  ;;  %v1127_v53 = vadd.f32 %v1126_v26, %v1123_v27  ;;  %v1142_v16 = vadd.f32 %v1141_v33, %v1138_v42 }
 0x199   : > { %v1016_v0 = vadd.f32 %v1015_v54, %v1013_v39  ;;  %v1035_v38 = vadd.f32 %v1034_v21, %v1032_v47  ;;  %v1054_v41 = vadd.f32 %v1053_v37, %v1051_v50  ;;  %v1073_v44 = vadd.f32 %v1072_v28, %v1070_v34 }
 0x19a   : > { %v1092_v56 = vadd.f32 %v1091_v49, %v1089_v32  ;;  %v1146_v36 = vadd.f32 %v1145_v6, %v1142_v16  ;;  %v1227_v15 = vstv %s3429_s19  ;;  %v1231_v43 = vstv %s3431_s12  ;;  %s4331_s19 = sld [smem:[#allocation61_spill]]  ;;  %s4332_s12 = sld [smem:[#allocation34_spill]] }
 0x19b   : > { %v1017_v7 = vmax.f32 %v1016_v0, 0.0  ;;  %v1036_v60 = vmax.f32 %v1035_v38, 0.0  ;;  %v1055_v54 = vmax.f32 %v1054_v41, 0.0  ;;  %v1235_v21 = vstv %s3441_s10  ;;  %s4333_s10 = sld [smem:[#allocation35_spill]] }
 0x19c   : > { %v1111_v37 = vadd.f32 %v1110_v40, %v1108_v14  ;;  %v1239_v10 = vstv %s3443_s16  ;;  %v1243_v28 = vstv %s3451_s1  ;;  %v1247_v49 = vstv %s3453_s8  ;;  %s4334_s16 = sld [smem:[#allocation36_spill]]  ;;  %s4335_s1 = sld [smem:[#allocation65_spill]] }
 0x19d   : > { %v1074_v1 = vmax.f32 %v1073_v44, 0.0  ;;  %v1153_v19 = vmul.f32 %v1152_v52, %v1017_v7  ;;  %v1156_v59 = vmul.f32 %v1155_v48, %v1036_v60  ;;  %v1254_v23 = vstv %s3455_s15  ;;  %s4336_s15 = sld [smem:[#allocation37_spill]]  ;;  %s4337_s8 = sld [smem:[#allocation38_spill]] }
 0x19e   : > { %v1093_v51 = vmax.f32 %v1092_v56, 0.0  ;;  %v1130_v26 = vadd.f32 %v1129_v18, %v1127_v53  ;;  %v1149_v6 = vadd.f32 %v1148_v30, %v1146_v36  ;;  %v1257_v40 = vstv %s3459_s3  ;;  %s4344_s3 = sld [smem:[#allocation70_spill]] }
 0x19f   : > { %v1157_v13 = vadd.f32 %v1156_v59, %v1153_v19  ;;  %v4310_v55 = vstv %s4308_s0  ;;  %v4311_v29 = vstv %s3327_s22  ;;  %v4312_v58 = vstv %s3329_s21  ;;  %s4317_s21 = sld [smem:[#allocation131_spill]]  ;;  %s3512_s22 = sld [smem:[#allocation11 + $0x5d]] }
 0x1a0   : > { %v1160_v17 = vmul.f32 %v4310_v55, %v1055_v54  ;;  %v1187_v3 = vmul.f32 %v4311_v29, %v1017_v7  ;;  %v1190_v52 = vmul.f32 %v4312_v58, %v1036_v60  ;;  %v1112_v2 = vmax.f32 %v1111_v37, 0.0  ;;  %s4364_s0 = sld [smem:[#allocation42_spill]] }
 0x1a1   : > { %v1261_v48 = vstv %s3461_s28  ;;  %v1265_v42 = vstv %s3463_s20  ;;  %v1269_v8 = vstv %s3465_s6  ;;  %v4315_v45 = vstv %s4309_s9  ;;  %s4354_s28 = sld [smem:[#allocation43_spill]]  ;;  %s4356_s20 = sld [smem:[#allocation47_spill]] }
 0x1a2   : > { %v1161_v18 = vadd.f32 %v1160_v17, %v1157_v13  ;;  %v1164_v30 = vmul.f32 %v4315_v45, %v1074_v1  ;;  %v1191_v35 = vadd.f32 %v1190_v52, %v1187_v3  ;;  %v4316_v61 = vstv %s3335_s2  ;;  %s4321_s2 = sld [smem:[#allocation132_spill]]  ;;  %s4358_s6 = sld [smem:[#allocation51_spill]] }
 0x1a3   : > { %v1194_v4 = vmul.f32 %v4316_v61, %v1055_v54  ;;  %v1131_v11 = vmax.f32 %v1130_v26, 0.0  ;;  %v1150_v27 = vmax.f32 %v1149_v6, 0.0  ;;  %v1221_v33 = vmul.f32 %v1220_v12, %v1017_v7  ;;  %s4365_s9 = sld [smem:[#allocation46_spill]] }
 0x1a4   : > { %v1224_v39 = vmul.f32 %v1223_v63, %v1036_v60  ;;  %v1165_v47 = vadd.f32 %v1164_v30, %v1161_v18  ;;  %v4318_v50 = vstv %s4313_s25  ;;  %v4319_v14 = vstv %s3337_s18  ;;  %s4328_s18 = sld [smem:[#allocation49_spill]]  ;;  %s4366_s25 = sld [smem:[#allocation50_spill]] }
 0x1a5   : > { %v1168_v34 = vmul.f32 %v4318_v50, %v1093_v51  ;;  %v1195_v32 = vadd.f32 %v1194_v4, %v1191_v35  ;;  %v1198_v53 = vmul.f32 %v4319_v14, %v1074_v1  ;;  %v4320_v16 = vstv %s4314_s29  ;;  %s4367_s29 = sld [smem:[#allocation54_spill]] }
 0x1a6   : > { %v1172_v0 = vmul.f32 %v4320_v16, %v1112_v2  ;;  %v1225_v38 = vadd.f32 %v1224_v39, %v1221_v33  ;;  %v1228_v41 = vmul.f32 %v1227_v15, %v1055_v54  ;;  %v1255_v44 = vmul.f32 %v1254_v23, %v1017_v7 }
 0x1a7   : > { %v1169_v12 = vadd.f32 %v1168_v34, %v1165_v47  ;;  %v1199_v63 = vadd.f32 %v1198_v53, %v1195_v32  ;;  %v4322_v56 = vstv %s3342_s13  ;;  %v1258_v37 = vmul.f32 %v1257_v40, %v1036_v60  ;;  %s4326_s13 = sld [smem:[#allocation41_spill]] }
 0x1a8   : > { %v1202_v36 = vmul.f32 %v4322_v56, %v1093_v51  ;;  %v4323_v19 = vstv %s4317_s21  ;;  %v4324_v26 = vstv %s3344_s14  ;;  %v1229_v13 = vadd.f32 %v1228_v41, %v1225_v38  ;;  %s4329_s14 = sld [smem:[#allocation53_spill]]  ;;  %s4368_s21 = sld [smem:[#allocation58_spill]] }
 0x1a9   : > { %v1176_v59 = vmul.f32 %v4323_v19, %v1131_v11  ;;  %v1206_v6 = vmul.f32 %v4324_v26, %v1112_v2  ;;  %v1232_v55 = vmul.f32 %v1231_v43, %v1074_v1  ;;  %v1173_v15 = vadd.f32 %v1172_v0, %v1169_v12 }
 0x1aa   : > { %v1203_v7 = vadd.f32 %v1202_v36, %v1199_v63  ;;  %v1259_v23 = vadd.f32 %v1258_v37, %v1255_v44  ;;  %v1262_v17 = vmul.f32 %v1261_v48, %v1055_v54  ;;  %v4325_v29 = vstv %s4321_s2  ;;  %s4370_s2 = sld [smem:[#allocation66_spill]] }
 0x1ab   : > { %v1180_v3 = vmul.f32 %v4325_v29, %v1150_v27  ;;  %v1210_v58 = vmul.f32 %v1209_v25, %v1131_v11  ;;  %v1233_v60 = vadd.f32 %v1232_v55, %v1229_v13  ;;  %v1236_v40 = vmul.f32 %v1235_v21, %v1093_v51 }
 0x1ac   : > { %v1177_v52 = vadd.f32 %v1176_v59, %v1173_v15  ;;  %v1207_v18 = vadd.f32 %v1206_v6, %v1203_v7  ;;  %v1263_v45 = vadd.f32 %v1262_v17, %v1259_v23  ;;  %v1266_v30 = vmul.f32 %v1265_v42, %v1074_v1 }
 0x1ad   : > { %v1214_v43 = vmul.f32 %v1213_v9, %v1150_v27  ;;  %v1237_v35 = vadd.f32 %v1236_v40, %v1233_v60  ;;  %v1240_v61 = vmul.f32 %v1239_v10, %v1112_v2  ;;  %v1273_v4 = vstv %s3512_s22  ;;  %s4369_s22 = sld [smem:[#allocation62_spill]] }
 0x1ae   : > { %v3537_v54 = vadd.f32 %v1180_v3, %v1177_v52  ;;  %v1211_v48 = vadd.f32 %v1210_v58, %v1207_v18  ;;  %v1267_v33 = vadd.f32 %v1266_v30, %v1263_v45  ;;  %v1270_v25 = vmul.f32 %v1269_v8, %v1093_v51 }
 0x1af   : > { %v1241_v39 = vadd.f32 %v1240_v61, %v1237_v35  ;;  %v1244_v47 = vmul.f32 %v1243_v28, %v1131_v11  ;;  %v1277_v21 = vstv %s3520_s5  ;;  %v1274_v42 = vmul.f32 %v1273_v4, %v1112_v2  ;;  %s4371_s5 = sld [smem:[#allocation71_spill]] }
 0x1b0   : > { %v3542_v50 = vadd.f32 %v1214_v43, %v1211_v48  ;;  %v1271_v1 = vadd.f32 %v1270_v25, %v1267_v33  ;;  %v1248_v10 = vmul.f32 %v1247_v49, %v1150_v27  ;;  %v1281_v34 = vstv %s3528_s24  ;;  %s4386_s24 = sld [smem:[#allocation67_spill]] }
 0x1b1   : > { %v1245_v9 = vadd.f32 %v1244_v47, %v1241_v39  ;;  %v1278_v51 = vmul.f32 %v1277_v21, %v1131_v11  ;;  %v1282_v14 = vmul.f32 %v1281_v34, %v1150_v27  ;;  %v4340_v38 = vstv %s4326_s13  ;;  %s4387_s13 = sld [smem:[#allocation72_spill]] }
 0x1b2   : > { %v1275_v32 = vadd.f32 %v1274_v42, %v1271_v1  ;;  %v4341_v11 = vstv %s4327_s4  ;;  %v4343_v12 = vstv %s4328_s18  ;;  %v4345_v56 = vstv %s4329_s14  ;;  %s4388_s4 = sld [smem:[#allocation44_spill]]  ;;  %s4389_s18 = sld [smem:[#allocation48_spill]] }
 0x1b3   : > { %v3547_v28 = vadd.f32 %v1248_v10, %v1245_v9  ;;  %v4346_v36 = vstv %s4330_s11  ;;  %v4347_v19 = vstv %s4331_s19  ;;  %v4348_v26 = vstv %s4332_s12  ;;  %s4390_s14 = sld [smem:[#allocation52_spill]]  ;;  %s4391_s11 = sld [smem:[#allocation56_spill]] }
 0x1b4   : > { %v1279_v8 = vadd.f32 %v1278_v51, %v1275_v32  ;;  %v4349_v13 = vstv %s4333_s10  ;;  %v4350_v15 = vstv %s4334_s16  ;;  %v4351_v23 = vstv %s4335_s1  ;;  %s4392_s19 = sld [smem:[#allocation60_spill]]  ;;  %s4393_s12 = sld [smem:[#allocation64_spill]] }
 0x1b5   : > { %v4352_v3 = vstv %s4336_s15  ;;  %v4353_v60 = vstv %s4337_s8  ;;  %v4355_v52 = vstv %s4338_s23  ;;  %v4357_v45 = vstv %s4339_s17  ;;  %s4395_s10 = sld [smem:[#allocation84_spill]]  ;;  %s4397_s16 = sld [smem:[#allocation85_spill]] }
 0x1b6   : > { %v3549_v53 = vadd.f32 %v1282_v14, %v1279_v8  ;;  %v4360_v35 = vstv %s4342_s27  ;;  %v4362_v4 = vstv %s4344_s3  ;;  %v4372_v34 = vstv %s4354_s28  ;;  %s4400_s1 = sld [smem:[#allocation68_spill]]  ;;  %s4402_s15 = sld [smem:[#allocation73_spill]] }
 0x1b7   : > { %v4373_v51 = vstv %s4356_s20  ;;  %v4374_v14 = vstv %s4358_s6  ;;  %s4404_s8 = sld [smem:[#allocation86_spill]]  ;;  %s3623_s23 = sld [smem:[#allocation12 + $0x8]] }
 0x1b8   : > { %s4406_s17 = sld [smem:[#allocation74_spill]]  ;;  %s4407_s27 = sld [smem:[#allocation75_spill]] }
 0x1b9   : > { %s4408_s3 = sld [smem:[#allocation87_spill]]  ;;  %s4409_s28 = sld [smem:[#allocation76_spill]] }
 0x1ba   : > { %s4411_s20 = sld [smem:[#allocation102_spill]]  ;;  %s4415_s6 = sld [smem:[#allocation103_spill]] }
 0x215   : > { %v1291_v2 = vpop.xlane.xlu1 %1290 }
 0x216   : > { %v1292_v16 = vmul.f32 0.0078125, %v1291_v2 }
 0x218   : > { %v1288_v49 = vpop.xlane.xlu0 %1287  ;;  %v1300_v41 = vmul.f32 %v1292_v16, %v4340_v38  ;;  %v1309_v44 = vmul.f32 %v1292_v16, %v4341_v11  ;;  %v1318_v63 = vmul.f32 %v1292_v16, %v4343_v12  ;;  %v1327_v27 = vmul.f32 %v1292_v16, %v4345_v56 }
 0x219   : > { %v1289_v0 = vmul.f32 0.0078125, %v1288_v49  ;;  %v1336_v37 = vmul.f32 %v1292_v16, %v4346_v36  ;;  %v1345_v59 = vmul.f32 %v1292_v16, %v4347_v19  ;;  %v1354_v17 = vmul.f32 %v1292_v16, %v4351_v23 }
 0x21a   : > { %v1363_v48 = vmul.f32 %v1292_v16, %v4362_v4  ;;  %v4375_v16 = vstv %s4359_s7  ;;  %v4378_v12 = vstv %s4364_s0  ;;  %v4379_v56 = vstv %s4365_s9  ;;  %s4418_s7 = sld [smem:[#allocation88_spill]]  ;;  %s4424_s0 = sld [smem:[#allocation94_spill]] }
 0x21b   : > { %v1299_v6 = vmul.f32 %v1289_v0, %v4348_v26  ;;  %v1308_v55 = vmul.f32 %v1289_v0, %v4349_v13  ;;  %v1317_v7 = vmul.f32 %v1289_v0, %v4350_v15  ;;  %v1326_v58 = vmul.f32 %v1289_v0, %v4352_v3  ;;  %s4425_s9 = sld [smem:[#allocation95_spill]] }
 0x21c   : > { %v1297_v29 = vpop.xlane.xlu1 %1296  ;;  %v1335_v40 = vmul.f32 %v1289_v0, %v4353_v60  ;;  %v1344_v18 = vmul.f32 %v1289_v0, %v4355_v52  ;;  %v1353_v30 = vmul.f32 %v1289_v0, %v4357_v45  ;;  %v1362_v61 = vmul.f32 %v1289_v0, %v4360_v35 }
 0x21d   : > { %v1298_v43 = vmul.f32 0.0078125, %v1297_v29  ;;  %v1301_v33 = vadd.f32 %v1300_v41, %v1299_v6  ;;  %v1310_v25 = vadd.f32 %v1309_v44, %v1308_v55  ;;  %v1319_v39 = vadd.f32 %v1318_v63, %v1317_v7 }
 0x21e   : > { %v1328_v21 = vadd.f32 %v1327_v27, %v1326_v58  ;;  %v1337_v1 = vadd.f32 %v1336_v37, %v1335_v40  ;;  %v1346_v42 = vadd.f32 %v1345_v59, %v1344_v18  ;;  %v1355_v9 = vadd.f32 %v1354_v17, %v1353_v30 }
 0x21f   : > { %v1304_v32 = vmul.f32 %v1298_v43, %v4372_v34  ;;  %v1313_v8 = vmul.f32 %v1298_v43, %v4373_v51  ;;  %v1322_v2 = vmul.f32 %v1298_v43, %v4374_v14  ;;  %v1331_v49 = vmul.f32 %v1298_v43, %v4375_v16 }
 0x220   : > { %v1294_v47 = vpop.xlane.xlu0 %1293  ;;  %v4376_v0 = vstv %s4361_s30  ;;  %v4377_v41 = vstv %s4363_s26  ;;  %v1364_v44 = vadd.f32 %v1363_v48, %v1362_v61  ;;  %v4380_v36 = vstv %s4366_s25  ;;  %s4421_s30 = sld [smem:[#allocation77_spill]]  ;;  %s4423_s26 = sld [smem:[#allocation104_spill]] }
 0x221   : > { %v1295_v10 = vmul.f32 0.0078125, %v1294_v47  ;;  %v1340_v38 = vmul.f32 %v1298_v43, %v4376_v0  ;;  %v1349_v11 = vmul.f32 %v1298_v43, %v4377_v41  ;;  %v4381_v19 = vstv %s4367_s29  ;;  %s4428_s25 = sld [smem:[#allocation89_spill]]  ;;  %s4429_s29 = sld [smem:[#allocation78_spill]] }
 0x222   : > { %v4382_v26 = vstv %s4368_s21  ;;  %v4383_v13 = vstv %s4369_s22  ;;  %v4384_v15 = vstv %s4370_s2  ;;  %v4385_v23 = vstv %s4371_s5  ;;  %s4431_s21 = sld [smem:[#allocation105_spill]]  ;;  %s3652_s22 = sld [smem:[#allocation12 + $0x9]] }
 0x223   : > { %v1302_v63 = vmul.f32 %v1295_v10, %v4378_v12  ;;  %v1311_v27 = vmul.f32 %v1295_v10, %v4379_v56  ;;  %v1320_v37 = vmul.f32 %v1295_v10, %v4380_v36  ;;  %v1329_v59 = vmul.f32 %v1295_v10, %v4381_v19  ;;  %s4432_s2 = sld [smem:[#allocation96_spill]]  ;;  %s4435_s5 = sld [smem:[#allocation90_spill]] }
 0x224   : > { %v1338_v6 = vmul.f32 %v1295_v10, %v4382_v26  ;;  %v1347_v55 = vmul.f32 %v1295_v10, %v4383_v13  ;;  %v1356_v7 = vmul.f32 %v1295_v10, %v4384_v15  ;;  %v1365_v17 = vmul.f32 %v1295_v10, %v4385_v23 }
 0x225   : > { %v1303_v29 = vadd.f32 %v1302_v63, %v1301_v33  ;;  %v1312_v3 = vadd.f32 %v1311_v27, %v1310_v25  ;;  %v1321_v58 = vadd.f32 %v1320_v37, %v1319_v39  ;;  %v1330_v60 = vadd.f32 %v1329_v59, %v1328_v21 }
 0x226   : > { %v1339_v40 = vadd.f32 %v1338_v6, %v1337_v1  ;;  %v1348_v52 = vadd.f32 %v1347_v55, %v1346_v42  ;;  %v1357_v18 = vadd.f32 %v1356_v7, %v1355_v9  ;;  %v1366_v45 = vadd.f32 %v1365_v17, %v1364_v44 }
 0x227   : > { %v1305_v30 = vadd.f32 %v1304_v32, %v1303_v29  ;;  %v1314_v35 = vadd.f32 %v1313_v8, %v1312_v3  ;;  %v1323_v61 = vadd.f32 %v1322_v2, %v1321_v58  ;;  %v1332_v4 = vadd.f32 %v1331_v49, %v1330_v60 }
 0x228   : > { %v1341_v48 = vadd.f32 %v1340_v38, %v1339_v40  ;;  %v1350_v47 = vadd.f32 %v1349_v11, %v1348_v52  ;;  %v4394_v33 = vstv %s4386_s24  ;;  %v4396_v10 = vstv %s4387_s13  ;;  %s4437_s24 = sld [smem:[#allocation79_spill]]  ;;  %s4440_s13 = sld [smem:[#allocation106_spill]] }
 0x229   : > { %v1358_v25 = vmul.f32 %v1298_v43, %v4394_v33  ;;  %v1367_v39 = vmul.f32 %v1298_v43, %v4396_v10  ;;  %v4398_v21 = vstv %s4388_s4  ;;  %v4399_v1 = vstv %s4389_s18  ;;  %s4442_s4 = sld [smem:[#allocation97_spill]]  ;;  %s4444_s18 = sld [smem:[#allocation91_spill]] }
 0x22a   : > { %v1306_v34 = vadd.f32 %v1305_v30, %v4398_v21  ;;  %v1315_v42 = vadd.f32 %v1314_v35, %v4399_v1  ;;  %v4401_v9 = vstv %s4390_s14  ;;  %v4403_v51 = vstv %s4391_s11  ;;  %s4446_s14 = sld [smem:[#allocation80_spill]]  ;;  %s4448_s11 = sld [smem:[#allocation107_spill]] }
 0x22b   : > { %v1324_v32 = vadd.f32 %v1323_v61, %v4401_v9  ;;  %v1333_v8 = vadd.f32 %v1332_v4, %v4403_v51  ;;  %v4405_v14 = vstv %s4392_s19  ;;  %v1359_v16 = vadd.f32 %v1358_v25, %v1357_v18  ;;  %s3672_s19 = sld [smem:[#allocation12 + $0xa]] }
 0x22c   : > { %v1342_v2 = vadd.f32 %v1341_v48, %v4405_v14  ;;  %v1368_v49 = vadd.f32 %v1367_v39, %v1366_v45  ;;  %v1307_v43 = vmax.f32 %v1306_v34, 0.0  ;;  %v1316_v0 = vmax.f32 %v1315_v42, 0.0 }
 0x22d   : > { %v1325_v38 = vmax.f32 %v1324_v32, 0.0  ;;  %v1334_v41 = vmax.f32 %v1333_v8, 0.0  ;;  %v4410_v11 = vstv %s4393_s12  ;;  %v4412_v12 = vstv %s4395_s10  ;;  %s4450_s12 = sld [smem:[#allocation98_spill]]  ;;  %s4453_s10 = sld [smem:[#allocation81_spill]] }
 0x22e   : > { %v1351_v44 = vadd.f32 %v1350_v47, %v4410_v11  ;;  %v1371_v63 = vmul.f32 %v1307_v43, %v4412_v12  ;;  %v4413_v56 = vstv %s4397_s16  ;;  %v1343_v36 = vmax.f32 %v1342_v2, 0.0  ;;  %s4455_s16 = sld [smem:[#allocation108_spill]] }
 0x22f   : > { %v1372_v27 = vmul.f32 %v1316_v0, %v4413_v56  ;;  %v4414_v37 = vstv %s4400_s1  ;;  %v4416_v59 = vstv %s4402_s15  ;;  %v4417_v13 = vstv %s4404_s8  ;;  %s3682_s1 = sld [smem:[#allocation12 + $0xb]]  ;;  %s4456_s15 = sld [smem:[#allocation99_spill]] }
 0x230   : > { %v1360_v19 = vadd.f32 %v1359_v16, %v4414_v37  ;;  %v1369_v26 = vadd.f32 %v1368_v49, %v4416_v59  ;;  %v1374_v55 = vmul.f32 %v1325_v38, %v4417_v13  ;;  %v4419_v15 = vstv %s4406_s17  ;;  %s4458_s8 = sld [smem:[#allocation92_spill]] }
 0x231   : > { %v1373_v6 = vadd.f32 %v1372_v27, %v1371_v63  ;;  %v1387_v7 = vmul.f32 %v1307_v43, %v4419_v15  ;;  %v4420_v23 = vstv %s4407_s27  ;;  %v1352_v29 = vmax.f32 %v1351_v44, 0.0  ;;  %s4463_s17 = sld [smem:[#allocation100_spill]]  ;;  %s4464_s27 = sld [smem:[#allocation82_spill]] }
 0x232   : > { %v1388_v17 = vmul.f32 %v1316_v0, %v4420_v23  ;;  %v4422_v3 = vstv %s4408_s3  ;;  %v4426_v52 = vstv %s4409_s28  ;;  %v4427_v45 = vstv %s4411_s20  ;;  %s4467_s3 = sld [smem:[#allocation101_spill]]  ;;  %s4470_s28 = sld [smem:[#allocation83_spill]] }
 0x233   : > { %v1376_v58 = vmul.f32 %v1334_v41, %v4422_v3  ;;  %v1375_v60 = vadd.f32 %v1374_v55, %v1373_v6  ;;  %v1390_v18 = vmul.f32 %v1325_v38, %v4426_v52  ;;  %v1403_v30 = vmul.f32 %v1307_v43, %v4427_v45  ;;  %s4473_s20 = sld [smem:[#allocation109_spill]] }
 0x234   : > { %v1389_v40 = vadd.f32 %v1388_v17, %v1387_v7  ;;  %v1183_v35 = vstv %s3623_s23  ;;  %v1361_v61 = vmax.f32 %v1360_v19, 0.0  ;;  %v1370_v4 = vmax.f32 %v1369_v26, 0.0  ;;  %s4461_s23 = sld [smem:[#allocation110_spill]] }
 0x235   : > { %v4430_v48 = vstv %s4415_s6  ;;  %v1377_v33 = vadd.f32 %v1376_v58, %v1375_v60  ;;  %v4433_v25 = vstv %s4418_s7  ;;  %v4434_v21 = vstv %s4421_s30  ;;  %s4478_s6 = sld [smem:[#allocation31_spill]]  ;;  %s4479_s7 = sld [smem:[#allocation25_spill]] }
 0x236   : > { %v1404_v47 = vmul.f32 %v1316_v0, %v4430_v48  ;;  %v1378_v10 = vmul.f32 %v1343_v36, %v4433_v25  ;;  %v1391_v39 = vadd.f32 %v1390_v18, %v1389_v40  ;;  %v1392_v34 = vmul.f32 %v1334_v41, %v4434_v21  ;;  %s4480_s30 = sld [smem:[#allocation30_spill]] }
 0x237   : > { %v4436_v42 = vstv %s4423_s26  ;;  %v4438_v32 = vstv %s4424_s0  ;;  %v4439_v8 = vstv %s4425_s9  ;;  %v4441_v16 = vstv %s4428_s25  ;;  %s4481_s0 = sld [smem:[#allocation28_spill]] }
 0x238   : > { %v1405_v1 = vadd.f32 %v1404_v47, %v1403_v30  ;;  %v1406_v9 = vmul.f32 %v1325_v38, %v4436_v42  ;;  %v1419_v51 = vmul.f32 %v1307_v43, %v4438_v32  ;;  %v1420_v14 = vmul.f32 %v1316_v0, %v4439_v8 }
 0x239   : > { %v1379_v2 = vadd.f32 %v1378_v10, %v1377_v33  ;;  %v1380_v49 = vmul.f32 %v1352_v29, %v4441_v16  ;;  %v1393_v11 = vadd.f32 %v1392_v34, %v1391_v39  ;;  %v4443_v44 = vstv %s4429_s29 }
 0x23a   : > { %v1394_v12 = vmul.f32 %v1343_v36, %v4443_v44  ;;  %v1407_v63 = vadd.f32 %v1406_v9, %v1405_v1  ;;  %v4445_v56 = vstv %s4431_s21  ;;  %v1421_v37 = vadd.f32 %v1420_v14, %v1419_v51 }
 0x23b   : > { %v1408_v27 = vmul.f32 %v1334_v41, %v4445_v56  ;;  %v4447_v19 = vstv %s4432_s2  ;;  %v1381_v43 = vadd.f32 %v1380_v49, %v1379_v2  ;;  %v4449_v0 = vstv %s4435_s5  ;;  %s357_s26 = scalar_lea.vmem [#allocation14], %s4478_s6  ;;  %s1884_s9 = sshll.u32 %s4479_s7, 9 }
 0x23c   : > { %v1422_v59 = vmul.f32 %v1325_v38, %v4447_v19  ;;  %v1382_v26 = vmul.f32 %v1361_v61, %v4449_v0  ;;  %v1395_v6 = vadd.f32 %v1394_v12, %v1393_v11  ;;  %v4451_v13 = vstv %s4437_s24  ;;  %s1490_s25 = sshll.u32 %s357_s26, 4  ;;  %s1476_s24 = scalar_lea.sflag [#allocation4], %s4480_s30  ;;  %s3734_s25 = int_to_ptr.vmem [resolvable:$true] %s1490_s25 }
 0x23d   : > { %v1396_v55 = vmul.f32 %v1352_v29, %v4451_v13  ;;  %v1409_v15 = vadd.f32 %v1408_v27, %v1407_v63  ;;  %v4452_v7 = vstv %s4440_s13  ;;  %v4454_v3 = vstv %s4442_s4  ;;  %s2137_s13 = scalar_lea.vmem %s3734_s25, 512  ;;  %p4484_p3 = scmp.ne.s32.totalorder %s4481_s0, 0 }
 0x23e   : > { %v1410_v23 = vmul.f32 %v1343_v36, %v4452_v7  ;;  %v1423_v17 = vadd.f32 %v1422_v59, %v1421_v37  ;;  %v1424_v58 = vmul.f32 %v1334_v41, %v4454_v3  ;;  %v1383_v38 = vadd.f32 %v1382_v26, %v1381_v43  ;;  %p2138_p1 = scmp.ne.s32.totalorder %s3734_s25, %s2137_s13  ;;  %s2227_s4 = smov [#allocation14]  }
 0x23f   : > { %v4457_v60 = vstv %s4444_s18  ;;  %v1397_v52 = vadd.f32 %v1396_v55, %v1395_v6  ;;  %v4459_v18 = vstv %s4446_s14  ;;  %v4460_v48 = vstv %s4448_s11  ;;  %s2141_s18 = sshll.u32 %s2227_s4, 4  ;;  %s2142_s18 = int_to_ptr.vmem [resolvable:$false] %s2141_s18 }
 0x240   : > { %v1384_v40 = vmul.f32 %v1370_v4, %v4457_v60  ;;  %v1398_v45 = vmul.f32 %v1361_v61, %v4459_v18  ;;  %v1411_v30 = vadd.f32 %v1410_v23, %v1409_v15  ;;  %v1412_v47 = vmul.f32 %v1352_v29, %v4460_v48  ;;  %p2139_p7 = pnand %p2138_p1, %p4484_p3  ;;  %s2143_s14 = scalar_lea.vmem %s2142_s18, 1024 }
 0x241   : > { %v1425_v33 = vadd.f32 %v1424_v58, %v1423_v17  ;;  %v4462_v25 = vstv %s4450_s12  ;;  %v1217_v39 = vstv %s3652_s22  ;;  %v4465_v34 = vstv %s4453_s10  ;;  %s4482_s22 = sld [smem:[#allocation150_spill]]  ;;  %p2144_p2 = scmp.lt.s32.totalorder %s3734_s25, %s2142_s18 }
 0x242   : > { %v1426_v10 = vmul.f32 %v1343_v36, %v4462_v25  ;;  %v1385_v41 = vadd.f32 %v1384_v40, %v1383_v38  ;;  %v1399_v21 = vadd.f32 %v1398_v45, %v1397_v52  ;;  %v1400_v1 = vmul.f32 %v1370_v4, %v4465_v34  ;;  %p2140_p9 = pneg %p2139_p7  ;;  %p2145_p4 = scmp.lt.s32.totalorder %s2143_s14, %s2137_s13 }
 0x243   : > { %v1413_v42 = vadd.f32 %v1412_v47, %v1411_v30  ;;  %v4466_v9 = vstv %s4455_s16  ;;  %v4468_v8 = vstv %s4456_s15  ;;  %v1184_v2 = vadd.f32 %v1183_v35, %v3537_v54 }
 0x244   : > { %v1414_v32 = vmul.f32 %v1361_v61, %v4466_v9  ;;  %v1427_v51 = vadd.f32 %v1426_v10, %v1425_v33  ;;  %v1428_v14 = vmul.f32 %v1352_v29, %v4468_v8  ;;  %v4469_v16 = vstv %s4458_s8  ;;  %p2146_p13 = por %p2145_p4, %p2144_p2 }
 0x245   : > { %v1386_v49 = vadd.f32 %v1385_v41, %v4469_v16  ;;  %v1401_v36 = vadd.f32 %v1400_v1, %v1399_v21  ;;  %v4471_v44 = vstv %s4461_s23  ;;  %v4472_v56 = vstv %s4463_s17 }
 0x246   : > { %v1415_v11 = vadd.f32 %v1414_v32, %v1413_v42  ;;  %v1416_v12 = vmul.f32 %v1370_v4, %v4471_v44  ;;  %v1429_v63 = vadd.f32 %v1428_v14, %v1427_v51  ;;  %v1430_v27 = vmul.f32 %v1361_v61, %v4472_v56  ;;  %p2147_p6 = pnand %p2146_p13, %p2140_p9 }
 0x247   : > { %v1218_v37 = vadd.f32 %v1217_v39, %v3542_v50  ;;  %v1251_v19 = vstv %s3672_s19  ;;  %v4474_v59 = vstv %s4464_s27  ;;  %v1435_v0 = vadd.f32 %v1386_v49, %v1184_v2  ;;  %s4483_s2 = smov %s4482_s22  ;;  %s3732_s5 = scalar_lea.hbm %s4482_s22, %s1884_s9 }
 0x248   : > { %v1402_v43 = vadd.f32 %v1401_v36, %v4474_v59  ;;  %v1417_v29 = vadd.f32 %v1416_v12, %v1415_v11  ;;  %v1431_v26 = vadd.f32 %v1430_v27, %v1429_v63  ;;  %v4475_v54 = vstv %s4467_s3 }
 0x249   : > { %v1432_v35 = vmul.f32 %v1370_v4, %v4475_v54  ;;  %v1285_v6 = vstv %s3682_s1  ;;  %v1873_v13 = vmul.f32 -1.442695, %v1435_v0  ;;  %v1252_v15 = vadd.f32 %v1251_v19, %v3547_v28 }
 0x24a   : > { %v1445_v55 = vadd.f32 %v1402_v43, %v1218_v37  ;;  %v4476_v7 = vstv %s4470_s28  ;;  %v1286_v50 = vadd.f32 %v1285_v6, %v3549_v53  ;;  %v4477_v3 = vstv %s4473_s20 }
 0x24b   : > { %v1418_v23 = vadd.f32 %v1417_v29, %v4476_v7  ;;  %v1433_v17 = vadd.f32 %v1432_v35, %v1431_v26  ;;  %1993 = vpow2.f32 %v1873_v13 }
 0x24c   : > { %v1874_v61 = vmul.f32 -1.442695, %v1445_v55 }
 0x24d   : > { %v1434_v58 = vadd.f32 %v1433_v17, %v4477_v3  ;;  %v1455_v38 = vadd.f32 %v1418_v23, %v1252_v15 }
 0x24e   : > { %1995 = vpow2.f32 %v1874_v61 }
 0x24f   : > { %v1875_v60 = vmul.f32 -1.442695, %v1455_v38  ;;  %v1465_v40 = vadd.f32 %v1434_v58, %v1286_v50 }
 0x251   : > { %1997 = vpow2.f32 %v1875_v60  ;;  %v1876_v4 = vmul.f32 -1.442695, %v1465_v40 }
 0x253   : > { %1999 = vpow2.f32 %v1876_v4 }
 0x255   : > { %v1994_v52 = vpop.eup %1993 }
 0x256   : > { %v1439_v18 = vadd.f32 1.0, %v1994_v52 }
 0x258   : > { %v1996_v45 = vpop.eup %1995  ;;  %2001 = vrcp.f32 %v1439_v18 }
 0x259   : > { %v1449_v28 = vadd.f32 1.0, %v1996_v45 }
 0x25b   : > { %v1998_v30 = vpop.eup %1997  ;;  %2003 = vrcp.f32 %v1449_v28 }
 0x25c   : > { %v1459_v48 = vadd.f32 1.0, %v1998_v30 }
 0x25d   : > { %v2000_v47 = vpop.eup %1999 }
 0x25e   : > { %2005 = vrcp.f32 %v1459_v48  ;;  %v1469_v53 = vadd.f32 1.0, %v2000_v47 }
 0x260   : > { %2007 = vrcp.f32 %v1469_v53 }
 0x262   : > { %v2002_v33 = vpop.eup %2001 }
 0x263   : > { %v1442_v25 = vmul.f32 %v2002_v33, %v3267_v20 }
 0x265   : > { %v2004_v10 = vpop.eup %2003  ;;  %v1443_v39 = vadd.f32 %v3264_v5, %v1442_v25 }
 0x266   : > { %v1452_v41 = vmul.f32 %v2004_v10, %v3260_v62 }
 0x267   : > { %1444 = vst [vmem:[%s357_s26] sm:$0xff] %v1443_v39 }
 0x268   : > { %v2006_v21 = vpop.eup %2005  ;;  %v1453_v34 = vadd.f32 %v3257_v57, %v1452_v41 }
 0x269   : > { %v1462_v1 = vmul.f32 %v2006_v21, %v3281_v46 }
 0x26a   : > { %v2008_v42 = vpop.eup %2007  ;;  %1454 = vst [vmem:[%s357_s26 + $0x8] sm:$0xff] %v1453_v34 }
 0x26b   : > { %v1463_v20 = vadd.f32 %v3278_v22, %v1462_v1  ;;  %v1472_v9 = vmul.f32 %v2008_v42, %v3274_v24 }
 0x26d   : > { %1464 = vst [vmem:[%s357_s26 + $0x10] sm:$0xff] %v1463_v20  ;;  %v1473_v62 = vadd.f32 %v3271_v31, %v1472_v9 }
 0x26f   : > { %1474 = vst [vmem:[%s357_s26 + $0x18] sm:$0xff] %v1473_v62 }
 0x270   : > { %2150 = shalt.err (!%p2147_p6)
}
 0x271   : > { %s2151_s11 = scalar_lea.hbm %s3732_s5, 512  ;;  %s2155_s10 = scalar_lea.hbm %s4483_s2, 1024 }
 0x272   : > { %p2152_p10 = scmp.ne.s32.totalorder %s3732_s5, %s2151_s11  ;;  %p2156_p11 = scmp.lt.u32.totalorder %s3732_s5, %s4483_s2 }
 0x273   : > { %p2157_p12 = scmp.lt.u32.totalorder %s2155_s10, %s2151_s11  ;;  %p2159_p1 = scmp.lt.u32.totalorder %s2151_s11, %s3732_s5 }
 0x274   : > { %p2153_p8 = pnand %p2152_p10, %p4484_p3 }
 0x275   : > { %p2158_p0 = por %p2157_p12, %p2156_p11 }
 0x276   : > { %p2154_p5 = pneg %p2153_p8 }
 0x277   : > { %p2160_p7 = por %p2159_p1, %p2158_p0 }
 0x279   : > { %p2161_p9 = pnand %p2160_p7, %p2154_p5 }
 0x27b   : > { %2164 = shalt.err (!%p2161_p9)
}
 0x27c   : > { %1905 = dma.vmem_to_hbm [thread:$0]  (%p4484_p3), %s3734_s25, 512, %s3732_s5, %s1476_s24  }
 0x27d PF: > { %s4485_s15 = sld [smem:[#allocation21_spill]]  ;;  %s4486_s8 = sld [smem:[#allocation29_spill]] }
 0x27e   : > { %s4487_s23 = sld [smem:[#allocation24_spill]] }
 0x283   : > { %s1502_s17 = sand.u32 1, %s4485_s15   ;;  %p4488_p2 = scmp.ne.s32.totalorder %s4486_s8, 0 }
 0x284   : > { %p4489_p4 = scmp.ge.s32.totalorder %s4487_s23, 2  ;;  %s1503_s27 = scalar_lea.sflag [#allocation4], %s1502_s17 }
 0x286   : > { %p1928_p13 = pnand %p4489_p4, %p4488_p2 }
 0x288   : > { %2202 = dma.done.wait (!%p1928_p13), %s1503_s27, 512  }
 0x289   : > { %2204 = vsyncadd (!%p1928_p13), %s1503_s27, 4294966784  ;;  %s4490_s24 = sld [smem:[#allocation26_spill]]  ;;  %s4491_s21 = sld [smem:[#allocation22_spill]] }
 0x28a   : > { %s4492_s22 = sld [smem:[#allocation23_spill]]  ;;  %s4493_s23 = sld [smem:[#allocation27_spill]] }
 0x28f   : > { %p25_p6 = scmp.ge.s32.totalorder %s4490_s24, 4  }
 0x291   :  { %27 = sbr.rel (!%p25_p6) target bundleno = 18 (0x12), region = 119 }
 0x298   :  { %1508 = vsyncpa [#allocation3], 1 }
 0x299   :  { %1510 = vsyncpa [#allocation3 + $0x1], 1 }
 0x29a   :  { %1511 = vsyncpa [#allocation7], 1 }
 0x29b   :  { %1513 = vsyncpa [#allocation7 + $0x1], 1 }
 0x29c   :  { %1514 = vsyncpa [#allocation4], 1 }
 0x29d   :  { %1516 = vsyncpa [#allocation4 + $0x1], 1 }
 0x29e   :  { %1517 = vsyncpa [#allocation5], 1 }
 0x29f   :  { %1519 = vsyncpa [#allocation5 + $0x1], 1 }
 0x2a0   :  { %1520 = vsyncpa [#allocation10], 1 }
 0x2a1   :  { %1521 = vsyncpa [#allocation13], 1 }

</bundles_post_ra>
